<compile_context>
chip_gen: v6e
topology: v6e:2x2x1
jax: 0.10.0
libtpu: 0.0.40
codegen_flags: <defaults>
</compile_context>

<pallas_src>
import functools
import numpy as np
import jax
import jax.numpy as jnp
from jax.experimental import pallas as pl
from jax.experimental.pallas import tpu as pltpu

_VMEM_LIMIT = 48 * 1024 * 1024  # < 64 MiB physical on v7x, << 128 MiB on v5e/v6e


# ----------------------------------------------------------------------------
# tiling helpers (used both at weight-prep time and at call time so padded
# shapes always agree)
# ----------------------------------------------------------------------------
def _round_up(x, m):
    return (x + m - 1) // m * m


def _tile_m(M, cap=256):
    return cap if M >= cap else _round_up(max(M, 8), 16)


def _tile_n(N):
    return min(512, _round_up(N, 128))


def _tile_k(K):
    return min(1024, _round_up(K, 128))


def _prep_matrix(w_mat, K, N):
    """(K,N) matrix -> tile-padded bf16 (Kp,Np). Done once at prep time for weights."""
    Kp = _round_up(K, _tile_k(K))
    Np = _round_up(N, _tile_n(N))
    w_mat = jnp.asarray(w_mat)
    if w_mat.shape == (Kp, Np):
        return w_mat.astype(jnp.bfloat16)
    return jnp.zeros((Kp, Np), jnp.bfloat16).at[:K, :N].set(w_mat.astype(jnp.bfloat16))


def _prep_bias(b, N):
    Np = _round_up(N, _tile_n(N))
    bb = jnp.zeros((1, Np), jnp.float32)
    if b is not None:
        bb = bb.at[0, :N].set(jnp.asarray(b).astype(jnp.float32))
    return bb


def _zero_bias(N):
    return jnp.zeros((1, _round_up(N, _tile_n(N))), jnp.float32)


# ----------------------------------------------------------------------------
# Generic tiled matmul kernels: C = act(A @ B + bias), bf16 inputs, f32 acc
# ----------------------------------------------------------------------------
def _mm_kernel_acc(a_ref, b_ref, bias_ref, o_ref, acc_ref, *, relu):
    k = pl.program_id(2)

    @pl.when(k == 0)
    def _():
        acc_ref[...] = jnp.zeros_like(acc_ref)

    acc_ref[...] += jnp.dot(a_ref[...], b_ref[...],
                            preferred_element_type=jnp.float32)

    @pl.when(k == pl.num_programs(2) - 1)
    def _():
        r = acc_ref[...] + bias_ref[...]
        if relu:
            r = jnp.maximum(r, 0.0)
        o_ref[...] = r.astype(o_ref.dtype)


def _mm_kernel_single(a_ref, b_ref, bias_ref, o_ref, *, relu):
    # single K step: no accumulator scratch, no init/finalize branches
    r = jnp.dot(a_ref[...], b_ref[...],
                preferred_element_type=jnp.float32) + bias_ref[...]
    if relu:
        r = jnp.maximum(r, 0.0)
    o_ref[...] = r.astype(o_ref.dtype)


def matmul_bias_act(a, b_p, bias_p, *, M, K, N, relu=False,
                    out_dtype=jnp.bfloat16):
    """A:(M,K) @ pre-padded bf16 weight B:(Kp,Np) + bias:(1,Np), optional ReLU.

    A is cast to bf16 (MXU inputs) and only padded when actually misaligned.
    """
    Kp, Np = b_p.shape
    tm = _tile_m(M)
    Mp = _round_up(M, tm)
    tk = _tile_k(K)
    tn = _tile_n(N)
    assert Kp % tk == 0 and Np % tn == 0, (Kp, tk, Np, tn)

    a = a.astype(jnp.bfloat16)
    if a.shape != (Mp, Kp):
        a = jnp.zeros((Mp, Kp), jnp.bfloat16).at[:M, :K].set(a)

    gm, gn, gk = Mp // tm, Np // tn, Kp // tk
    cost = pl.CostEstimate(
        flops=2 * Mp * Np * Kp,
        transcendentals=0,
        bytes_accessed=Mp * Kp * 2 + Kp * Np * 2
        + Mp * Np * jnp.dtype(out_dtype).itemsize)

    if gk == 1:
        out = pl.pallas_call(
            functools.partial(_mm_kernel_single, relu=relu),
            out_shape=jax.ShapeDtypeStruct((Mp, Np), out_dtype),
            grid_spec=pltpu.PrefetchScalarGridSpec(
                num_scalar_prefetch=0,
                grid=(gm, gn),
                in_specs=[
                    pl.BlockSpec((tm, tk), lambda i, j: (i, 0)),
                    pl.BlockSpec((tk, tn), lambda i, j: (0, j)),
                    pl.BlockSpec((1, tn), lambda i, j: (0, j)),
                ],
                out_specs=pl.BlockSpec((tm, tn), lambda i, j: (i, j)),
            ),
            compiler_params=pltpu.CompilerParams(
                dimension_semantics=("parallel", "parallel"),
                vmem_limit_bytes=_VMEM_LIMIT),
            cost_estimate=cost,
        )(a, b_p, bias_p)
    else:
        out = pl.pallas_call(
            functools.partial(_mm_kernel_acc, relu=relu),
            out_shape=jax.ShapeDtypeStruct((Mp, Np), out_dtype),
            grid_spec=pltpu.PrefetchScalarGridSpec(
                num_scalar_prefetch=0,
                grid=(gm, gn, gk),
                in_specs=[
                    pl.BlockSpec((tm, tk), lambda i, j, k: (i, k)),
                    pl.BlockSpec((tk, tn), lambda i, j, k: (k, j)),
                    pl.BlockSpec((1, tn), lambda i, j, k: (0, j)),
                ],
                out_specs=pl.BlockSpec((tm, tn), lambda i, j, k: (i, j)),
                scratch_shapes=[pltpu.VMEM((tm, tn), jnp.float32)],
            ),
            compiler_params=pltpu.CompilerParams(
                dimension_semantics=("parallel", "parallel", "arbitrary"),
                vmem_limit_bytes=_VMEM_LIMIT),
            cost_estimate=cost,
        )(a, b_p, bias_p)

    if (Mp, Np) != (M, N):
        out = out[:M, :N]
    return out


# ----------------------------------------------------------------------------
# Fused MaxPool2d(3,2,1) + collapsed layer1..4 (64->2048, bias) kernel:
# the 9 pooling taps are reduced with a VPU max in-register, then fed straight
# to the MXU — no (M,64) pooled activation ever hits HBM, no K-pad copy.
# ----------------------------------------------------------------------------
def _pool_layers_kernel(x9_ref, w_ref, b_ref, o_ref):
    xm = jnp.max(x9_ref[...], axis=0)                       # (tm, C) bf16
    o_ref[...] = (jnp.dot(xm, w_ref[...],
                          preferred_element_type=jnp.float32)
                  + b_ref[...]).astype(o_ref.dtype)


def fused_maxpool_layers(x_nhwc, w, b):
    """x:(n,h,w,C) bf16 -> maxpool(3,2,1) -> @ w(C,N) + b -> (n,oh,ow,N) bf16."""
    n, h, ww, c = x_nhwc.shape
    N = w.shape[1]
    oh, ow = (h - 1) // 2 + 1, (ww - 1) // 2 + 1
    xp = jnp.full((n, h + 2, ww + 2, c), -jnp.inf, x_nhwc.dtype)
    xp = xp.at[:, 1:1 + h, 1:1 + ww, :].set(x_nhwc)
    # TODO(synk): the 9 shifted strided views are still materialized by XLA in
    # HBM; avoiding that needs manual in-kernel DMA of overlapping windows.
    views = [xp[:, dy:dy + 2 * oh:2, dx:dx + 2 * ow:2, :]
             for dy in range(3) for dx in range(3)]
    M = n * oh * ow
    stacked = jnp.stack(views, axis=0).reshape(9, M, c)
    tm = _tile_m(M)
    Mp = _round_up(M, tm)
    if Mp != M:
        stacked = jnp.concatenate(
            [stacked, jnp.zeros((9, Mp - M, c), stacked.dtype)], axis=1)
    tn = _tile_n(N)
    assert N % tn == 0
    gm, gn = Mp // tm, N // tn
    cost = pl.CostEstimate(
        flops=2 * Mp * c * N + 9 * Mp * c,
        transcendentals=0,
        bytes_accessed=9 * Mp * c * 2 + c * N * 2 + Mp * N * 2)
    out = pl.pallas_call(
        _pool_layers_kernel,
        out_shape=jax.ShapeDtypeStruct((Mp, N), jnp.bfloat16),
        grid_spec=pltpu.PrefetchScalarGridSpec(
            num_scalar_prefetch=0,
            grid=(gm, gn),
            in_specs=[
                pl.BlockSpec((9, tm, c), lambda i, j: (0, i, 0)),
                pl.BlockSpec((c, tn), lambda i, j: (0, j)),
                pl.BlockSpec((1, tn), lambda i, j: (0, j)),
            ],
            out_specs=pl.BlockSpec((tm, tn), lambda i, j: (i, j)),
        ),
        compiler_params=pltpu.CompilerParams(
            dimension_semantics=("parallel", "parallel"),
            vmem_limit_bytes=_VMEM_LIMIT),
        cost_estimate=cost,
    )(stacked, w, b)
    return out[:M].reshape(n, oh, ow, N)


# ----------------------------------------------------------------------------
# Fused FCN head kernel:
#   3x3 conv (K=9*2048 reduction) + folded-BN bias + ReLU + 1x1 (512->1) conv
# all in one pallas_call; head4's dot runs in the k==last epilogue so no padded
# cout=1 matmul pass and no (M,512) HBM round trip.
# ----------------------------------------------------------------------------
def _head_kernel(a_ref, w0_ref, b0_ref, w2_ref, b2_ref, o_ref, acc_ref):
    k = pl.program_id(1)

    @pl.when(k == 0)
    def _():
        acc_ref[...] = jnp.zeros_like(acc_ref)

    acc_ref[...] += jnp.dot(a_ref[...], w0_ref[...],
                            preferred_element_type=jnp.float32)

    @pl.when(k == pl.num_programs(1) - 1)
    def _():
        h = jnp.maximum(acc_ref[...] + b0_ref[...], 0.0)          # BN bias + ReLU
        y = jnp.dot(h.astype(jnp.bfloat16), w2_ref[...],
                    preferred_element_type=jnp.float32) + b2_ref[...]
        o_ref[...] = y.astype(o_ref.dtype)


def fused_fcn_head(a, w0, b0, w2, b2, *, M):
    """a: im2col'd (M, 9*2048) bf16 -> (M, 1) f32 logits."""
    Kp, NMID = w0.shape          # (18432, 512)
    NOUT = w2.shape[1]           # 128 (cout=1 padded to a full lane tile)
    tm = _tile_m(M, cap=512)     # bigger M tile -> fewer re-reads of the 18.9 MB weight
    Mp = _round_up(M, tm)
    tk = _tile_k(Kp)
    assert Kp % tk == 0
    a = a.astype(jnp.bfloat16)
    if a.shape != (Mp, Kp):
        a = jnp.zeros((Mp, Kp), jnp.bfloat16).at[:M, :].set(a)
    gm, gk = Mp // tm, Kp // tk
    cost = pl.CostEstimate(
        flops=2 * Mp * Kp * NMID + 2 * Mp * NMID * NOUT,
        transcendentals=0,
        bytes_accessed=Mp * Kp * 2 + gm * Kp * NMID * 2 + Mp * NOUT * 4)
    out = pl.pallas_call(
        _head_kernel,
        out_shape=jax.ShapeDtypeStruct((Mp, NOUT), jnp.float32),
        grid_spec=pltpu.PrefetchScalarGridSpec(
            num_scalar_prefetch=0,
            grid=(gm, gk),
            in_specs=[
                pl.BlockSpec((tm, tk), lambda i, k: (i, k)),
                pl.BlockSpec((tk, NMID), lambda i, k: (k, 0)),
                pl.BlockSpec((1, NMID), lambda i, k: (0, 0)),
                pl.BlockSpec((NMID, NOUT), lambda i, k: (0, 0)),
                pl.BlockSpec((1, NOUT), lambda i, k: (0, 0)),
            ],
            out_specs=pl.BlockSpec((tm, NOUT), lambda i, k: (i, 0)),
            scratch_shapes=[pltpu.VMEM((tm, NMID), jnp.float32)],
        ),
        compiler_params=pltpu.CompilerParams(
            dimension_semantics=("parallel", "arbitrary"),
            vmem_limit_bytes=_VMEM_LIMIT),
        cost_estimate=cost,
    )(a, w0, b0, w2, b2)
    return out[:M, :1]


# ----------------------------------------------------------------------------
# Conv (PyTorch OIHW) = im2col + Pallas matmul with pre-prepared weights
# ----------------------------------------------------------------------------
def _im2col(x_nhwc, kh, kw, stride, pad):
    n, h, w, c = x_nhwc.shape
    oh = (h + 2 * pad - kh) // stride + 1
    ow = (w + 2 * pad - kw) // stride + 1
    if pad > 0:
        xp = jnp.zeros((n, h + 2 * pad, w + 2 * pad, c), x_nhwc.dtype)
        xp = xp.at[:, pad:pad + h, pad:pad + w, :].set(x_nhwc)
    else:
        xp = x_nhwc
    cols = [xp[:, dy:dy + stride * oh:stride, dx:dx + stride * ow:stride, :]
            for dy in range(kh) for dx in range(kw)]
    patches = jnp.concatenate(cols, axis=-1)            # (n, oh, ow, kh*kw*c)
    return patches.reshape(n * oh * ow, kh * kw * c), oh, ow


def conv2d_pre(x_nhwc, w_p, b_p, *, kh, kw, K, N, stride=1, pad=0,
               relu=False, out_dtype=jnp.bfloat16):
    a, oh, ow = _im2col(x_nhwc, kh, kw, stride, pad)
    out = matmul_bias_act(a, w_p, b_p, M=a.shape[0], K=K, N=N,
                          relu=relu, out_dtype=out_dtype)
    return out.reshape(x_nhwc.shape[0], oh, ow, N)


# ----------------------------------------------------------------------------
# Bilinear upsample (align_corners=False, half-pixel) for the 1-channel map,
# done as two small Pallas matmuls with precomputed interpolation matrices.
# ----------------------------------------------------------------------------
def _bilinear_matrix(out_size, in_size):
    scale = in_size / out_size
    U = np.zeros((out_size, in_size), np.float32)
    for o in range(out_size):
        src = max((o + 0.5) * scale - 0.5, 0.0)
        i0 = min(int(np.floor(src)), in_size - 1)
        i1 = min(i0 + 1, in_size - 1)
        lam = src - i0
        U[o, i0] += 1.0 - lam
        U[o, i1] += lam
    return U


def bilinear_upsample_1ch(z, out_h, out_w):
    """z: (n, hf, wf, 1) f32 -> (n, 1, out_h, out_w) f32."""
    n, hf, wf, _ = z.shape
    uh = jnp.asarray(_bilinear_matrix(out_h, hf))                    # (H, hf)
    uwT = jnp.asarray(_bilinear_matrix(out_w, wf)).T                 # (wf, W)
    # rows: (H, hf) @ (hf, n*wf)
    x1 = jnp.transpose(z[..., 0], (1, 0, 2)).reshape(hf, n * wf)
    y1 = matmul_bias_act(uh, _prep_matrix(x1, hf, n * wf), _zero_bias(n * wf),
                         M=out_h, K=hf, N=n * wf, out_dtype=jnp.float32)
    # cols: (n*H, wf) @ (wf, W)
    y1 = jnp.transpose(y1.reshape(out_h, n, wf), (1, 0, 2)).reshape(n * out_h, wf)
    y2 = matmul_bias_act(y1, _prep_matrix(uwT, wf, out_w), _zero_bias(out_w),
                         M=n * out_h, K=wf, N=out_w, out_dtype=jnp.float32)
    return y2.reshape(n, out_h, out_w)[:, None, :, :]


# ----------------------------------------------------------------------------
# Parameters: deterministic init (shapes from the module) + one-time prep
# ----------------------------------------------------------------------------
def init_params(key):
    def conv_w(k, cout, cin, kh, kw):
        fan_in = cin * kh * kw
        return jax.random.normal(k, (cout, cin, kh, kw), jnp.float32) * np.sqrt(2.0 / fan_in)

    def bn_p(k, c):
        k1, k2, k3, k4 = jax.random.split(k, 4)
        gamma = 1.0 + 0.1 * jax.random.normal(k1, (c,), jnp.float32)
        beta = 0.1 * jax.random.normal(k2, (c,), jnp.float32)
        mean = 0.1 * jax.random.normal(k3, (c,), jnp.float32)
        var = 1.0 + 0.1 * jnp.abs(jax.random.normal(k4, (c,), jnp.float32))
        return gamma, beta, mean, var

    ks = jax.random.split(key, 14)
    p = {}
    p['conv1_w'] = conv_w(ks[0], 64, 4, 7, 7)        # Conv2d(4,64,7,7,s2,p3,bias=False)
    p['bn1'] = bn_p(ks[1], 64)
    p['layer1_w'] = conv_w(ks[2], 256, 64, 1, 1)     # debug: Conv2d(64,256,1)
    p['layer1_b'] = 0.01 * jax.random.normal(ks[3], (256,), jnp.float32)
    p['layer2_w'] = conv_w(ks[4], 512, 256, 1, 1)
    p['layer2_b'] = 0.01 * jax.random.normal(ks[5], (512,), jnp.float32)
    p['layer3_w'] = conv_w(ks[6], 1024, 512, 1, 1)
    p['layer3_b'] = 0.01 * jax.random.normal(ks[7], (1024,), jnp.float32)
    p['layer4_w'] = conv_w(ks[8], 2048, 1024, 1, 1)
    p['layer4_b'] = 0.01 * jax.random.normal(ks[9], (2048,), jnp.float32)
    p['head0_w'] = conv_w(ks[10], 512, 2048, 3, 3)   # FCNHead 3x3 conv (bias=False)
    p['head_bn'] = bn_p(ks[11], 512)
    p['head4_w'] = conv_w(ks[12], 1, 512, 1, 1)      # FCNHead 1x1 -> num_classes=1
    p['head4_b'] = 0.01 * jax.random.normal(ks[13], (1,), jnp.float32)
    return p


def _oihw_to_mat(w_oihw):
    cout, cin, kh, kw = w_oihw.shape
    return jnp.transpose(w_oihw, (2, 3, 1, 0)).reshape(kh * kw * cin, cout)


def fold_bn(w_oihw, bn, eps=1e-5):
    gamma, beta, mean, var = bn
    scale = gamma / jnp.sqrt(var + eps)
    return w_oihw * scale[:, None, None, None], beta - mean * scale


def prepare_params(p):
    """One-time weight prep (hoisted out of forward): BN folding, layer1-4
    collapse, OIHW->matrix transpose, tile-padding and bf16 cast."""
    prep = {}
    # conv1 + bn1 folded
    w1, b1 = fold_bn(p['conv1_w'], p['bn1'])
    prep['conv1_w'] = _prep_matrix(_oihw_to_mat(w1), 7 * 7 * 4, 64)
    prep['conv1_b'] = _prep_bias(b1, 64)
    # layer1..4: bias-only 1x1 convs with no nonlinearity between -> collapse
    # (exact only for this debug-mode backbone; NOT valid for full bottlenecks)
    wmats = [_oihw_to_mat(p[f'layer{i}_w']) for i in (1, 2, 3, 4)]
    bvecs = [p[f'layer{i}_b'] for i in (1, 2, 3, 4)]
    Wc, bc = wmats[0], bvecs[0]
    for Wm, bv in zip(wmats[1:], bvecs[1:]):
        bc = bc @ Wm + bv
        Wc = Wc @ Wm
    prep['layers_w'] = Wc.astype(jnp.bfloat16)                       # (64, 2048)
    prep['layers_b'] = bc.astype(jnp.float32).reshape(1, 2048)
    # FCN head: 3x3 conv (+BN folded) fused with the 1x1 512->1 conv
    wh, bh = fold_bn(p['head0_w'], p['head_bn'])
    prep['head_w0'] = _oihw_to_mat(wh).astype(jnp.bfloat16)          # (18432, 512)
    prep['head_b0'] = bh.astype(jnp.float32).reshape(1, 512)
    w2m = _oihw_to_mat(p['head4_w'])                                 # (512, 1)
    prep['head_w2'] = jnp.zeros((512, 128), jnp.bfloat16).at[:, :1].set(
        w2m.astype(jnp.bfloat16))
    prep['head_b2'] = jnp.zeros((1, 128), jnp.float32).at[0, 0].set(p['head4_b'][0])
    return prep


# ----------------------------------------------------------------------------
# Forward: resnet.forward(x)['out']  (config.debug backbone, eval mode)
# ----------------------------------------------------------------------------
# TODO(synk): the non-debug path (full ResNet-50 bottleneck stages) depends on
# the external `config.debug` flag; this implements the debug-mode architecture.
def forward(prep, x_nchw):
    n, c, h, w = x_nchw.shape
    x = jnp.transpose(x_nchw, (0, 2, 3, 1)).astype(jnp.bfloat16)         # NHWC bf16
    # backbone.conv1 + bn1 + relu (BN folded, bias+ReLU fused in kernel epilogue)
    x = conv2d_pre(x, prep['conv1_w'], prep['conv1_b'],
                   kh=7, kw=7, K=7 * 7 * 4, N=64, stride=2, pad=3, relu=True)
    # backbone.maxpool (3x3/s2/p1) + layer1..4 collapsed to 64->2048, one kernel
    x = fused_maxpool_layers(x, prep['layers_w'], prep['layers_b'])      # (n,h/4,w/4,2048)
    # FCN head: 3x3 conv + BN + ReLU + Dropout(eval: identity) + 1x1 conv, fused
    nb, hf, wf, _ = x.shape
    a, oh, ow = _im2col(x, 3, 3, 1, 1)                                   # (M, 9*2048)
    # TODO(synk): im2col still replicates the 2048-ch activation 9x in HBM; a
    # manual-DMA (pl.ANY) shifted-window reduction would remove that at scale.
    z = fused_fcn_head(a, prep['head_w0'], prep['head_b0'],
                       prep['head_w2'], prep['head_b2'], M=a.shape[0])   # (M,1) f32
    z = z.reshape(nb, oh, ow, 1)
    # bilinear upsample back to input spatial size (align_corners=False)
    return bilinear_upsample_1ch(z, h, w)                                # (n,1,h,w)


if __name__ == "__main__":
    key = jax.random.PRNGKey(0)
    kp, kx = jax.random.split(key)
    params = init_params(kp)
    prep = prepare_params(params)
    x = jax.random.normal(kx, (2, 4, 16, 16), jnp.float32)   # NCHW like PyTorch
    fwd = jax.jit(forward)
    out = jax.block_until_ready(fwd(prep, x))
    assert out.shape == (2, 1, 16, 16), out.shape
    assert bool(jnp.all(jnp.isfinite(out)))
    print("KERNEL_OK")
</pallas_src>

<mosaic_0001>
module attributes {stable_mosaic.version = 11 : i64} {
  func.func @_mm_kernel_single(%arg0: i32, %arg1: i32, %arg2: memref<128x256xbf16, #tpu.memory_space<vmem>>, %arg3: memref<256x128xbf16, #tpu.memory_space<vmem>>, %arg4: memref<1x128xf32, #tpu.memory_space<vmem>>, %arg5: memref<128x128xbf16, #tpu.memory_space<vmem>>) attributes {dimension_semantics = [#tpu.dimension_semantics<parallel>, #tpu.dimension_semantics<parallel>], iteration_bounds = array<i64: 1, 1>, scalar_prefetch = 0 : i64, scratch_operands = 0 : i64, tpu.core_type = #tpu.core_type<tc>, window_params = [{transform_indices = @transform_0, window_bounds = array<i64: 128, 256>}, {transform_indices = @transform_1, window_bounds = array<i64: 256, 128>}, {transform_indices = @transform_2, window_bounds = array<i64: 1, 128>}, {transform_indices = @transform_3, window_bounds = array<i64: 128, 128>}]} {
    %c0 = arith.constant 0 : index
    %c0_0 = arith.constant 0 : index
    %0 = vector.load %arg2[%c0, %c0_0] : memref<128x256xbf16, #tpu.memory_space<vmem>>, vector<128x256xbf16>
    %c0_1 = arith.constant 0 : index
    %c0_2 = arith.constant 0 : index
    %1 = vector.load %arg3[%c0_1, %c0_2] : memref<256x128xbf16, #tpu.memory_space<vmem>>, vector<256x128xbf16>
    %cst = arith.constant dense<0.000000e+00> : vector<128x128xf32>
    %2 = tpu.matmul %0, %1, %cst {dimension_numbers = #tpu.dot_dimension_numbers<[1], [0], [0], [1], [0, 0, 1, 1], [], []>} : vector<128x256xbf16>, vector<256x128xbf16>, vector<128x128xf32> -> vector<128x128xf32>
    %c0_3 = arith.constant 0 : index
    %c0_4 = arith.constant 0 : index
    %3 = vector.load %arg4[%c0_3, %c0_4] : memref<1x128xf32, #tpu.memory_space<vmem>>, vector<1x128xf32>
    %4 = vector.broadcast %3 : vector<1x128xf32> to vector<128x128xf32>
    %5 = arith.addf %2, %4 : vector<128x128xf32>
    %cst_5 = arith.constant 0.000000e+00 : f32
    %6 = vector.broadcast %cst_5 : f32 to vector<128x128xf32>
    %7 = arith.maximumf %5, %6 : vector<128x128xf32>
    %8 = arith.truncf %7 : vector<128x128xf32> to vector<128x128xbf16>
    %c0_6 = arith.constant 0 : index
    %c0_7 = arith.constant 0 : index
    %9 = vector.load %arg5[%c0_6, %c0_7] : memref<128x128xbf16, #tpu.memory_space<vmem>>, vector<128x128xbf16>
    tpu.vector_store %arg5[%c0_6, %c0_7], %8 {strides = array<i32>} : memref<128x128xbf16, #tpu.memory_space<vmem>>, vector<128x128xbf16>,
    return
  }
  func.func @transform_0(%arg0: i32, %arg1: i32) -> (i32, i32) {
    %c0_i32 = arith.constant 0 : i32
    %c0_i32_0 = arith.constant 0 : i32
    return %arg0, %c0_i32 : i32, i32
  }
  func.func @transform_1(%arg0: i32, %arg1: i32) -> (i32, i32) {
    %c0_i32 = arith.constant 0 : i32
    %c0_i32_0 = arith.constant 0 : i32
    return %c0_i32, %arg1 : i32, i32
  }
  func.func @transform_2(%arg0: i32, %arg1: i32) -> (i32, i32) {
    %c0_i32 = arith.constant 0 : i32
    %c0_i32_0 = arith.constant 0 : i32
    return %c0_i32, %arg1 : i32, i32
  }
  func.func @transform_3(%arg0: i32, %arg1: i32) -> (i32, i32) {
    %c0_i32 = arith.constant 0 : i32
    return %arg0, %arg1 : i32, i32
  }
}

module attributes {stable_mosaic.version = 11 : i64} {
  func.func @_pool_layers_kernel(%arg0: i32, %arg1: i32, %arg2: memref<9x32x64xbf16, #tpu.memory_space<vmem>>, %arg3: memref<64x512xbf16, #tpu.memory_space<vmem>>, %arg4: memref<1x512xf32, #tpu.memory_space<vmem>>, %arg5: memref<32x512xbf16, #tpu.memory_space<vmem>>) attributes {dimension_semantics = [#tpu.dimension_semantics<parallel>, #tpu.dimension_semantics<parallel>], iteration_bounds = array<i64: 1, 4>, scalar_prefetch = 0 : i64, scratch_operands = 0 : i64, tpu.core_type = #tpu.core_type<tc>, window_params = [{transform_indices = @transform_0, window_bounds = array<i64: 9, 32, 64>}, {transform_indices = @transform_1, window_bounds = array<i64: 64, 512>}, {transform_indices = @transform_2, window_bounds = array<i64: 1, 512>}, {transform_indices = @transform_3, window_bounds = array<i64: 32, 512>}]} {
    %c0 = arith.constant 0 : index
    %c0_0 = arith.constant 0 : index
    %c0_1 = arith.constant 0 : index
    %0 = vector.load %arg2[%c0, %c0_0, %c0_1] : memref<9x32x64xbf16, #tpu.memory_space<vmem>>, vector<9x32x64xbf16>
    %cst = arith.constant dense<0xFF80> : vector<32x64xbf16>
    %1 = vector.multi_reduction <maximumf>, %0, %cst [0] : vector<9x32x64xbf16> to vector<32x64xbf16>
    %c0_2 = arith.constant 0 : index
    %c0_3 = arith.constant 0 : index
    %2 = vector.load %arg3[%c0_2, %c0_3] : memref<64x512xbf16, #tpu.memory_space<vmem>>, vector<64x512xbf16>
    %cst_4 = arith.constant dense<0.000000e+00> : vector<32x512xf32>
    %3 = tpu.matmul %1, %2, %cst_4 {dimension_numbers = #tpu.dot_dimension_numbers<[1], [0], [0], [1], [0, 0, 1, 1], [], []>} : vector<32x64xbf16>, vector<64x512xbf16>, vector<32x512xf32> -> vector<32x512xf32>
    %c0_5 = arith.constant 0 : index
    %c0_6 = arith.constant 0 : index
    %4 = vector.load %arg4[%c0_5, %c0_6] : memref<1x512xf32, #tpu.memory_space<vmem>>, vector<1x512xf32>
    %5 = vector.broadcast %4 : vector<1x512xf32> to vector<32x512xf32>
    %6 = arith.addf %3, %5 : vector<32x512xf32>
    %7 = arith.truncf %6 : vector<32x512xf32> to vector<32x512xbf16>
    %c0_7 = arith.constant 0 : index
    %c0_8 = arith.constant 0 : index
    %8 = vector.load %arg5[%c0_7, %c0_8] : memref<32x512xbf16, #tpu.memory_space<vmem>>, vector<32x512xbf16>
    tpu.vector_store %arg5[%c0_7, %c0_8], %7 {strides = array<i32>} : memref<32x512xbf16, #tpu.memory_space<vmem>>, vector<32x512xbf16>,
    return
  }
  func.func @transform_0(%arg0: i32, %arg1: i32) -> (i32, i32, i32) {
    %c0_i32 = arith.constant 0 : i32
    %c0_i32_0 = arith.constant 0 : i32
    %c0_i32_1 = arith.constant 0 : i32
    return %c0_i32, %arg0, %c0_i32_0 : i32, i32, i32
  }
  func.func @transform_1(%arg0: i32, %arg1: i32) -> (i32, i32) {
    %c0_i32 = arith.constant 0 : i32
    %c0_i32_0 = arith.constant 0 : i32
    return %c0_i32, %arg1 : i32, i32
  }
  func.func @transform_2(%arg0: i32, %arg1: i32) -> (i32, i32) {
    %c0_i32 = arith.constant 0 : i32
    %c0_i32_0 = arith.constant 0 : i32
    return %c0_i32, %arg1 : i32, i32
  }
  func.func @transform_3(%arg0: i32, %arg1: i32) -> (i32, i32) {
    %c0_i32 = arith.constant 0 : i32
    return %arg0, %arg1 : i32, i32
  }
}

module attributes {stable_mosaic.version = 11 : i64} {
  func.func @_head_kernel(%arg0: i32, %arg1: i32, %arg2: memref<32x1024xbf16, #tpu.memory_space<vmem>>, %arg3: memref<1024x512xbf16, #tpu.memory_space<vmem>>, %arg4: memref<1x512xf32, #tpu.memory_space<vmem>>, %arg5: memref<512x128xbf16, #tpu.memory_space<vmem>>, %arg6: memref<1x128xf32, #tpu.memory_space<vmem>>, %arg7: memref<32x128xf32, #tpu.memory_space<vmem>>, %arg8: memref<32x512xf32, #tpu.memory_space<vmem>>) attributes {dimension_semantics = [#tpu.dimension_semantics<parallel>, #tpu.dimension_semantics<arbitrary>], iteration_bounds = array<i64: 1, 18>, scalar_prefetch = 0 : i64, scratch_operands = 1 : i64, tpu.core_type = #tpu.core_type<tc>, window_params = [{transform_indices = @transform_0, window_bounds = array<i64: 32, 1024>}, {transform_indices = @transform_1, window_bounds = array<i64: 1024, 512>}, {pipeline_mode = #tpu.pipeline_mode<synchronous>, transform_indices = @transform_2, window_bounds = array<i64: 1, 512>}, {pipeline_mode = #tpu.pipeline_mode<synchronous>, transform_indices = @transform_3, window_bounds = array<i64: 512, 128>}, {pipeline_mode = #tpu.pipeline_mode<synchronous>, transform_indices = @transform_4, window_bounds = array<i64: 1, 128>}, {transform_indices = @transform_5, window_bounds = array<i64: 32, 128>}]} {
    %c0_i32 = arith.constant 0 : i32
    %0 = arith.cmpi eq, %arg1, %c0_i32 : i32
    %1 = arith.extui %0 : i1 to i32
    %c0_i32_0 = arith.constant 0 : i32
    %2 = arith.cmpi ne, %1, %c0_i32_0 : i32
    scf.if %2 {
      %cst_9 = arith.constant 0.000000e+00 : f32
      %12 = vector.broadcast %cst_9 : f32 to vector<32x512xf32>
      %c0_10 = arith.constant 0 : index
      %c0_11 = arith.constant 0 : index
      %13 = vector.load %arg8[%c0_10, %c0_11] : memref<32x512xf32, #tpu.memory_space<vmem>>, vector<32x512xf32>
      tpu.vector_store %arg8[%c0_10, %c0_11], %12 {strides = array<i32>} : memref<32x512xf32, #tpu.memory_space<vmem>>, vector<32x512xf32>,
    } else {
    }
    %c0 = arith.constant 0 : index
    %c0_1 = arith.constant 0 : index
    %3 = vector.load %arg8[%c0, %c0_1] : memref<32x512xf32, #tpu.memory_space<vmem>>, vector<32x512xf32>
    %c0_2 = arith.constant 0 : index
    %c0_3 = arith.constant 0 : index
    %4 = vector.load %arg2[%c0_2, %c0_3] : memref<32x1024xbf16, #tpu.memory_space<vmem>>, vector<32x1024xbf16>
    %c0_4 = arith.constant 0 : index
    %c0_5 = arith.constant 0 : index
    %5 = vector.load %arg3[%c0_4, %c0_5] : memref<1024x512xbf16, #tpu.memory_space<vmem>>, vector<1024x512xbf16>
    %cst = arith.constant dense<0.000000e+00> : vector<32x512xf32>
    %6 = tpu.matmul %4, %5, %cst {dimension_numbers = #tpu.dot_dimension_numbers<[1], [0], [0], [1], [0, 0, 1, 1], [], []>} : vector<32x1024xbf16>, vector<1024x512xbf16>, vector<32x512xf32> -> vector<32x512xf32>
    %7 = arith.addf %3, %6 : vector<32x512xf32>
    %c0_6 = arith.constant 0 : index
    %c0_7 = arith.constant 0 : index
    %8 = vector.load %arg8[%c0_6, %c0_7] : memref<32x512xf32, #tpu.memory_space<vmem>>, vector<32x512xf32>
    tpu.vector_store %arg8[%c0_6, %c0_7], %7 {strides = array<i32>} : memref<32x512xf32, #tpu.memory_space<vmem>>, vector<32x512xf32>,
    %c17_i32 = arith.constant 17 : i32
    %9 = arith.cmpi eq, %arg1, %c17_i32 : i32
    %10 = arith.extui %9 : i1 to i32
    %c0_i32_8 = arith.constant 0 : i32
    %11 = arith.cmpi ne, %10, %c0_i32_8 : i32
    scf.if %11 {
      %c0_9 = arith.constant 0 : index
      %c0_10 = arith.constant 0 : index
      %12 = vector.load %arg8[%c0_9, %c0_10] : memref<32x512xf32, #tpu.memory_space<vmem>>, vector<32x512xf32>
      %c0_11 = arith.constant 0 : index
      %c0_12 = arith.constant 0 : index
      %13 = vector.load %arg4[%c0_11, %c0_12] : memref<1x512xf32, #tpu.memory_space<vmem>>, vector<1x512xf32>
      %14 = vector.broadcast %13 : vector<1x512xf32> to vector<32x512xf32>
      %15 = arith.addf %12, %14 : vector<32x512xf32>
      %cst_13 = arith.constant 0.000000e+00 : f32
      %16 = vector.broadcast %cst_13 : f32 to vector<32x512xf32>
      %17 = arith.maximumf %15, %16 : vector<32x512xf32>
      %18 = arith.truncf %17 : vector<32x512xf32> to vector<32x512xbf16>
      %c0_14 = arith.constant 0 : index
      %c0_15 = arith.constant 0 : index
      %19 = vector.load %arg5[%c0_14, %c0_15] : memref<512x128xbf16, #tpu.memory_space<vmem>>, vector<512x128xbf16>
      %cst_16 = arith.constant dense<0.000000e+00> : vector<32x128xf32>
      %20 = tpu.matmul %18, %19, %cst_16 {dimension_numbers = #tpu.dot_dimension_numbers<[1], [0], [0], [1], [0, 0, 1, 1], [], []>} : vector<32x512xbf16>, vector<512x128xbf16>, vector<32x128xf32> -> vector<32x128xf32>
      %c0_17 = arith.constant 0 : index
      %c0_18 = arith.constant 0 : index
      %21 = vector.load %arg6[%c0_17, %c0_18] : memref<1x128xf32, #tpu.memory_space<vmem>>, vector<1x128xf32>
      %22 = vector.broadcast %21 : vector<1x128xf32> to vector<32x128xf32>
      %23 = arith.addf %20, %22 : vector<32x128xf32>
      %c0_19 = arith.constant 0 : index
      %c0_20 = arith.constant 0 : index
      %24 = vector.load %arg7[%c0_19, %c0_20] : memref<32x128xf32, #tpu.memory_space<vmem>>, vector<32x128xf32>
      tpu.vector_store %arg7[%c0_19, %c0_20], %23 {strides = array<i32>} : memref<32x128xf32, #tpu.memory_space<vmem>>, vector<32x128xf32>,
    } else {
    }
    return
  }
  func.func @transform_0(%arg0: i32, %arg1: i32) -> (i32, i32) {
    %c0_i32 = arith.constant 0 : i32
    return %arg0, %arg1 : i32, i32
  }
  func.func @transform_1(%arg0: i32, %arg1: i32) -> (i32, i32) {
    %c0_i32 = arith.constant 0 : i32
    %c0_i32_0 = arith.constant 0 : i32
    return %arg1, %c0_i32 : i32, i32
  }
  func.func @transform_2(%arg0: i32, %arg1: i32) -> (i32, i32) {
    %c0_i32 = arith.constant 0 : i32
    %c0_i32_0 = arith.constant 0 : i32
    %c0_i32_1 = arith.constant 0 : i32
    return %c0_i32, %c0_i32_0 : i32, i32
  }
  func.func @transform_3(%arg0: i32, %arg1: i32) -> (i32, i32) {
    %c0_i32 = arith.constant 0 : i32
    %c0_i32_0 = arith.constant 0 : i32
    %c0_i32_1 = arith.constant 0 : i32
    return %c0_i32, %c0_i32_0 : i32, i32
  }
  func.func @transform_4(%arg0: i32, %arg1: i32) -> (i32, i32) {
    %c0_i32 = arith.constant 0 : i32
    %c0_i32_0 = arith.constant 0 : i32
    %c0_i32_1 = arith.constant 0 : i32
    return %c0_i32, %c0_i32_0 : i32, i32
  }
  func.func @transform_5(%arg0: i32, %arg1: i32) -> (i32, i32) {
    %c0_i32 = arith.constant 0 : i32
    %c0_i32_0 = arith.constant 0 : i32
    return %arg0, %c0_i32 : i32, i32
  }
}

module attributes {stable_mosaic.version = 11 : i64} {
  func.func @_mm_kernel_single(%arg0: i32, %arg1: i32, %arg2: memref<16x128xbf16, #tpu.memory_space<vmem>>, %arg3: memref<128x128xbf16, #tpu.memory_space<vmem>>, %arg4: memref<1x128xf32, #tpu.memory_space<vmem>>, %arg5: memref<16x128xf32, #tpu.memory_space<vmem>>) attributes {dimension_semantics = [#tpu.dimension_semantics<parallel>, #tpu.dimension_semantics<parallel>], iteration_bounds = array<i64: 1, 1>, scalar_prefetch = 0 : i64, scratch_operands = 0 : i64, tpu.core_type = #tpu.core_type<tc>, window_params = [{transform_indices = @transform_0, window_bounds = array<i64: 16, 128>}, {transform_indices = @transform_1, window_bounds = array<i64: 128, 128>}, {transform_indices = @transform_2, window_bounds = array<i64: 1, 128>}, {transform_indices = @transform_3, window_bounds = array<i64: 16, 128>}]} {
    %c0 = arith.constant 0 : index
    %c0_0 = arith.constant 0 : index
    %0 = vector.load %arg2[%c0, %c0_0] : memref<16x128xbf16, #tpu.memory_space<vmem>>, vector<16x128xbf16>
    %c0_1 = arith.constant 0 : index
    %c0_2 = arith.constant 0 : index
    %1 = vector.load %arg3[%c0_1, %c0_2] : memref<128x128xbf16, #tpu.memory_space<vmem>>, vector<128x128xbf16>
    %cst = arith.constant dense<0.000000e+00> : vector<16x128xf32>
    %2 = tpu.matmul %0, %1, %cst {dimension_numbers = #tpu.dot_dimension_numbers<[1], [0], [0], [1], [0, 0, 1, 1], [], []>} : vector<16x128xbf16>, vector<128x128xbf16>, vector<16x128xf32> -> vector<16x128xf32>
    %c0_3 = arith.constant 0 : index
    %c0_4 = arith.constant 0 : index
    %3 = vector.load %arg4[%c0_3, %c0_4] : memref<1x128xf32, #tpu.memory_space<vmem>>, vector<1x128xf32>
    %4 = vector.broadcast %3 : vector<1x128xf32> to vector<16x128xf32>
    %5 = arith.addf %2, %4 : vector<16x128xf32>
    %c0_5 = arith.constant 0 : index
    %c0_6 = arith.constant 0 : index
    %6 = vector.load %arg5[%c0_5, %c0_6] : memref<16x128xf32, #tpu.memory_space<vmem>>, vector<16x128xf32>
    tpu.vector_store %arg5[%c0_5, %c0_6], %5 {strides = array<i32>} : memref<16x128xf32, #tpu.memory_space<vmem>>, vector<16x128xf32>,
    return
  }
  func.func @transform_0(%arg0: i32, %arg1: i32) -> (i32, i32) {
    %c0_i32 = arith.constant 0 : i32
    %c0_i32_0 = arith.constant 0 : i32
    return %arg0, %c0_i32 : i32, i32
  }
  func.func @transform_1(%arg0: i32, %arg1: i32) -> (i32, i32) {
    %c0_i32 = arith.constant 0 : i32
    %c0_i32_0 = arith.constant 0 : i32
    return %c0_i32, %arg1 : i32, i32
  }
  func.func @transform_2(%arg0: i32, %arg1: i32) -> (i32, i32) {
    %c0_i32 = arith.constant 0 : i32
    %c0_i32_0 = arith.constant 0 : i32
    return %c0_i32, %arg1 : i32, i32
  }
  func.func @transform_3(%arg0: i32, %arg1: i32) -> (i32, i32) {
    %c0_i32 = arith.constant 0 : i32
    return %arg0, %arg1 : i32, i32
  }
}

module attributes {stable_mosaic.version = 11 : i64} {
  func.func @_mm_kernel_single(%arg0: i32, %arg1: i32, %arg2: memref<32x128xbf16, #tpu.memory_space<vmem>>, %arg3: memref<128x128xbf16, #tpu.memory_space<vmem>>, %arg4: memref<1x128xf32, #tpu.memory_space<vmem>>, %arg5: memref<32x128xf32, #tpu.memory_space<vmem>>) attributes {dimension_semantics = [#tpu.dimension_semantics<parallel>, #tpu.dimension_semantics<parallel>], iteration_bounds = array<i64: 1, 1>, scalar_prefetch = 0 : i64, scratch_operands = 0 : i64, tpu.core_type = #tpu.core_type<tc>, window_params = [{transform_indices = @transform_0, window_bounds = array<i64: 32, 128>}, {transform_indices = @transform_1, window_bounds = array<i64: 128, 128>}, {transform_indices = @transform_2, window_bounds = array<i64: 1, 128>}, {transform_indices = @transform_3, window_bounds = array<i64: 32, 128>}]} {
    %c0 = arith.constant 0 : index
    %c0_0 = arith.constant 0 : index
    %0 = vector.load %arg2[%c0, %c0_0] : memref<32x128xbf16, #tpu.memory_space<vmem>>, vector<32x128xbf16>
    %c0_1 = arith.constant 0 : index
    %c0_2 = arith.constant 0 : index
    %1 = vector.load %arg3[%c0_1, %c0_2] : memref<128x128xbf16, #tpu.memory_space<vmem>>, vector<128x128xbf16>
    %cst = arith.constant dense<0.000000e+00> : vector<32x128xf32>
    %2 = tpu.matmul %0, %1, %cst {dimension_numbers = #tpu.dot_dimension_numbers<[1], [0], [0], [1], [0, 0, 1, 1], [], []>} : vector<32x128xbf16>, vector<128x128xbf16>, vector<32x128xf32> -> vector<32x128xf32>
    %c0_3 = arith.constant 0 : index
    %c0_4 = arith.constant 0 : index
    %3 = vector.load %arg4[%c0_3, %c0_4] : memref<1x128xf32, #tpu.memory_space<vmem>>, vector<1x128xf32>
    %4 = vector.broadcast %3 : vector<1x128xf32> to vector<32x128xf32>
    %5 = arith.addf %2, %4 : vector<32x128xf32>
    %c0_5 = arith.constant 0 : index
    %c0_6 = arith.constant 0 : index
    %6 = vector.load %arg5[%c0_5, %c0_6] : memref<32x128xf32, #tpu.memory_space<vmem>>, vector<32x128xf32>
    tpu.vector_store %arg5[%c0_5, %c0_6], %5 {strides = array<i32>} : memref<32x128xf32, #tpu.memory_space<vmem>>, vector<32x128xf32>,
    return
  }
  func.func @transform_0(%arg0: i32, %arg1: i32) -> (i32, i32) {
    %c0_i32 = arith.constant 0 : i32
    %c0_i32_0 = arith.constant 0 : i32
    return %arg0, %c0_i32 : i32, i32
  }
  func.func @transform_1(%arg0: i32, %arg1: i32) -> (i32, i32) {
    %c0_i32 = arith.constant 0 : i32
    %c0_i32_0 = arith.constant 0 : i32
    return %c0_i32, %arg1 : i32, i32
  }
  func.func @transform_2(%arg0: i32, %arg1: i32) -> (i32, i32) {
    %c0_i32 = arith.constant 0 : i32
    %c0_i32_0 = arith.constant 0 : i32
    return %c0_i32, %arg1 : i32, i32
  }
  func.func @transform_3(%arg0: i32, %arg1: i32) -> (i32, i32) {
    %c0_i32 = arith.constant 0 : i32
    return %arg0, %arg1 : i32, i32
  }
}

</mosaic_0001>

<bundles_post_ra>
// kernel: forward.5
= control target key start
LH: loop header
LB: loop body
LE: loop exit
PB: predicated region body
PF: predicated region fallthrough
CT: control target
= control target key end

     0   :  { %s836_s1 = inlined_call_operand.vmem [shape: bf16[256,128], index: 1, kind: input, shape index: {}]   ;;  %s837_s0 = inlined_call_operand.vmem [shape: bf16[128,256], index: 0, kind: input, shape index: {}]   ;;  %s838_s2 = inlined_call_operand.vmem [shape: f32[1,128], index: 2, kind: input, shape index: {}]   ;;  %s839_s3 = inlined_call_operand.vmem [shape: bf16[128,128], index: 3, kind: output, shape index: {}]  }
   0x1   :  { %v635_v0 = vld [vmem:[%s836_s1 + $0x78] sm:$0xff]   ;;  %v637_v2 = vld [vmem:[%s836_s1 + $0x70] sm:$0xff]   ;;  %v639_v4 = vld [vmem:[%s836_s1 + $0x68] sm:$0xff]  }
   0x2   :  { %v636_v1 = vld [vmem:[%s836_s1 + $0x38] sm:$0xff]   ;;  %555 = vmatprep.subr.bf16.mxu0 %v635_v0  ;;  %619 = vmatprep.subr.bf16.mxu1 %v635_v0  ;;  %v638_v3 = vld [vmem:[%s836_s1 + $0x30] sm:$0xff]   ;;  %v640_v5 = vld [vmem:[%s836_s1 + $0x28] sm:$0xff]  }
   0x3   :  { %556 = vmatpush3.bf16.msra.mxu0 %v636_v1  ;;  %627 = vmatpush3.bf16.msra.mxu1 %v636_v1  ;;  %v641_v6 = vld [vmem:[%s836_s1 + $0x60] sm:$0xff]   ;;  %v643_v8 = vld [vmem:[%s836_s1 + $0x58] sm:$0xff]   ;;  %v645_v10 = vld [vmem:[%s836_s1 + $0x50] sm:$0xff]  }
   0x4   :  { %557 = vmatprep.subr.bf16.mxu0 %v637_v2  ;;  %620 = vmatprep.subr.bf16.mxu1 %v637_v2  ;;  %v642_v7 = vld [vmem:[%s836_s1 + $0x20] sm:$0xff]   ;;  %v644_v9 = vld [vmem:[%s836_s1 + $0x18] sm:$0xff]   ;;  %v646_v13 = vld [vmem:[%s836_s1 + $0x10] sm:$0xff]  }
   0x5   :  { %v653_v11 = vld [vmem:[%s837_s0 + $0x4] ss:$8 sps:$4 sm:$0xff]   ;;  %v651_v18 = vld [vmem:[%s837_s0] ss:$8 sps:$4 sm:$0xff]   ;;  %v657_v20 = vld [vmem:[%s837_s0 + $0x14] ss:$8 sps:$4 sm:$0xff]  }
   0x6   :  { %v656_v12 = vld [vmem:[%s837_s0 + $0x44] ss:$8 sps:$4 sm:$0xff]   ;;  %278 = vmatprep.mubr.bf16.mxu0 %v653_v11  ;;  %v654_v19 = vld [vmem:[%s837_s0 + $0x40] ss:$8 sps:$4 sm:$0xff]   ;;  %v659_v21 = vld [vmem:[%s837_s0 + $0x54] ss:$8 sps:$4 sm:$0xff]  }
   0x7   :  { %558 = vmatpush3.bf16.msra.mxu0 %v638_v3  ;;  %628 = vmatpush3.bf16.msra.mxu1 %v638_v3  ;;  %v647_v14 = vld [vmem:[%s836_s1 + $0x48] sm:$0xff]   ;;  %v649_v16 = vld [vmem:[%s836_s1 + $0x40] sm:$0xff]   ;;  %v661_v22 = vld [vmem:[%s837_s0 + $0x10] ss:$8 sps:$4 sm:$0xff]  }
   0x8   :  { %559 = vmatprep.subr.bf16.mxu0 %v639_v4  ;;  %621 = vmatprep.subr.bf16.mxu1 %v639_v4  ;;  %v648_v15 = vld [vmem:[%s836_s1 + $0x8] sm:$0xff]   ;;  %v650_v17 = vld [vmem:[%s836_s1] sm:$0xff]   ;;  %v662_v23 = vld [vmem:[%s837_s0 + $0x50] ss:$8 sps:$4 sm:$0xff]  }
   0x9   :  { %310 = vmatprep.mubr.bf16.mxu1 %v656_v12  ;;  %v663_v24 = vld [vmem:[%s837_s0 + $0x24] ss:$8 sps:$4 sm:$0xff]   ;;  %v667_v26 = vld [vmem:[%s837_s0 + $0x20] ss:$8 sps:$4 sm:$0xff]   ;;  %v669_v28 = vld [vmem:[%s837_s0 + $0x34] ss:$8 sps:$4 sm:$0xff]  }
   0xa   :  { %v665_v25 = vld [vmem:[%s837_s0 + $0x64] ss:$8 sps:$4 sm:$0xff]   ;;  %v668_v27 = vld [vmem:[%s837_s0 + $0x60] ss:$8 sps:$4 sm:$0xff]   ;;  %v671_v29 = vld [vmem:[%s837_s0 + $0x74] ss:$8 sps:$4 sm:$0xff]  }
   0xb   :  { %560 = vmatpush3.bf16.msra.mxu0 %v640_v5  ;;  %629 = vmatpush3.bf16.msra.mxu1 %v640_v5  ;;  %v673_v30 = vld [vmem:[%s837_s0 + $0x30] ss:$8 sps:$4 sm:$0xff]   ;;  %v794_v36 = vld [vmem:[%s838_s2] ss:$0 sm:$0xff] }
   0xc   :  { %561 = vmatprep.subr.bf16.mxu0 %v641_v6  ;;  %622 = vmatprep.subr.bf16.mxu1 %v641_v6  ;;  %v674_v31 = vld [vmem:[%s837_s0 + $0x70] ss:$8 sps:$4 sm:$0xff]  }
   0xf   :  { %562 = vmatpush3.bf16.msra.mxu0 %v642_v7  ;;  %630 = vmatpush3.bf16.msra.mxu1 %v642_v7 }
  0x10   :  { %563 = vmatprep.subr.bf16.mxu0 %v643_v8  ;;  %623 = vmatprep.subr.bf16.mxu1 %v643_v8 }
  0x13   :  { %564 = vmatpush3.bf16.msra.mxu0 %v644_v9  ;;  %631 = vmatpush3.bf16.msra.mxu1 %v644_v9 }
  0x14   :  { %565 = vmatprep.subr.bf16.mxu0 %v645_v10  ;;  %624 = vmatprep.subr.bf16.mxu1 %v645_v10 }
  0x17   :  { %566 = vmatpush3.bf16.msra.mxu0 %v646_v13  ;;  %632 = vmatpush3.bf16.msra.mxu1 %v646_v13 }
  0x18   :  { %567 = vmatprep.subr.bf16.mxu0 %v647_v14  ;;  %625 = vmatprep.subr.bf16.mxu1 %v647_v14 }
  0x1b   :  { %568 = vmatpush3.bf16.msra.mxu0 %v648_v15  ;;  %633 = vmatpush3.bf16.msra.mxu1 %v648_v15 }
  0x1c   :  { %569 = vmatprep.subr.bf16.mxu0 %v649_v16  ;;  %626 = vmatprep.subr.bf16.mxu1 %v649_v16 }
  0x1f   :  { %570 = vmatpush3.bf16.msra.mxu0 %v650_v17  ;;  %634 = vmatpush3.bf16.msra.mxu1 %v650_v17 }
  0x22   :  { %279 = vmatmul.mubr.bf16.vlgmr.msra.gmra.mxu0 %v651_v18  ;;  %311 = vmatmul.mubr.bf16.vlgmr.msra.gmra.mxu1 %v654_v19 }
  0x23   :  { %286 = vmatprep.mubr.bf16.mxu0 %v657_v20  ;;  %318 = vmatprep.mubr.bf16.mxu1 %v659_v21 }
  0x2a   :  { %287 = vmatmul.mubr.bf16.gmra.mxu0 %v661_v22  ;;  %319 = vmatmul.mubr.bf16.gmra.mxu1 %v662_v23 }
  0x2b   :  { %294 = vmatprep.mubr.bf16.mxu0 %v663_v24  ;;  %326 = vmatprep.mubr.bf16.mxu1 %v665_v25 }
  0x32   :  { %295 = vmatmul.mubr.bf16.gmra.mxu0 %v667_v26  ;;  %327 = vmatmul.mubr.bf16.gmra.mxu1 %v668_v27 }
  0x33   :  { %302 = vmatprep.mubr.bf16.mxu0 %v669_v28  ;;  %334 = vmatprep.mubr.bf16.mxu1 %v671_v29 }
  0x3a   :  { %303 = vmatmul.mubr.bf16.gmra.mxu0 %v673_v30  ;;  %335 = vmatmul.mubr.bf16.gmra.mxu1 %v674_v31 }
  0xe2   :  { %v571_v32 = vpop.f32.mrf.mxu0  ;;  %v595_v33 = vpop.f32.mrf.mxu1 }
  0xe4   :  { %v572_v34 = vpop.f32.mrf.mxu0  ;;  %v596_v35 = vpop.f32.mrf.mxu1 }
  0xe5   :  { %v573_v37 = vadd.f32 %v572_v34, %v571_v32  ;;  %v597_v38 = vadd.f32 %v596_v35, %v595_v33 }
  0xe6   :  { %v574_v39 = vpop.f32.mrf.mxu0  ;;  %v598_v40 = vpop.f32.mrf.mxu1 }
  0xe7   :  { %v281_v41 = vadd.f32 %v573_v37, %v794_v36  ;;  %v313_v42 = vadd.f32 %v597_v38, %v794_v36 }
  0xe8   :  { %v575_v43 = vpop.f32.mrf.mxu0  ;;  %v599_v44 = vpop.f32.mrf.mxu1 }
  0xe9   :  { %v576_v45 = vadd.f32 %v575_v43, %v574_v39  ;;  %v600_v46 = vadd.f32 %v599_v44, %v598_v40  ;;  %v343_v51 = vmax.f32 %v281_v41, 0.0  ;;  %v351_v52 = vmax.f32 %v313_v42, 0.0 }
  0xea   :  { %v577_v47 = vpop.f32.mrf.mxu0  ;;  %v601_v48 = vpop.f32.mrf.mxu1 }
  0xeb   :  { %v284_v49 = vadd.f32 %v576_v45, %v794_v36  ;;  %v316_v50 = vadd.f32 %v600_v46, %v794_v36 }
  0xec   :  { %v578_v53 = vpop.f32.mrf.mxu0  ;;  %v602_v54 = vpop.f32.mrf.mxu1 }
  0xed   :  { %v344_v55 = vmax.f32 %v284_v49, 0.0  ;;  %v352_v56 = vmax.f32 %v316_v50, 0.0  ;;  %v579_v57 = vadd.f32 %v578_v53, %v577_v47  ;;  %v603_v58 = vadd.f32 %v602_v54, %v601_v48 }
  0xee   :  { %v580_v59 = vpop.f32.mrf.mxu0  ;;  %v604_v60 = vpop.f32.mrf.mxu1 }
  0xef   :  { %v511_v61 = vpack.c.bf16 %v344_v55, %v343_v51  ;;  %v531_v62 = vpack.c.bf16 %v352_v56, %v351_v52  ;;  %v289_v63 = vadd.f32 %v579_v57, %v794_v36  ;;  %v321_v0 = vadd.f32 %v603_v58, %v794_v36 }
  0xf0   :  { %v581_v1 = vpop.f32.mrf.mxu0  ;;  %v605_v2 = vpop.f32.mrf.mxu1 }
  0xf1   :  { %512 = vst [vmem:[%s839_s3] sm:$0xff] %v511_v61   ;;  %551 = vst [vmem:[%s839_s3 + $0x20] sm:$0xff] %v531_v62   ;;  %v582_v3 = vadd.f32 %v581_v1, %v580_v59  ;;  %v606_v4 = vadd.f32 %v605_v2, %v604_v60  ;;  %v345_v9 = vmax.f32 %v289_v63, 0.0  ;;  %v353_v10 = vmax.f32 %v321_v0, 0.0 }
  0xf2   :  { %v583_v5 = vpop.f32.mrf.mxu0  ;;  %v607_v6 = vpop.f32.mrf.mxu1 }
  0xf3   :  { %v292_v7 = vadd.f32 %v582_v3, %v794_v36  ;;  %v324_v8 = vadd.f32 %v606_v4, %v794_v36 }
  0xf4   :  { %v584_v11 = vpop.f32.mrf.mxu0  ;;  %v608_v12 = vpop.f32.mrf.mxu1 }
  0xf5   :  { %v346_v13 = vmax.f32 %v292_v7, 0.0  ;;  %v354_v14 = vmax.f32 %v324_v8, 0.0  ;;  %v585_v15 = vadd.f32 %v584_v11, %v583_v5  ;;  %v609_v16 = vadd.f32 %v608_v12, %v607_v6 }
  0xf6   :  { %v586_v17 = vpop.f32.mrf.mxu0  ;;  %v610_v18 = vpop.f32.mrf.mxu1 }
  0xf7   :  { %v516_v19 = vpack.c.bf16 %v346_v13, %v345_v9  ;;  %v536_v20 = vpack.c.bf16 %v354_v14, %v353_v10  ;;  %v297_v21 = vadd.f32 %v585_v15, %v794_v36  ;;  %v329_v22 = vadd.f32 %v609_v16, %v794_v36 }
  0xf8   :  { %v587_v23 = vpop.f32.mrf.mxu0  ;;  %v611_v24 = vpop.f32.mrf.mxu1 }
  0xf9   :  { %548 = vst [vmem:[%s839_s3 + $0x8] sm:$0xff] %v516_v19   ;;  %552 = vst [vmem:[%s839_s3 + $0x28] sm:$0xff] %v536_v20   ;;  %v588_v25 = vadd.f32 %v587_v23, %v586_v17  ;;  %v612_v26 = vadd.f32 %v611_v24, %v610_v18  ;;  %v347_v31 = vmax.f32 %v297_v21, 0.0  ;;  %v355_v32 = vmax.f32 %v329_v22, 0.0 }
  0xfa   :  { %v589_v27 = vpop.f32.mrf.mxu0  ;;  %v613_v28 = vpop.f32.mrf.mxu1 }
  0xfb   :  { %v300_v29 = vadd.f32 %v588_v25, %v794_v36  ;;  %v332_v30 = vadd.f32 %v612_v26, %v794_v36 }
  0xfc   :  { %v590_v33 = vpop.f32.mrf.mxu0  ;;  %v614_v34 = vpop.f32.mrf.mxu1 }
  0xfd   :  { %v348_v35 = vmax.f32 %v300_v29, 0.0  ;;  %v356_v37 = vmax.f32 %v332_v30, 0.0  ;;  %v591_v38 = vadd.f32 %v590_v33, %v589_v27  ;;  %v615_v39 = vadd.f32 %v614_v34, %v613_v28 }
  0xfe   :  { %v592_v40 = vpop.f32.mrf.mxu0  ;;  %v616_v41 = vpop.f32.mrf.mxu1 }
  0xff   :  { %v521_v42 = vpack.c.bf16 %v348_v35, %v347_v31  ;;  %v541_v43 = vpack.c.bf16 %v356_v37, %v355_v32  ;;  %v305_v46 = vadd.f32 %v591_v38, %v794_v36  ;;  %v337_v47 = vadd.f32 %v615_v39, %v794_v36 }
 0x100   :  { %v593_v44 = vpop.f32.mrf.mxu0  ;;  %v617_v45 = vpop.f32.mrf.mxu1 }
 0x101   :  { %549 = vst [vmem:[%s839_s3 + $0x10] sm:$0xff] %v521_v42   ;;  %553 = vst [vmem:[%s839_s3 + $0x30] sm:$0xff] %v541_v43   ;;  %v594_v48 = vadd.f32 %v593_v44, %v592_v40  ;;  %v618_v49 = vadd.f32 %v617_v45, %v616_v41  ;;  %v349_v52 = vmax.f32 %v305_v46, 0.0  ;;  %v357_v53 = vmax.f32 %v337_v47, 0.0 }
 0x103   :  { %v308_v50 = vadd.f32 %v594_v48, %v794_v36  ;;  %v340_v51 = vadd.f32 %v618_v49, %v794_v36 }
 0x105   :  { %v350_v54 = vmax.f32 %v308_v50, 0.0  ;;  %v358_v55 = vmax.f32 %v340_v51, 0.0 }
 0x107   :  { %v526_v56 = vpack.c.bf16 %v350_v54, %v349_v52  ;;  %v546_v57 = vpack.c.bf16 %v358_v55, %v357_v53 }
 0x109   :  { %550 = vst [vmem:[%s839_s3 + $0x18] sm:$0xff] %v526_v56   ;;  %554 = vst [vmem:[%s839_s3 + $0x38] sm:$0xff] %v546_v57  }

// kernel: forward.6
= control target key start
LH: loop header
LB: loop body
LE: loop exit
PB: predicated region body
PF: predicated region fallthrough
CT: control target
= control target key end

     0   :  { %s1069_s12 = smov 0   ;;  %s1071_s13 = smov 0   ;;  %s1355_s0 = inlined_call_operand.vmem [shape: bf16[9,32,64], index: 0, kind: input, shape index: {}]   ;;  %s1356_s1 = inlined_call_operand.vmem [shape: bf16[64,2048], index: 1, kind: input, shape index: {}]   ;;  %s1357_s2 = inlined_call_operand.vmem [shape: f32[1,2048], index: 2, kind: input, shape index: {}]   ;;  %s1358_s3 = inlined_call_operand.vmem [shape: bf16[32,2048], index: 3, kind: output, shape index: {}]  }
   0x1   :  { %s1073_s14 = smov 0   ;;  %s1075_s15 = smov 0  }
   0x2   :  { %s1077_s16 = smov 0  }
   0x3 LB: > { %s22_s17 = sadd.s32 1, %s1042_s15  ;;  %s886_s18 = sadd.s32 4294967295, %s1046_s16   ;;  %s1046_s16 = sphi %s1077_s16, %s13_s16   ;;  %s1042_s15 = sphi %s1075_s15, %s1363_s15   ;;  %s1038_s14 = sphi %s1073_s14, %s1362_s14   ;;  %s1034_s13 = sphi %s1071_s13, %s1361_s13   ;;  %s1030_s12 = sphi %s1069_s12, %s1360_s12  }
   0x4   : > { %p23_p0 = scmp.ge.s32.totalorder %s22_s17, 4  ;;  %p65_p1 = scmp.ne.s32.totalorder %s1034_s13, %s1030_s12 }
   0x5   : > { %p66_p2 = scmp.eq.s32.totalorder %s1046_s16, 0  ;;  %p123_p4 = scmp.eq.s32.totalorder %s886_s18, 3 }
   0x6   : > { %s1365_s17 = smov (%p23_p0, %s22_s17), 0  ;;  %s58_s20 = sadd.s32 1, %s1034_s13 }
   0x7   : > { %p67_p3 = por %p66_p2, %p65_p1  ;;  %s55_s19 = ssub.s32 %s1042_s15, %s1365_s17 }
   0x8   : > { %p56_p5 = scmp.eq.s32.totalorder %s55_s19, 0  ;;  %p1104_p6 = por %p123_p4, %p65_p1 }
   0x9   : > { %p890_p7 = scmp.ge.s32.totalorder %s1046_s16, 4 }
   0xa   : > { %s1109_s22 = scalar_select %p56_p5, %s1034_s13, %s58_s20  }
   0xb   : > { %154 = sbr.rel (%p890_p7) target bundleno = 28 (0x1c), region = 20 }
  0x10   : > { %157 = sbr.rel (!%p67_p3) target bundleno = 28 (0x1c), region = 24  ;;  %s159_s23 = sand.u32 (%p67_p3), 1, %s1034_s13  }
  0x11   : > { %s933_s24 = sshll.u32 (%p67_p3), %s1042_s15, 4  ;;  %s891_s25 = sshll.u32 (%p67_p3), %s159_s23, 7 }
  0x12   : > { %s1117_s28 = scalar_lea.vmem (%p67_p3), %s1356_s1, %s933_s24  ;;  %s161_s29 = scalar_lea.vmem (%p67_p3), [#allocation2], %s891_s25 }
  0x13   : > { %v177_v0 = vld [vmem:[%s1117_s28] sm:$0xff] (%p67_p3)  ;;  %v179_v1 = vld [vmem:[%s1117_s28 + $0x8] sm:$0xff] (%p67_p3) }
  0x14   : > { %v181_v2 = vld [vmem:[%s1117_s28 + $0x40] sm:$0xff] (%p67_p3)  ;;  %178 = vst [vmem:[%s161_s29] sm:$0xff] (%p67_p3), %v177_v0  ;;  %180 = vst [vmem:[%s161_s29 + $0x8] sm:$0xff] (%p67_p3), %v179_v1  ;;  %v183_v3 = vld [vmem:[%s1117_s28 + $0x48] sm:$0xff] (%p67_p3) }
  0x15   : > { %182 = vst [vmem:[%s161_s29 + $0x10] sm:$0xff] %v181_v2  ;;  %v185_v4 = vld [vmem:[%s1117_s28 + $0x80] sm:$0xff]  ;;  %v187_v5 = vld [vmem:[%s1117_s28 + $0x88] sm:$0xff]  ;;  %184 = vst [vmem:[%s161_s29 + $0x18] sm:$0xff] %v183_v3 }
  0x16   : > { %186 = vst [vmem:[%s161_s29 + $0x20] sm:$0xff] %v185_v4  ;;  %188 = vst [vmem:[%s161_s29 + $0x28] sm:$0xff] %v187_v5  ;;  %v189_v6 = vld [vmem:[%s1117_s28 + $0xc0] sm:$0xff]  ;;  %v191_v7 = vld [vmem:[%s1117_s28 + $0xc8] sm:$0xff] }
  0x17   : > { %v193_v8 = vld [vmem:[%s1117_s28 + $0x100] sm:$0xff]  ;;  %190 = vst [vmem:[%s161_s29 + $0x30] sm:$0xff] %v189_v6  ;;  %192 = vst [vmem:[%s161_s29 + $0x38] sm:$0xff] %v191_v7  ;;  %v195_v9 = vld [vmem:[%s1117_s28 + $0x108] sm:$0xff] }
  0x18   : > { %194 = vst [vmem:[%s161_s29 + $0x40] sm:$0xff] %v193_v8  ;;  %v197_v10 = vld [vmem:[%s1117_s28 + $0x140] sm:$0xff]  ;;  %v199_v11 = vld [vmem:[%s1117_s28 + $0x148] sm:$0xff]  ;;  %196 = vst [vmem:[%s161_s29 + $0x48] sm:$0xff] %v195_v9 }
  0x19   : > { %198 = vst [vmem:[%s161_s29 + $0x50] sm:$0xff] %v197_v10  ;;  %200 = vst [vmem:[%s161_s29 + $0x58] sm:$0xff] %v199_v11  ;;  %v201_v12 = vld [vmem:[%s1117_s28 + $0x180] sm:$0xff]  ;;  %v203_v13 = vld [vmem:[%s1117_s28 + $0x188] sm:$0xff] }
  0x1a   : > { %v205_v14 = vld [vmem:[%s1117_s28 + $0x1c0] sm:$0xff]  ;;  %202 = vst [vmem:[%s161_s29 + $0x60] sm:$0xff] %v201_v12  ;;  %204 = vst [vmem:[%s161_s29 + $0x68] sm:$0xff] %v203_v13  ;;  %v207_v15 = vld [vmem:[%s1117_s28 + $0x1c8] sm:$0xff] }
  0x1b   : > { %206 = vst [vmem:[%s161_s29 + $0x70] sm:$0xff] %v205_v14  ;;  %208 = vst [vmem:[%s161_s29 + $0x78] sm:$0xff] %v207_v15 }
  0x1c PF: > { %p894_p8 = scmp.ge.s32.totalorder %s1046_s16, 1  ;;  %p221_p9 = scmp.lt.s32.totalorder %s1046_s16, 5 }
  0x1e   : > { %p222_p10 = pnand %p894_p8, %p221_p9 }
  0x1f   : > { %s228_s30 = sand.u32 (!%p222_p10), 1, %s1030_s12   ;;  %s897_s6 = sshll.u32 (!%p222_p10), %s1038_s14, 2 }
  0x20   : > { %225 = sbr.rel (%p222_p10) target bundleno = 291 (0x123), region = 51  ;;  %s895_s4 = sshll.u32 (!%p222_p10), %s228_s30, 7 }
  0x21   : > { %s1148_s9 = scalar_lea.vmem (!%p222_p10), [#allocation2], %s895_s4  ;;  %p267_p11 = scmp.lt.s32.totalorder (!%p222_p10), %s897_s6, 15 }
  0x25   : > { %v1048_v16 = vmov 0   ;;  %v275_v17 = vld [vmem:[%s1355_s0] sm:$0xf]  ;;  %vm311_vm0 = vcmask 519168   ;;  %v279_v18 = vld [vmem:[%s1355_s0 + $0x10] sm:$0xf] }
  0x26   : > { %620 = vmatprep.mubr.bf16.mxu0 %v1048_v16  ;;  %673 = vmatprep.mubr.bf16.mxu1 %v1048_v16  ;;  %v984_v19 = vld [vmem:[%s1148_s9 + $0x64] ss:$16 sps:$4 sm:$0xff]   ;;  %v986_v21 = vld [vmem:[%s1148_s9 + $0x6c] ss:$16 sps:$4 sm:$0xff]   ;;  %v314_v23 = vsel %vm311_vm0, %v275_v17, 4286644096 }
  0x27   : > { %v276_v20 = vld [vmem:[%s1355_s0 + $0x4] sm:$0xf]  ;;  %v280_v22 = vld [vmem:[%s1355_s0 + $0x14] sm:$0xf]  ;;  %596 = vmatprep.subr.bf16.mxu0 %v984_v19  ;;  %v988_v24 = vld [vmem:[%s1148_s9 + $0x60] ss:$16 sps:$4 sm:$0xff]   ;;  %649 = vmatprep.subr.bf16.mxu1 %v986_v21 }
  0x28   : > { %v989_v25 = vld [vmem:[%s1148_s9 + $0x68] ss:$16 sps:$4 sm:$0xff]   ;;  %v990_v26 = vld [vmem:[%s1148_s9 + $0x44] ss:$16 sps:$4 sm:$0xff]   ;;  %v283_v27 = vld [vmem:[%s1355_s0 + $0x20] sm:$0xf]  ;;  %597 = vmatpush1.bf16.msra.mxu0 %v988_v24 }
  0x29   : > { %v317_v28 = vsel %vm311_vm0, %v279_v18, 4286644096  ;;  %650 = vmatpush1.bf16.msra.mxu1 %v989_v25  ;;  %v992_v29 = vld [vmem:[%s1148_s9 + $0x4c] ss:$16 sps:$4 sm:$0xff]   ;;  %v994_v30 = vld [vmem:[%s1148_s9 + $0x40] ss:$16 sps:$4 sm:$0xff]   ;;  %598 = vmatprep.subr.bf16.mxu0 %v990_v26 }
  0x2a   : > { %v995_v31 = vld [vmem:[%s1148_s9 + $0x48] ss:$16 sps:$4 sm:$0xff]   ;;  %v284_v32 = vld [vmem:[%s1355_s0 + $0x24] sm:$0xf]  ;;  %v349_v33 = vsel %vm311_vm0, %v276_v20, 4286644096  ;;  %651 = vmatprep.subr.bf16.mxu1 %v992_v29  ;;  %v319_v39 = vmax.bf16 %v317_v28, %v314_v23 }
  0x2b   : > { %v996_v34 = vld [vmem:[%s1148_s9 + $0x24] ss:$16 sps:$4 sm:$0xff]   ;;  %v352_v35 = vsel %vm311_vm0, %v280_v22, 4286644096  ;;  %v998_v36 = vld [vmem:[%s1148_s9 + $0x2c] ss:$16 sps:$4 sm:$0xff]  }
  0x2c   : > { %v1000_v37 = vld [vmem:[%s1148_s9 + $0x20] ss:$16 sps:$4 sm:$0xff]   ;;  %v1001_v38 = vld [vmem:[%s1148_s9 + $0x28] ss:$16 sps:$4 sm:$0xff]   ;;  %599 = vmatpush1.bf16.msra.mxu0 %v994_v30  ;;  %v1002_v40 = vld [vmem:[%s1148_s9 + $0x4] ss:$16 sps:$4 sm:$0xff]   ;;  %v354_v43 = vmax.bf16 %v352_v35, %v349_v33 }
  0x2d   : > { %652 = vmatpush1.bf16.msra.mxu1 %v995_v31  ;;  %v321_v41 = vsel %vm311_vm0, %v283_v27, 4286644096  ;;  %600 = vmatprep.subr.bf16.mxu0 %v996_v34  ;;  %v1004_v42 = vld [vmem:[%s1148_s9 + $0xc] ss:$16 sps:$4 sm:$0xff]   ;;  %v356_v44 = vsel %vm311_vm0, %v284_v32, 4286644096 }
  0x2e   : > { %653 = vmatprep.subr.bf16.mxu1 %v998_v36  ;;  %v287_v45 = vld [vmem:[%s1355_s0 + $0x30] sm:$0xf]  ;;  %v323_v46 = vmax.bf16 %v321_v41, %v319_v39  ;;  %v1007_v48 = vld [vmem:[%s1148_s9 + $0x8] ss:$16 sps:$4 sm:$0xff]   ;;  %v291_v49 = vld [vmem:[%s1355_s0 + $0x40] sm:$0xf]  ;;  %v358_v52 = vmax.bf16 %v356_v44, %v354_v43 }
  0x2f   : > { %v1006_v47 = vld [vmem:[%s1148_s9] ss:$16 sps:$4 sm:$0xff]   ;;  %v288_v50 = vld [vmem:[%s1355_s0 + $0x34] sm:$0xf]  ;;  %v292_v53 = vld [vmem:[%s1355_s0 + $0x44] sm:$0xf] }
  0x30   : > { %601 = vmatpush1.bf16.msra.mxu0 %v1000_v37  ;;  %v295_v51 = vld [vmem:[%s1355_s0 + $0x50] sm:$0xf]  ;;  %v325_v54 = vsel %vm311_vm0, %v287_v45, 4286644096  ;;  %v296_v55 = vld [vmem:[%s1355_s0 + $0x54] sm:$0xf] }
  0x31   : > { %654 = vmatpush1.bf16.msra.mxu1 %v1001_v38  ;;  %602 = vmatprep.subr.bf16.mxu0 %v1002_v40  ;;  %v299_v56 = vld [vmem:[%s1355_s0 + $0x60] sm:$0xf]  ;;  %v327_v57 = vmax.bf16 %v325_v54, %v323_v46  ;;  %v329_v58 = vsel %vm311_vm0, %v291_v49, 4286644096  ;;  %v333_v59 = vsel %vm311_vm0, %v295_v51, 4286644096 }
  0x32   : > { %655 = vmatprep.subr.bf16.mxu1 %v1004_v42  ;;  %v360_v60 = vsel %vm311_vm0, %v288_v50, 4286644096  ;;  %v300_v61 = vld [vmem:[%s1355_s0 + $0x64] sm:$0xf]  ;;  %v303_v62 = vld [vmem:[%s1355_s0 + $0x70] sm:$0xf] }
  0x33   : > { %v331_v63 = vmax.bf16 %v329_v58, %v327_v57  ;;  %v362_v0 = vmax.bf16 %v360_v60, %v358_v52  ;;  %v364_v1 = vsel %vm311_vm0, %v292_v53, 4286644096  ;;  %v307_v2 = vld [vmem:[%s1355_s0 + $0x80] sm:$0xf]  ;;  %v337_v3 = vsel %vm311_vm0, %v299_v56, 4286644096 }
  0x34   : > { %603 = vmatpush1.bf16.msra.mxu0 %v1006_v47  ;;  %v368_v4 = vsel %vm311_vm0, %v296_v55, 4286644096  ;;  %v304_v5 = vld [vmem:[%s1355_s0 + $0x74] sm:$0xf]  ;;  %v308_v8 = vld [vmem:[%s1355_s0 + $0x84] sm:$0xf] }
  0x35   : > { %656 = vmatpush1.bf16.msra.mxu1 %v1007_v48  ;;  %v335_v6 = vmax.bf16 %v333_v59, %v331_v63  ;;  %v366_v7 = vmax.bf16 %v364_v1, %v362_v0  ;;  %v341_v9 = vsel %vm311_vm0, %v303_v62, 4286644096  ;;  %v372_v10 = vsel %vm311_vm0, %v300_v61, 4286644096  ;;  %v277_v14 = vld [vmem:[%s1355_s0 + $0x8] sm:$0xf] }
  0x36   : > { %v345_v12 = vsel %vm311_vm0, %v307_v2, 4286644096  ;;  %v376_v15 = vsel %vm311_vm0, %v304_v5, 4286644096  ;;  %v281_v17 = vld [vmem:[%s1355_s0 + $0x18] sm:$0xf] }
  0x37   : > { %v339_v11 = vmax.bf16 %v337_v3, %v335_v6  ;;  %v370_v13 = vmax.bf16 %v368_v4, %v366_v7  ;;  %v285_v18 = vld [vmem:[%s1355_s0 + $0x28] sm:$0xf]  ;;  %v380_v21 = vsel %vm311_vm0, %v308_v8, 4286644096  ;;  %v278_v22 = vld [vmem:[%s1355_s0 + $0xc] sm:$0xf] }
  0x38   : > { %v282_v23 = vld [vmem:[%s1355_s0 + $0x1c] sm:$0xf]  ;;  %v289_v24 = vld [vmem:[%s1355_s0 + $0x38] sm:$0xf]  ;;  %v384_v25 = vsel %vm311_vm0, %v277_v14, 4286644096 }
  0x39   : > { %v343_v19 = vmax.bf16 %v341_v9, %v339_v11  ;;  %v374_v20 = vmax.bf16 %v372_v10, %v370_v13  ;;  %v286_v28 = vld [vmem:[%s1355_s0 + $0x2c] sm:$0xf]  ;;  %v387_v29 = vsel %vm311_vm0, %v281_v17, 4286644096  ;;  %v391_v30 = vsel %vm311_vm0, %v285_v18, 4286644096 }
  0x3a   : > { %vm581_vm1 = vcmask 523264   ;;  %v293_v31 = vld [vmem:[%s1355_s0 + $0x48] sm:$0xf]  ;;  %v389_v32 = vmax.bf16 %v387_v29, %v384_v25  ;;  %v290_v34 = vld [vmem:[%s1355_s0 + $0x3c] sm:$0xf]  ;;  %v471_v11 = vlaneseq  ;;  %s1367_s6 = smov (!%p267_p11, %s897_s6), 15 }
  0x3b   : > { %v347_v26 = vmax.bf16 %v345_v12, %v343_v19  ;;  %v378_v27 = vmax.bf16 %v376_v15, %v374_v20  ;;  %v297_v35 = vld [vmem:[%s1355_s0 + $0x58] sm:$0xf]  ;;  %v395_v36 = vsel %vm311_vm0, %v289_v24, 4286644096  ;;  %v419_v38 = vsel %vm311_vm0, %v278_v22, 4286644096  ;;  %s269_s10 = scalar_lea.vmem %s1357_s2, %s1367_s6 }
  0x3c   : > { %v393_v37 = vmax.bf16 %v391_v30, %v389_v32  ;;  %v422_v39 = vsel %vm311_vm0, %v282_v23, 4286644096  ;;  %v426_v40 = vsel %vm311_vm0, %v286_v28, 4286644096  ;;  %v294_v42 = vld [vmem:[%s1355_s0 + $0x4c] sm:$0xf] }
  0x3d   : > { %v382_v33 = vmax.bf16 %v380_v21, %v378_v27  ;;  %v399_v43 = vsel %vm311_vm0, %v293_v31, 4286644096  ;;  %v424_v44 = vmax.bf16 %v422_v39, %v419_v38  ;;  %v301_v45 = vld [vmem:[%s1355_s0 + $0x68] sm:$0xf]  ;;  %v430_v47 = vsel %vm311_vm0, %v290_v34, 4286644096 }
  0x3e   : > { %v397_v46 = vmax.bf16 %v395_v36, %v393_v37  ;;  %v298_v48 = vld [vmem:[%s1355_s0 + $0x5c] sm:$0xf]  ;;  %v403_v49 = vsel %vm311_vm0, %v297_v35, 4286644096  ;;  %v305_v51 = vld [vmem:[%s1355_s0 + $0x78] sm:$0xf] }
  0x3f   : > { %v898_v41 = vcombine.low %v347_v26, %v382_v33  ;;  %v428_v50 = vmax.bf16 %v426_v40, %v424_v44  ;;  %v434_v53 = vsel %vm311_vm0, %v294_v42, 4286644096  ;;  %v302_v54 = vld [vmem:[%s1355_s0 + $0x6c] sm:$0xf]  ;;  %v407_v55 = vsel %vm311_vm0, %v301_v45, 4286644096 }
  0x40   : > { %v401_v52 = vmax.bf16 %v399_v43, %v397_v46  ;;  %v438_v58 = vsel %vm311_vm0, %v298_v48, 4286644096  ;;  %v309_v59 = vld [vmem:[%s1355_s0 + $0x88] sm:$0xf]  ;;  %v411_v60 = vsel %vm311_vm0, %v305_v51, 4286644096 }
  0x41   : > { %916 = vmatmul.mubr.msk.bf16.vlgmr.msra.gmra.mxu0 %vm581_vm1, %v898_v41  ;;  %918 = vmatmul.mubr.msk.bf16.vlgmr.msra.gmra.mxu1 %vm581_vm1, %v898_v41  ;;  %v432_v56 = vmax.bf16 %v430_v47, %v428_v50  ;;  %v442_v63 = vsel %vm311_vm0, %v302_v54, 4286644096  ;;  %v310_v0 = vld [vmem:[%s1355_s0 + $0x8c] sm:$0xf]  ;;  %v415_v3 = vsel %vm311_vm0, %v309_v59, 4286644096 }
  0x42   : > { %630 = vmatprep.mubr.bf16.mxu0 %v1048_v16  ;;  %683 = vmatprep.mubr.bf16.mxu1 %v1048_v16  ;;  %v405_v57 = vmax.bf16 %v403_v49, %v401_v52  ;;  %v306_v16 = vld [vmem:[%s1355_s0 + $0x7c] sm:$0xf]  ;;  %v450_v6 = vsel %vm311_vm0, %v310_v0, 4286644096  ;;  %v472_v12 = vshrl.u32 %v471_v11, 7  ;;  %s896_s9 = sshll.u32 %s228_s30, 6 }
  0x43   : > { %v436_v61 = vmax.bf16 %v434_v53, %v432_v56  ;;  %v446_v4 = vsel %vm311_vm0, %v306_v16, 4286644096  ;;  %v469_v18 = vld [vmem:[%s269_s10] sm:$0xf]  ;;  %s1316_s11 = scalar_lea.vmem [#allocation3], %s896_s9  ;;  %s942_s12 = sshll.u32 (%p1104_p6), %s1038_s14, 4 }
  0x44   : > { %v409_v62 = vmax.bf16 %v407_v55, %v405_v57  ;;  %v473_v13 = vsub.s32 0, %v472_v12  ;;  %v481_v14 = vsub.s32 2, %v472_v12  ;;  %v477_v15 = vsub.s32 1, %v472_v12  ;;  %s762_s19 = scalar_lea.vmem (%p1104_p6), %s1358_s3, %s942_s12 }
  0x45   : > { %v440_v1 = vmax.bf16 %v438_v58, %v436_v61  ;;  %v485_v17 = vsub.s32 3, %v472_v12 }
  0x46   : > { %v413_v2 = vmax.bf16 %v411_v60, %v409_v62  ;;  %v474_v19 = vrot.slane %v469_v18, %v473_v13  ;;  %v482_v20 = vrot.slane %v469_v18, %v481_v14  ;;  %v478_v21 = vrot.slane %v469_v18, %v477_v15 }
  0x47   : > { %v444_v5 = vmax.bf16 %v442_v63, %v440_v1  ;;  %v486_v22 = vrot.slane %v469_v18, %v485_v17 }
  0x48   : > { %v417_v7 = vmax.bf16 %v415_v3, %v413_v2 }
  0x49   : > { %v448_v8 = vmax.bf16 %v446_v4, %v444_v5 }
  0x4b   : > { %v452_v9 = vmax.bf16 %v450_v6, %v448_v8 }
  0x4d   : > { %v899_v10 = vcombine.low %v417_v7, %v452_v9 }
  0x4f   : > { %917 = vmatmul.mubr.msk.bf16.gmra.mxu0 %vm581_vm1, %v899_v10  ;;  %919 = vmatmul.mubr.msk.bf16.gmra.mxu1 %vm581_vm1, %v899_v10 }
 0x101   : > { %v622_v23 = vpop.f32.mrf.mxu0  ;;  %v675_v24 = vpop.f32.mrf.mxu1 }
 0x102   : > { %v623_v27 = vadd.f32 %v622_v23, %v474_v19  ;;  %v676_v28 = vadd.f32 %v675_v24, %v482_v20 }
 0x103   : > { %v624_v25 = vpop.f32.mrf.mxu0  ;;  %v677_v26 = vpop.f32.mrf.mxu1 }
 0x104   : > { %v625_v29 = vadd.f32 %v624_v25, %v478_v21  ;;  %v678_v30 = vadd.f32 %v677_v26, %v486_v22 }
 0x105   : > { %v626_v31 = vpop.f32.mrf.mxu0  ;;  %v679_v32 = vpop.f32.mrf.mxu1 }
 0x106   : > { %v934_v33 = vpack.c.bf16 %v625_v29, %v623_v27  ;;  %v935_v34 = vpack.c.bf16 %v678_v30, %v676_v28  ;;  %v627_v37 = vadd.f32 %v626_v31, %v474_v19  ;;  %v680_v38 = vadd.f32 %v679_v32, %v482_v20 }
 0x107   : > { %v628_v35 = vpop.f32.mrf.mxu0  ;;  %v681_v36 = vpop.f32.mrf.mxu1 }
 0x108   : > { %742 = vst [vmem:[%s1316_s11] sm:$0xff] %v934_v33  ;;  %743 = vst [vmem:[%s1316_s11 + $0x8] sm:$0xff] %v935_v34  ;;  %v629_v39 = vadd.f32 %v628_v35, %v478_v21  ;;  %v682_v40 = vadd.f32 %v681_v36, %v486_v22 }
 0x10a   : > { %v936_v41 = vpack.c.bf16 %v629_v39, %v627_v37  ;;  %v937_v42 = vpack.c.bf16 %v682_v40, %v680_v38 }
 0x10c   : > { %744 = vst [vmem:[%s1316_s11 + $0x10] sm:$0xff] %v936_v41  ;;  %745 = vst [vmem:[%s1316_s11 + $0x18] sm:$0xff] %v937_v42 }
 0x10f   : > { %v632_v43 = vpop.f32.mrf.mxu0  ;;  %v685_v44 = vpop.f32.mrf.mxu1  ;;  %v775_v62 = vld [vmem:[%s1316_s11] sm:$0xff] (%p1104_p6)  ;;  %v777_v63 = vld [vmem:[%s1316_s11 + $0x8] sm:$0xff] (%p1104_p6) }
 0x110   : > { %v633_v47 = vadd.f32 %v632_v43, %v474_v19  ;;  %v686_v48 = vadd.f32 %v685_v44, %v482_v20  ;;  %776 = vst [vmem:[%s762_s19] sm:$0xff] (%p1104_p6), %v775_v62  ;;  %778 = vst [vmem:[%s762_s19 + $0x8] sm:$0xff] (%p1104_p6), %v777_v63 }
 0x111   : > { %v634_v45 = vpop.f32.mrf.mxu0  ;;  %v687_v46 = vpop.f32.mrf.mxu1 }
 0x112   : > { %v635_v49 = vadd.f32 %v634_v45, %v478_v21  ;;  %v688_v50 = vadd.f32 %v687_v46, %v486_v22 }
 0x113   : > { %v636_v51 = vpop.f32.mrf.mxu0  ;;  %v689_v52 = vpop.f32.mrf.mxu1  ;;  %v779_v0 = vld [vmem:[%s1316_s11 + $0x10] sm:$0xff] (%p1104_p6)  ;;  %v781_v1 = vld [vmem:[%s1316_s11 + $0x18] sm:$0xff] (%p1104_p6) }
 0x114   : > { %v938_v53 = vpack.c.bf16 %v635_v49, %v633_v47  ;;  %v939_v54 = vpack.c.bf16 %v688_v50, %v686_v48  ;;  %v637_v57 = vadd.f32 %v636_v51, %v474_v19  ;;  %v690_v58 = vadd.f32 %v689_v52, %v482_v20  ;;  %780 = vst [vmem:[%s762_s19 + $0x40] sm:$0xff] (%p1104_p6), %v779_v0 }
 0x115   : > { %v638_v55 = vpop.f32.mrf.mxu0  ;;  %v691_v56 = vpop.f32.mrf.mxu1  ;;  %782 = vst [vmem:[%s762_s19 + $0x48] sm:$0xff] (%p1104_p6), %v781_v1 }
 0x116   : > { %746 = vst [vmem:[%s1316_s11 + $0x20] sm:$0xff] %v938_v53  ;;  %747 = vst [vmem:[%s1316_s11 + $0x28] sm:$0xff] %v939_v54  ;;  %v639_v16 = vadd.f32 %v638_v55, %v478_v21  ;;  %v692_v59 = vadd.f32 %v691_v56, %v486_v22  ;;  %756 = sbr.rel (!%p1104_p6) target bundleno = 291 (0x123), region = 59 }
 0x118   : > { %v940_v60 = vpack.c.bf16 %v639_v16, %v637_v57  ;;  %v941_v61 = vpack.c.bf16 %v692_v59, %v690_v58 }
 0x11a   : > { %748 = vst [vmem:[%s1316_s11 + $0x30] sm:$0xff] %v940_v60  ;;  %749 = vst [vmem:[%s1316_s11 + $0x38] sm:$0xff] %v941_v61 }
 0x11d   : > { %v783_v2 = vld [vmem:[%s1316_s11 + $0x20] sm:$0xff]  ;;  %v785_v3 = vld [vmem:[%s1316_s11 + $0x28] sm:$0xff] }
 0x11e   : > { %784 = vst [vmem:[%s762_s19 + $0x80] sm:$0xff] %v783_v2  ;;  %786 = vst [vmem:[%s762_s19 + $0x88] sm:$0xff] %v785_v3 }
 0x121   : > { %v787_v4 = vld [vmem:[%s1316_s11 + $0x30] sm:$0xff]  ;;  %v789_v5 = vld [vmem:[%s1316_s11 + $0x38] sm:$0xff] }
 0x122   : > { %788 = vst [vmem:[%s762_s19 + $0xc0] sm:$0xff] %v787_v4  ;;  %790 = vst [vmem:[%s762_s19 + $0xc8] sm:$0xff] %v789_v5 }
 0x123 PF: > { %s13_s16 = sadd.s32 1, %s1046_s16   ;;  %s1360_s12 = smov %s1034_s13 }
 0x124   : > { %p10_p12 = scmp.ge.s32.totalorder %s13_s16, 6   ;;  %s1361_s13 = smov %s1109_s22 }
 0x125   : > { %s1362_s14 = smov %s1042_s15  ;;  %s1363_s15 = smov %s1365_s17 }
 0x126   :  { %12 = sbr.rel (!%p10_p12) target bundleno = 3 (0x3), region = 119 }

// kernel: forward.8
= control target key start
LH: loop header
LB: loop body
LE: loop exit
PB: predicated region body
PF: predicated region fallthrough
CT: control target
= control target key end

     0   :  { %v191_v0 = vmov 0.0   ;;  %vm192_vm0 = vmmov 0   ;;  %s249_s1 = inlined_call_operand.vmem [shape: bf16[128,128], index: 1, kind: input, shape index: {}]   ;;  %s250_s0 = inlined_call_operand.vmem [shape: bf16[16,128], index: 0, kind: input, shape index: {}]   ;;  %s251_s2 = inlined_call_operand.vmem [shape: f32[1,128], index: 2, kind: input, shape index: {}]   ;;  %s252_s3 = inlined_call_operand.vmem [shape: f32[16,128], index: 3, kind: output, shape index: {}]  }
   0x1   :  { %160 = vmatprep.subr.bf16.mxu0 %v191_v0  ;;  %v182_v1 = vld [vmem:[%s249_s1 + $0x38] sm:$0xff]   ;;  %176 = vmatprep.mubr.msk.bf16.mxu0 %vm192_vm0, %v191_v0  ;;  %v183_v2 = vld [vmem:[%s249_s1 + $0x30] sm:$0xff]   ;;  %v184_v3 = vld [vmem:[%s249_s1 + $0x28] sm:$0xff]  }
   0x2   :  { %161 = vmatpush3.bf16.msra.mxu0 %v182_v1  ;;  %v185_v4 = vld [vmem:[%s249_s1 + $0x20] sm:$0xff]   ;;  %v186_v5 = vld [vmem:[%s249_s1 + $0x18] sm:$0xff]   ;;  %v187_v6 = vld [vmem:[%s249_s1 + $0x10] sm:$0xff]  }
   0x3   :  { %162 = vmatprep.subr.bf16.mxu0 %v191_v0  ;;  %v188_v7 = vld [vmem:[%s249_s1 + $0x8] sm:$0xff]   ;;  %v189_v8 = vld [vmem:[%s249_s1] sm:$0xff]  }
   0x4   :  { %v190_v9 = vld [vmem:[%s250_s0] sm:$0xff]  }
   0x5   :  { %v141_v10 = vld [vmem:[%s251_s2] ss:$0 sm:$0xff] }
   0x6   :  { %163 = vmatpush3.bf16.msra.mxu0 %v183_v2 }
   0x7   :  { %164 = vmatprep.subr.bf16.mxu0 %v191_v0 }
   0xa   :  { %165 = vmatpush3.bf16.msra.mxu0 %v184_v3 }
   0xb   :  { %166 = vmatprep.subr.bf16.mxu0 %v191_v0 }
   0xe   :  { %167 = vmatpush3.bf16.msra.mxu0 %v185_v4 }
   0xf   :  { %168 = vmatprep.subr.bf16.mxu0 %v191_v0 }
  0x12   :  { %169 = vmatpush3.bf16.msra.mxu0 %v186_v5 }
  0x13   :  { %170 = vmatprep.subr.bf16.mxu0 %v191_v0 }
  0x16   :  { %171 = vmatpush3.bf16.msra.mxu0 %v187_v6 }
  0x17   :  { %172 = vmatprep.subr.bf16.mxu0 %v191_v0 }
  0x1a   :  { %173 = vmatpush3.bf16.msra.mxu0 %v188_v7 }
  0x1b   :  { %174 = vmatprep.subr.bf16.mxu0 %v191_v0 }
  0x1e   :  { %175 = vmatpush3.bf16.msra.mxu0 %v189_v8 }
  0x21   :  { %177 = vmatmul.mubr.bf16.vlgmr.msra.gmra.mxu0 %v190_v9 }
  0xe1   :  { %v128_v11 = vpop.f32.mrf.mxu0 }
  0xe2   :  { %v129_v12 = vadd.f32 %v141_v10, %v128_v11 }
  0xe3   :  { %v178_v13 = vpop.f32.mrf.mxu0 }
  0xe4   :  { %135 = vst [vmem:[%s252_s3] sm:$0xff] %v129_v12 }
  0xe5   :  { %v131_v14 = vpop.f32.mrf.mxu0 }
  0xe6   :  { %v132_v15 = vadd.f32 %v141_v10, %v131_v14 }
  0xe7   :  { %v179_v16 = vpop.f32.mrf.mxu0 }
  0xe8   :  { %136 = vst [vmem:[%s252_s3 + $0x8] sm:$0xff] %v132_v15 }

// kernel: forward.9
= control target key start
LH: loop header
LB: loop body
LE: loop exit
PB: predicated region body
PF: predicated region fallthrough
CT: control target
= control target key end

     0   :  { %s307_s0 = inlined_call_operand.vmem [shape: bf16[32,128], index: 0, kind: input, shape index: {}]   ;;  %s308_s1 = inlined_call_operand.vmem [shape: bf16[128,128], index: 1, kind: input, shape index: {}]   ;;  %s309_s2 = inlined_call_operand.vmem [shape: f32[1,128], index: 2, kind: input, shape index: {}]   ;;  %s310_s3 = inlined_call_operand.hbm [shape: f32[32,128], index: 3, kind: output, shape index: {}]  }
   0x1   :  { %v216_v0 = vld [vmem:[%s308_s1 + $0x38] sm:$0xff]   ;;  %v217_v1 = vld [vmem:[%s308_s1 + $0x30] sm:$0xff]   ;;  %v218_v2 = vld [vmem:[%s308_s1 + $0x28] sm:$0xff]  }
   0x2   :  { %193 = vmatprep.subr.bf16.mxu0 %v216_v0  ;;  %v219_v3 = vld [vmem:[%s308_s1 + $0x20] sm:$0xff]  }
   0x3   :  { %194 = vmatpush3.bf16.msra.mxu0 %v216_v0  ;;  %v224_v4 = vld [vmem:[%s307_s0] sm:$0xff]  }
   0x4   :  { %195 = vmatprep.subr.bf16.mxu0 %v217_v1  ;;  %209 = vmatprep.mubr.bf16.mxu0 %v224_v4 }
   0x7   :  { %196 = vmatpush3.bf16.msra.mxu0 %v217_v1 }
   0x8   :  { %197 = vmatprep.subr.bf16.mxu0 %v218_v2 }
   0x9   :  { %8 = vsyncpa [#allocation3], 0  ;;  %v220_v5 = vld [vmem:[%s308_s1 + $0x18] sm:$0xff]   ;;  %v221_v6 = vld [vmem:[%s308_s1 + $0x10] sm:$0xff]   ;;  %s248_s7 = smov [#allocation2]  }
   0xa   :  { %v222_v7 = vld [vmem:[%s308_s1 + $0x8] sm:$0xff]   ;;  %v223_v8 = vld [vmem:[%s308_s1] sm:$0xff]   ;;  %s161_s8 = sshll.u32 %s248_s7, 4  ;;  %s162_s8 = int_to_ptr.vmem [resolvable:$true] %s161_s8 }
   0xb   :  { %198 = vmatpush3.bf16.msra.mxu0 %v218_v2  ;;  %v225_v9 = vld [vmem:[%s307_s0 + $0x8] sm:$0xff]   ;;  %v172_v10 = vld [vmem:[%s309_s2] ss:$0 sm:$0xff]  ;;  %s226_s0 = scalar_lea.vmem %s162_s8, 512  ;;  %p231_p1 = scmp.lt.s32.totalorder %s162_s8, %s162_s8 }
   0xc   :  { %199 = vmatprep.subr.bf16.mxu0 %v219_v3  ;;  %p227_p0 = scmp.ne.s32.totalorder %s162_s8, %s226_s0  ;;  %p232_p2 = scmp.lt.s32.totalorder %s226_s0, %s226_s0 }
   0xe   :  { %p233_p3 = por %p232_p2, %p231_p1 }
   0xf   :  { %200 = vmatpush3.bf16.msra.mxu0 %v219_v3 }
  0x10   :  { %201 = vmatprep.subr.bf16.mxu0 %v220_v5  ;;  %p234_p4 = pnand %p233_p3, %p227_p0 }
  0x13   :  { %202 = vmatpush3.bf16.msra.mxu0 %v220_v5 }
  0x14   :  { %203 = vmatprep.subr.bf16.mxu0 %v221_v6 }
  0x17   :  { %204 = vmatpush3.bf16.msra.mxu0 %v221_v6 }
  0x18   :  { %205 = vmatprep.subr.bf16.mxu0 %v222_v7 }
  0x1b   :  { %206 = vmatpush3.bf16.msra.mxu0 %v222_v7 }
  0x1c   :  { %207 = vmatprep.subr.bf16.mxu0 %v223_v8 }
  0x1f   :  { %208 = vmatpush3.bf16.msra.mxu0 %v223_v8 }
  0x22   :  { %210 = vmatmul.mubr.bf16.vlgmr.msra.gmra.mxu0 %v225_v9 }
  0xe2   :  { %v211_v11 = vpop.f32.mrf.mxu0 }
  0xe3   :  { %v146_v12 = vadd.f32 %v211_v11, %v172_v10 }
  0xe4   :  { %v137_v13 = vpop.f32.mrf.mxu0 }
  0xe5   :  { %154 = vst [vmem:[#allocation2 + $0x10] sm:$0xff] %v146_v12  ;;  %v138_v14 = vadd.f32 %v172_v10, %v137_v13 }
  0xe6   :  { %v212_v15 = vpop.f32.mrf.mxu0 }
  0xe7   :  { %152 = vst [vmem:[#allocation2] sm:$0xff] %v138_v14  ;;  %v149_v16 = vadd.f32 %v212_v15, %v172_v10 }
  0xe8   :  { %v140_v17 = vpop.f32.mrf.mxu0 }
  0xe9   :  { %155 = vst [vmem:[#allocation2 + $0x18] sm:$0xff] %v149_v16  ;;  %v141_v18 = vadd.f32 %v172_v10, %v140_v17 }
  0xeb   :  { %153 = vst [vmem:[#allocation2 + $0x8] sm:$0xff] %v141_v18 }
  0xec   :  { %237 = shalt.err (!%p234_p4)
}
  0xed   :  { %s249_s1 = smov 128   ;;  %s250_s2 = smov 8  }
  0xee   :  { %167 = dma.vmem_to_hbm [thread:$0]  %s162_s8, 512, %s310_s3, [#allocation3], %s249_s1, %s249_s1, %s250_s2  }
  0xef   :  { %246 = dma.done.wait [#allocation3], 512  }
  0xf0   :  { %247 = vsyncadd [#allocation3], 4294966784 }
  0xf1   :  { %171 = vsyncpa [#allocation3], 1 }

// kernel: forward.7
= control target key start
LH: loop header
LB: loop body
LE: loop exit
PB: predicated region body
PF: predicated region fallthrough
CT: control target
= control target key end

     0   :  { %10 = vsyncpa [#allocation5], 0  ;;  %s4549_s0 = inlined_call_operand.vmem [shape: bf16[32,18432], index: 0, kind: input, shape index: {}]   ;;  %s4550_s1 = inlined_call_operand.hbm [shape: bf16[18432,512], index: 1, kind: input, shape index: {}]   ;;  %s4551_s2 = inlined_call_operand.vmem [shape: f32[1,512], index: 2, kind: input, shape index: {}]   ;;  %s4552_s3 = inlined_call_operand.vmem [shape: bf16[512,128], index: 3, kind: input, shape index: {}]   ;;  %s4553_s4 = inlined_call_operand.vmem [shape: f32[1,128], index: 4, kind: input, shape index: {}]   ;;  %s4554_s5 = inlined_call_operand.vmem [shape: f32[32,128], index: 5, kind: output, shape index: {}]  }
   0x1   :  { %12 = vsyncpa [#allocation5 + $0x1], 0  ;;  %s3967_s18 = smov 0   ;;  %s3969_s19 = smov 0  }
   0x2   :  { %s3971_s20 = smov 0   ;;  %s3973_s21 = smov 0  }
   0x3   :  { %s3975_s22 = smov 0   ;;  %s3977_s23 = smov 0  }
   0x4 LB: > { %s3003_s24 = sadd.s32 4294967295, %s3931_s23   ;;  %s27_s25 = sadd.s32 1, %s3927_s22  ;;  %s3931_s23 = sphi %s3977_s23, %s18_s23   ;;  %s3927_s22 = sphi %s3975_s22, %s4561_s22   ;;  %s3923_s21 = sphi %s3973_s21, %s4560_s21   ;;  %s3919_s20 = sphi %s3971_s20, %s4559_s20   ;;  %s3915_s19 = sphi %s3969_s19, %s4558_s19   ;;  %s3911_s18 = sphi %s3967_s18, %s4557_s18  }
   0x5   : > { %p28_p0 = scmp.ge.s32.totalorder %s27_s25, 18  ;;  %s39_s26 = sadd.s32 1, %s3919_s20 }
   0x6   : > { %p46_p1 = scmp.ne.s32.totalorder %s3919_s20, %s3915_s19  ;;  %p47_p2 = scmp.eq.s32.totalorder %s3931_s23, 0 }
   0x7   : > { %s4563_s25 = smov (%p28_p0, %s27_s25), 0  ;;  %p78_p4 = scmp.ne.s32.totalorder %s3915_s19, %s3911_s18 }
   0x8   : > { %p4003_p3 = por %p47_p2, %p46_p1  ;;  %s35_s28 = ssub.s32 %s3927_s22, %s4563_s25 }
   0x9   : > { %p79_p5 = scmp.eq.s32.totalorder %s3003_s24, 0  ;;  %p37_p6 = scmp.eq.s32.totalorder %s35_s28, 0 }
   0xa   : > { %p3005_p8 = scmp.ge.s32.totalorder %s3931_s23, 18 }
   0xb   : > { %p4010_p7 = por %p79_p5, %p78_p4 }
   0xc   : > { %s4015_s30 = scalar_select %p37_p6, %s3919_s20, %s39_s26  }
   0xd   : > { %196 = sbr.rel (%p3005_p8) target bundleno = 46 (0x2e), region = 28 }
  0x12   : > { %199 = sbr.rel (!%p4003_p3) target bundleno = 30 (0x1e), region = 32  ;;  %s201_s6 = sand.u32 (%p4003_p3), 1, %s3919_s20  }
  0x13   : > { %s3327_s7 = sshll.u32 (%p4003_p3), %s3927_s22, 5  ;;  %s3006_s8 = sshll.u32 (%p4003_p3), %s201_s6, 7 }
  0x14   : > { %s4025_s11 = scalar_lea.vmem (%p4003_p3), %s4549_s0, %s3327_s7  ;;  %s203_s12 = scalar_lea.vmem (%p4003_p3), [#allocation3], %s3006_s8 }
  0x15   : > { %v222_v0 = vld [vmem:[%s4025_s11] sm:$0xff] (%p4003_p3)  ;;  %v224_v1 = vld [vmem:[%s4025_s11 + $0x8] sm:$0xff] (%p4003_p3)  ;;  %v226_v2 = vld [vmem:[%s4025_s11 + $0x10] sm:$0xff] (%p4003_p3) }
  0x16   : > { %223 = vst [vmem:[%s203_s12] sm:$0xff] (%p4003_p3), %v222_v0  ;;  %225 = vst [vmem:[%s203_s12 + $0x8] sm:$0xff] (%p4003_p3), %v224_v1  ;;  %v228_v3 = vld [vmem:[%s4025_s11 + $0x18] sm:$0xff] (%p4003_p3)  ;;  %v230_v4 = vld [vmem:[%s4025_s11 + $0x240] sm:$0xff] (%p4003_p3) }
  0x17   : > { %227 = vst [vmem:[%s203_s12 + $0x10] sm:$0xff] %v226_v2  ;;  %v232_v5 = vld [vmem:[%s4025_s11 + $0x248] sm:$0xff]  ;;  %229 = vst [vmem:[%s203_s12 + $0x18] sm:$0xff] %v228_v3  ;;  %v234_v6 = vld [vmem:[%s4025_s11 + $0x250] sm:$0xff] }
  0x18   : > { %231 = vst [vmem:[%s203_s12 + $0x20] sm:$0xff] %v230_v4  ;;  %233 = vst [vmem:[%s203_s12 + $0x28] sm:$0xff] %v232_v5  ;;  %v236_v7 = vld [vmem:[%s4025_s11 + $0x258] sm:$0xff]  ;;  %v238_v8 = vld [vmem:[%s4025_s11 + $0x480] sm:$0xff] }
  0x19   : > { %235 = vst [vmem:[%s203_s12 + $0x30] sm:$0xff] %v234_v6  ;;  %237 = vst [vmem:[%s203_s12 + $0x38] sm:$0xff] %v236_v7  ;;  %v240_v9 = vld [vmem:[%s4025_s11 + $0x488] sm:$0xff]  ;;  %v242_v10 = vld [vmem:[%s4025_s11 + $0x490] sm:$0xff] }
  0x1a   : > { %239 = vst [vmem:[%s203_s12 + $0x40] sm:$0xff] %v238_v8  ;;  %v244_v11 = vld [vmem:[%s4025_s11 + $0x498] sm:$0xff]  ;;  %241 = vst [vmem:[%s203_s12 + $0x48] sm:$0xff] %v240_v9  ;;  %v246_v12 = vld [vmem:[%s4025_s11 + $0x6c0] sm:$0xff] }
  0x1b   : > { %243 = vst [vmem:[%s203_s12 + $0x50] sm:$0xff] %v242_v10  ;;  %245 = vst [vmem:[%s203_s12 + $0x58] sm:$0xff] %v244_v11  ;;  %v248_v13 = vld [vmem:[%s4025_s11 + $0x6c8] sm:$0xff]  ;;  %v250_v14 = vld [vmem:[%s4025_s11 + $0x6d0] sm:$0xff] }
  0x1c   : > { %247 = vst [vmem:[%s203_s12 + $0x60] sm:$0xff] %v246_v12  ;;  %249 = vst [vmem:[%s203_s12 + $0x68] sm:$0xff] %v248_v13  ;;  %v252_v15 = vld [vmem:[%s4025_s11 + $0x6d8] sm:$0xff] }
  0x1d   : > { %251 = vst [vmem:[%s203_s12 + $0x70] sm:$0xff] %v250_v14  ;;  %253 = vst [vmem:[%s203_s12 + $0x78] sm:$0xff] %v252_v15 }
  0x1e PF: > { %s260_s13 = sand.u32 1, %s3919_s20   ;;  %s3329_s14 = sshll.u32 %s3927_s22, 15 }
  0x1f   : > { %s3009_s15 = sshll.u32 %s260_s13, 11  ;;  %s271_s18 = scalar_lea.hbm %s4550_s1, %s3329_s14 }
  0x20   : > { %s264_s24 = scalar_lea.vmem [#allocation4], %s3009_s15  ;;  %s261_s28 = scalar_lea.sflag [#allocation5], %s260_s13 }
  0x21   : > { %s272_s26 = sshll.u32 %s264_s24, 4  ;;  %s3933_s7 = smov [#allocation4]   ;;  %s273_s26 = int_to_ptr.vmem [resolvable:$true] %s272_s26 }
  0x22   : > { %s3867_s6 = scalar_lea.vmem %s273_s26, 32768  ;;  %s3871_s8 = sshll.u32 %s3933_s7, 4  ;;  %s3872_s8 = int_to_ptr.vmem [resolvable:$false] %s3871_s8 }
  0x23   : > { %p3868_p9 = scmp.ne.s32.totalorder %s273_s26, %s3867_s6  ;;  %s3873_s9 = scalar_lea.vmem %s3872_s8, 65536 }
  0x24   : > { %p3874_p12 = scmp.lt.s32.totalorder %s273_s26, %s3872_s8  ;;  %p3875_p13 = scmp.lt.s32.totalorder %s3873_s9, %s3867_s6 }
  0x25   : > { %p3869_p10 = pnand %p3868_p9, %p4003_p3 }
  0x26   : > { %p3876_p0 = por %p3875_p13, %p3874_p12 }
  0x27   : > { %p3870_p11 = pneg %p3869_p10 }
  0x29   : > { %p3877_p1 = pnand %p3876_p0, %p3870_p11 }
  0x2b   : > { %3880 = shalt.err (!%p3877_p1)
}
  0x2c   : > { %s3934_s10 = smov 256   ;;  %s3935_s11 = smov 16  }
  0x2d   : > { %3386 = dma.hbm_to_vmem [thread:$0]  (%p4003_p3), %s271_s18, 32768, %s273_s26, %s261_s28, %s3934_s10, %s3934_s10, %s3935_s11  }
  0x2e PF: > { %p3013_p2 = scmp.ge.s32.totalorder %s3931_s23, 1  ;;  %p280_p4 = scmp.lt.s32.totalorder %s3931_s23, 19 }
  0x30   : > { %p281_p5 = pnand %p3013_p2, %p280_p4 }
  0x31   : > { %s287_s12 = sand.u32 (!%p281_p5), 1, %s3915_s19  }
  0x32   : > { %284 = sbr.rel (%p281_p5) target bundleno = 791 (0x317), region = 59  ;;  %s3014_s13 = sshll.u32 (!%p281_p5), %s287_s12, 7 }
  0x33   : > { %s3015_s14 = sshll.u32 (!%p281_p5), %s287_s12, 11  ;;  %s4055_s15 = scalar_lea.vmem (!%p281_p5), [#allocation3], %s3014_s13 }
  0x34   : > { %s294_s16 = scalar_lea.sflag (!%p281_p5), [#allocation5], %s287_s12  ;;  %s4057_s17 = scalar_lea.vmem (!%p281_p5), [#allocation4], %s3015_s14 }
  0x37   : > { %3906 = dma.done.wait (%p4010_p7), %s294_s16, 32768  }
  0x38   : > { %3908 = vsyncadd (%p4010_p7), %s294_s16, 4294934528  ;;  %p3016_p3 = scmp.ne.s32.totalorder %s3923_s21, 0 }
  0x3a   : > { %341 = sbr.rel (%p3016_p3) target bundleno = 72 (0x48), region = 71 }
  0x3f   : > { %v3936_v16 = vmov 0.0  }
  0x40   : > { %342 = vst [vmem:[#allocation2 + $0x30] sm:$0xff] %v3936_v16  ;;  %343 = vst [vmem:[#allocation2] sm:$0xff] %v3936_v16 }
  0x41   : > { %344 = vst [vmem:[#allocation2 + $0x58] sm:$0xff] %v3936_v16  ;;  %345 = vst [vmem:[#allocation2 + $0x18] sm:$0xff] %v3936_v16 }
  0x42   : > { %346 = vst [vmem:[#allocation2 + $0x50] sm:$0xff] %v3936_v16  ;;  %347 = vst [vmem:[#allocation2 + $0x68] sm:$0xff] %v3936_v16 }
  0x43   : > { %348 = vst [vmem:[#allocation2 + $0x8] sm:$0xff] %v3936_v16  ;;  %349 = vst [vmem:[#allocation2 + $0x48] sm:$0xff] %v3936_v16 }
  0x44   : > { %350 = vst [vmem:[#allocation2 + $0x40] sm:$0xff] %v3936_v16  ;;  %351 = vst [vmem:[#allocation2 + $0x20] sm:$0xff] %v3936_v16 }
  0x45   : > { %352 = vst [vmem:[#allocation2 + $0x10] sm:$0xff] %v3936_v16  ;;  %353 = vst [vmem:[#allocation2 + $0x38] sm:$0xff] %v3936_v16 }
  0x46   : > { %354 = vst [vmem:[#allocation2 + $0x60] sm:$0xff] %v3936_v16  ;;  %355 = vst [vmem:[#allocation2 + $0x70] sm:$0xff] %v3936_v16 }
  0x47   : > { %356 = vst [vmem:[#allocation2 + $0x78] sm:$0xff] %v3936_v16  ;;  %357 = vst [vmem:[#allocation2 + $0x28] sm:$0xff] %v3936_v16 }
  0x48 PF: > { %v3439_v17 = vld [vmem:[%s4057_s17 + $0xe4] ss:$16 sps:$4 sm:$0xff]   ;;  %v3443_v19 = vld [vmem:[%s4057_s17 + $0xe0] ss:$16 sps:$4 sm:$0xff]   ;;  %v375_v3 = vld [vmem:[%s4055_s15 + $0x8] sm:$0xff]  ;;  %p3289_p6 = scmp.ne.s32.totalorder %s3923_s21, 17 }
  0x49   : > { %v3441_v18 = vld [vmem:[%s4057_s17 + $0x2e4] ss:$16 sps:$4 sm:$0xff]   ;;  %2006 = vmatprep.subr.bf16.mxu0 %v3439_v17  ;;  %v3444_v20 = vld [vmem:[%s4057_s17 + $0x2e0] ss:$16 sps:$4 sm:$0xff]   ;;  %v379_v4 = vld [vmem:[%s4055_s15 + $0x28] sm:$0xff] }
  0x4a   : > { %2059 = vmatprep.subr.bf16.mxu1 %v3441_v18  ;;  %v3445_v21 = vld [vmem:[%s4057_s17 + $0xc4] ss:$16 sps:$4 sm:$0xff]   ;;  %2007 = vmatpush1.bf16.msra.mxu0 %v3443_v19  ;;  %v3449_v23 = vld [vmem:[%s4057_s17 + $0xc0] ss:$16 sps:$4 sm:$0xff]   ;;  %v4120_v8 = vcombine.high %v375_v3, %v379_v4 }
  0x4b   : > { %2060 = vmatpush1.bf16.msra.mxu1 %v3444_v20  ;;  %v3447_v22 = vld [vmem:[%s4057_s17 + $0x2c4] ss:$16 sps:$4 sm:$0xff]   ;;  %2008 = vmatprep.subr.bf16.mxu0 %v3445_v21  ;;  %v3450_v24 = vld [vmem:[%s4057_s17 + $0x2c0] ss:$16 sps:$4 sm:$0xff]  }
  0x4c   : > { %2061 = vmatprep.subr.bf16.mxu1 %v3447_v22  ;;  %v3451_v25 = vld [vmem:[%s4057_s17 + $0xa4] ss:$16 sps:$4 sm:$0xff]   ;;  %v3455_v27 = vld [vmem:[%s4057_s17 + $0xa0] ss:$16 sps:$4 sm:$0xff]   ;;  %2091 = vmatprep.mubr.bf16.mxu1 %v4120_v8 }
  0x4d   : > { %v3453_v26 = vld [vmem:[%s4057_s17 + $0x2a4] ss:$16 sps:$4 sm:$0xff]   ;;  %v3456_v28 = vld [vmem:[%s4057_s17 + $0x2a0] ss:$16 sps:$4 sm:$0xff]  }
  0x4e   : > { %2009 = vmatpush1.bf16.msra.mxu0 %v3449_v23  ;;  %v3457_v29 = vld [vmem:[%s4057_s17 + $0x84] ss:$16 sps:$4 sm:$0xff]   ;;  %v3461_v31 = vld [vmem:[%s4057_s17 + $0x80] ss:$16 sps:$4 sm:$0xff]  }
  0x4f   : > { %2062 = vmatpush1.bf16.msra.mxu1 %v3450_v24  ;;  %2010 = vmatprep.subr.bf16.mxu0 %v3451_v25  ;;  %v3459_v30 = vld [vmem:[%s4057_s17 + $0x284] ss:$16 sps:$4 sm:$0xff]   ;;  %v3462_v32 = vld [vmem:[%s4057_s17 + $0x280] ss:$16 sps:$4 sm:$0xff]  }
  0x50   : > { %2063 = vmatprep.subr.bf16.mxu1 %v3453_v26  ;;  %v3463_v33 = vld [vmem:[%s4057_s17 + $0x64] ss:$16 sps:$4 sm:$0xff]   ;;  %v3467_v35 = vld [vmem:[%s4057_s17 + $0x60] ss:$16 sps:$4 sm:$0xff]   ;;  %v4142_v26 = vcombine.low %v375_v3, %v379_v4  ;;  %v4204_v3 = vld [vmem:[%s4055_s15 + $0x38] sm:$0xff] }
  0x51   : > { %v3465_v34 = vld [vmem:[%s4057_s17 + $0x264] ss:$16 sps:$4 sm:$0xff]   ;;  %v3468_v36 = vld [vmem:[%s4057_s17 + $0x260] ss:$16 sps:$4 sm:$0xff]  }
  0x52   : > { %2011 = vmatpush1.bf16.msra.mxu0 %v3455_v27  ;;  %v3469_v37 = vld [vmem:[%s4057_s17 + $0x44] ss:$16 sps:$4 sm:$0xff]   ;;  %v3473_v39 = vld [vmem:[%s4057_s17 + $0x40] ss:$16 sps:$4 sm:$0xff]  }
  0x53   : > { %2064 = vmatpush1.bf16.msra.mxu1 %v3456_v28  ;;  %2012 = vmatprep.subr.bf16.mxu0 %v3457_v29  ;;  %v3471_v38 = vld [vmem:[%s4057_s17 + $0x244] ss:$16 sps:$4 sm:$0xff]   ;;  %v3474_v40 = vld [vmem:[%s4057_s17 + $0x240] ss:$16 sps:$4 sm:$0xff]  }
  0x54   : > { %2065 = vmatprep.subr.bf16.mxu1 %v3459_v30  ;;  %v3475_v41 = vld [vmem:[%s4057_s17 + $0x24] ss:$16 sps:$4 sm:$0xff]   ;;  %v3479_v43 = vld [vmem:[%s4057_s17 + $0x20] ss:$16 sps:$4 sm:$0xff]  }
  0x55   : > { %v3477_v42 = vld [vmem:[%s4057_s17 + $0x224] ss:$16 sps:$4 sm:$0xff]   ;;  %v3480_v44 = vld [vmem:[%s4057_s17 + $0x220] ss:$16 sps:$4 sm:$0xff]  }
  0x56   : > { %2013 = vmatpush1.bf16.msra.mxu0 %v3461_v31  ;;  %v3481_v45 = vld [vmem:[%s4057_s17 + $0x4] ss:$16 sps:$4 sm:$0xff]   ;;  %v3485_v47 = vld [vmem:[%s4057_s17] ss:$16 sps:$4 sm:$0xff]  }
  0x57   : > { %2066 = vmatpush1.bf16.msra.mxu1 %v3462_v32  ;;  %2014 = vmatprep.subr.bf16.mxu0 %v3463_v33  ;;  %v3483_v46 = vld [vmem:[%s4057_s17 + $0x204] ss:$16 sps:$4 sm:$0xff]   ;;  %v3486_v48 = vld [vmem:[%s4057_s17 + $0x200] ss:$16 sps:$4 sm:$0xff]  }
  0x58   : > { %2067 = vmatprep.subr.bf16.mxu1 %v3465_v34  ;;  %v3487_v49 = vld [vmem:[%s4057_s17 + $0x1e4] ss:$16 sps:$4 sm:$0xff]   ;;  %v3491_v51 = vld [vmem:[%s4057_s17 + $0x1e0] ss:$16 sps:$4 sm:$0xff]  }
  0x59   : > { %v3489_v50 = vld [vmem:[%s4057_s17 + $0x3e4] ss:$16 sps:$4 sm:$0xff]   ;;  %v3492_v52 = vld [vmem:[%s4057_s17 + $0x3e0] ss:$16 sps:$4 sm:$0xff]  }
  0x5a   : > { %2015 = vmatpush1.bf16.msra.mxu0 %v3467_v35  ;;  %v3493_v53 = vld [vmem:[%s4057_s17 + $0x1c4] ss:$16 sps:$4 sm:$0xff]   ;;  %v3497_v55 = vld [vmem:[%s4057_s17 + $0x1c0] ss:$16 sps:$4 sm:$0xff]  }
  0x5b   : > { %2068 = vmatpush1.bf16.msra.mxu1 %v3468_v36  ;;  %2016 = vmatprep.subr.bf16.mxu0 %v3469_v37  ;;  %v3495_v54 = vld [vmem:[%s4057_s17 + $0x3c4] ss:$16 sps:$4 sm:$0xff]   ;;  %v3498_v56 = vld [vmem:[%s4057_s17 + $0x3c0] ss:$16 sps:$4 sm:$0xff]  }
  0x5c   : > { %2069 = vmatprep.subr.bf16.mxu1 %v3471_v38  ;;  %v3499_v57 = vld [vmem:[%s4057_s17 + $0x1a4] ss:$16 sps:$4 sm:$0xff]   ;;  %v3503_v59 = vld [vmem:[%s4057_s17 + $0x1a0] ss:$16 sps:$4 sm:$0xff]  }
  0x5d   : > { %v3501_v58 = vld [vmem:[%s4057_s17 + $0x3a4] ss:$16 sps:$4 sm:$0xff]   ;;  %v3504_v60 = vld [vmem:[%s4057_s17 + $0x3a0] ss:$16 sps:$4 sm:$0xff]  }
  0x5e   : > { %2017 = vmatpush1.bf16.msra.mxu0 %v3473_v39  ;;  %v3505_v61 = vld [vmem:[%s4057_s17 + $0x184] ss:$16 sps:$4 sm:$0xff]   ;;  %v3509_v63 = vld [vmem:[%s4057_s17 + $0x180] ss:$16 sps:$4 sm:$0xff]  }
  0x5f   : > { %2070 = vmatpush1.bf16.msra.mxu1 %v3474_v40  ;;  %2018 = vmatprep.subr.bf16.mxu0 %v3475_v41  ;;  %v3507_v62 = vld [vmem:[%s4057_s17 + $0x384] ss:$16 sps:$4 sm:$0xff]   ;;  %v3510_v0 = vld [vmem:[%s4057_s17 + $0x380] ss:$16 sps:$4 sm:$0xff]  }
  0x60   : > { %2071 = vmatprep.subr.bf16.mxu1 %v3477_v42  ;;  %v374_v1 = vld [vmem:[%s4055_s15] sm:$0xff] }
  0x61   : > { %v378_v2 = vld [vmem:[%s4055_s15 + $0x20] sm:$0xff] }
  0x62   : > { %2019 = vmatpush1.bf16.msra.mxu0 %v3479_v43  ;;  %v3511_v5 = vld [vmem:[%s4057_s17 + $0x164] ss:$16 sps:$4 sm:$0xff]   ;;  %v4117_v6 = vcombine.high %v374_v1, %v378_v2  ;;  %v3515_v9 = vld [vmem:[%s4057_s17 + $0x160] ss:$16 sps:$4 sm:$0xff]   ;;  %v4140_v25 = vcombine.low %v374_v1, %v378_v2  ;;  %v4197_v1 = vld [vmem:[%s4055_s15 + $0x18] sm:$0xff] }
  0x63   : > { %2072 = vmatpush1.bf16.msra.mxu1 %v3480_v44  ;;  %2020 = vmatprep.subr.bf16.mxu0 %v3481_v45  ;;  %v3513_v7 = vld [vmem:[%s4057_s17 + $0x364] ss:$16 sps:$4 sm:$0xff]   ;;  %v3516_v10 = vld [vmem:[%s4057_s17 + $0x360] ss:$16 sps:$4 sm:$0xff]   ;;  %v4208_v4 = vcombine.high %v4197_v1, %v4204_v3 }
  0x64   : > { %2073 = vmatprep.subr.bf16.mxu1 %v3483_v46  ;;  %2038 = vmatprep.mubr.bf16.mxu0 %v4117_v6  ;;  %v3517_v11 = vld [vmem:[%s4057_s17 + $0x144] ss:$16 sps:$4 sm:$0xff]   ;;  %v3521_v13 = vld [vmem:[%s4057_s17 + $0x140] ss:$16 sps:$4 sm:$0xff]  }
  0x65   : > { %v3519_v12 = vld [vmem:[%s4057_s17 + $0x344] ss:$16 sps:$4 sm:$0xff]   ;;  %v3522_v14 = vld [vmem:[%s4057_s17 + $0x340] ss:$16 sps:$4 sm:$0xff]  }
  0x66   : > { %2021 = vmatpush1.bf16.msra.mxu0 %v3485_v47  ;;  %v3523_v15 = vld [vmem:[%s4057_s17 + $0x124] ss:$16 sps:$4 sm:$0xff]   ;;  %v3527_v17 = vld [vmem:[%s4057_s17 + $0x120] ss:$16 sps:$4 sm:$0xff]   ;;  %v383_v47 = vld [vmem:[%s4055_s15 + $0x48] sm:$0xff] }
  0x67   : > { %2074 = vmatpush1.bf16.msra.mxu1 %v3486_v48  ;;  %2022 = vmatprep.subr.bf16.mxu0 %v3487_v49  ;;  %v3525_v16 = vld [vmem:[%s4057_s17 + $0x324] ss:$16 sps:$4 sm:$0xff]   ;;  %v3528_v18 = vld [vmem:[%s4057_s17 + $0x320] ss:$16 sps:$4 sm:$0xff]   ;;  %v387_v48 = vld [vmem:[%s4055_s15 + $0x68] sm:$0xff] }
  0x68   : > { %2075 = vmatprep.subr.bf16.mxu1 %v3489_v50  ;;  %v3529_v19 = vld [vmem:[%s4057_s17 + $0x104] ss:$16 sps:$4 sm:$0xff]   ;;  %v3533_v21 = vld [vmem:[%s4057_s17 + $0x100] ss:$16 sps:$4 sm:$0xff]  }
  0x69   : > { %v3531_v20 = vld [vmem:[%s4057_s17 + $0x304] ss:$16 sps:$4 sm:$0xff]   ;;  %v3534_v22 = vld [vmem:[%s4057_s17 + $0x300] ss:$16 sps:$4 sm:$0xff]  }
  0x6a   : > { %2023 = vmatpush2.bf16.msra.mxu0 %v3491_v51  ;;  %v3537_v23 = vld [vmem:[%s4057_s17 + $0x4e4] ss:$16 sps:$4 sm:$0xff]   ;;  %v3535_v27 = vld [vmem:[%s4057_s17 + $0x4e0] ss:$16 sps:$4 sm:$0xff]   ;;  %v4171_v51 = vcombine.high %v383_v47, %v387_v48 }
  0x6b   : > { %2076 = vmatpush2.bf16.msra.mxu1 %v3492_v52  ;;  %2024 = vmatprep.subr.bf16.mxu0 %v3493_v53  ;;  %v3540_v24 = vld [vmem:[%s4057_s17 + $0x6e4] ss:$16 sps:$4 sm:$0xff]   ;;  %v3538_v28 = vld [vmem:[%s4057_s17 + $0x6e0] ss:$16 sps:$4 sm:$0xff]  }
  0x6c   : > { %2077 = vmatprep.subr.bf16.mxu1 %v3495_v54  ;;  %v3543_v29 = vld [vmem:[%s4057_s17 + $0x4c4] ss:$16 sps:$4 sm:$0xff]   ;;  %v3541_v31 = vld [vmem:[%s4057_s17 + $0x4c0] ss:$16 sps:$4 sm:$0xff]   ;;  %v4176_v54 = vcombine.low %v383_v47, %v387_v48 }
  0x6d   : > { %v3546_v30 = vld [vmem:[%s4057_s17 + $0x6c4] ss:$16 sps:$4 sm:$0xff]   ;;  %v3544_v32 = vld [vmem:[%s4057_s17 + $0x6c0] ss:$16 sps:$4 sm:$0xff]  }
  0x6e   : > { %2025 = vmatpush2.bf16.msra.mxu0 %v3497_v55  ;;  %v3549_v33 = vld [vmem:[%s4057_s17 + $0x4a4] ss:$16 sps:$4 sm:$0xff]   ;;  %v3547_v35 = vld [vmem:[%s4057_s17 + $0x4a0] ss:$16 sps:$4 sm:$0xff]  }
  0x6f   : > { %2078 = vmatpush2.bf16.msra.mxu1 %v3498_v56  ;;  %2026 = vmatprep.subr.bf16.mxu0 %v3499_v57  ;;  %v3552_v34 = vld [vmem:[%s4057_s17 + $0x6a4] ss:$16 sps:$4 sm:$0xff]   ;;  %v3550_v36 = vld [vmem:[%s4057_s17 + $0x6a0] ss:$16 sps:$4 sm:$0xff]  }
  0x70   : > { %2079 = vmatprep.subr.bf16.mxu1 %v3501_v58  ;;  %v3555_v37 = vld [vmem:[%s4057_s17 + $0x484] ss:$16 sps:$4 sm:$0xff]   ;;  %v3553_v39 = vld [vmem:[%s4057_s17 + $0x480] ss:$16 sps:$4 sm:$0xff]  }
  0x71   : > { %v3558_v38 = vld [vmem:[%s4057_s17 + $0x684] ss:$16 sps:$4 sm:$0xff]   ;;  %v3556_v40 = vld [vmem:[%s4057_s17 + $0x680] ss:$16 sps:$4 sm:$0xff]  }
  0x72   : > { %2027 = vmatpush2.bf16.msra.mxu0 %v3503_v59  ;;  %v3561_v41 = vld [vmem:[%s4057_s17 + $0x464] ss:$16 sps:$4 sm:$0xff]   ;;  %v3559_v43 = vld [vmem:[%s4057_s17 + $0x460] ss:$16 sps:$4 sm:$0xff]  }
  0x73   : > { %2080 = vmatpush2.bf16.msra.mxu1 %v3504_v60  ;;  %2028 = vmatprep.subr.bf16.mxu0 %v3505_v61  ;;  %v3564_v42 = vld [vmem:[%s4057_s17 + $0x664] ss:$16 sps:$4 sm:$0xff]   ;;  %v3562_v44 = vld [vmem:[%s4057_s17 + $0x660] ss:$16 sps:$4 sm:$0xff]  }
  0x74   : > { %2081 = vmatprep.subr.bf16.mxu1 %v3507_v62  ;;  %v382_v45 = vld [vmem:[%s4055_s15 + $0x40] sm:$0xff]  ;;  %v384_v47 = vld [vmem:[%s4055_s15 + $0x50] sm:$0xff] }
  0x75   : > { %v386_v46 = vld [vmem:[%s4055_s15 + $0x60] sm:$0xff]  ;;  %v388_v48 = vld [vmem:[%s4055_s15 + $0x70] sm:$0xff] }
  0x76   : > { %2029 = vmatpush2.bf16.msra.mxu0 %v3509_v63  ;;  %v3567_v49 = vld [vmem:[%s4057_s17 + $0x444] ss:$16 sps:$4 sm:$0xff]   ;;  %v4169_v50 = vcombine.high %v382_v45, %v386_v46  ;;  %v4173_v52 = vcombine.low %v382_v45, %v386_v46  ;;  %v3565_v55 = vld [vmem:[%s4057_s17 + $0x440] ss:$16 sps:$4 sm:$0xff]   ;;  %v3631_v45 = vld [vmem:[%s4057_s17 + $0xe8] ss:$16 sps:$4 sm:$0xff]  }
  0x77   : > { %2082 = vmatpush2.bf16.msra.mxu1 %v3510_v0  ;;  %2030 = vmatprep.subr.bf16.mxu0 %v3511_v5  ;;  %v3570_v53 = vld [vmem:[%s4057_s17 + $0x644] ss:$16 sps:$4 sm:$0xff]   ;;  %v3568_v56 = vld [vmem:[%s4057_s17 + $0x640] ss:$16 sps:$4 sm:$0xff]   ;;  %v3634_v46 = vld [vmem:[%s4057_s17 + $0x2e8] ss:$16 sps:$4 sm:$0xff]  }
  0x78   : > { %2083 = vmatprep.subr.bf16.mxu1 %v3513_v7  ;;  %v3573_v57 = vld [vmem:[%s4057_s17 + $0x424] ss:$16 sps:$4 sm:$0xff]   ;;  %v3571_v59 = vld [vmem:[%s4057_s17 + $0x420] ss:$16 sps:$4 sm:$0xff]  }
  0x79   : > { %v3576_v58 = vld [vmem:[%s4057_s17 + $0x624] ss:$16 sps:$4 sm:$0xff]   ;;  %v3574_v60 = vld [vmem:[%s4057_s17 + $0x620] ss:$16 sps:$4 sm:$0xff]  }
  0x7a   : > { %2031 = vmatpush2.bf16.msra.mxu0 %v3515_v9  ;;  %v3579_v61 = vld [vmem:[%s4057_s17 + $0x404] ss:$16 sps:$4 sm:$0xff]   ;;  %v3577_v5 = vld [vmem:[%s4057_s17 + $0x400] ss:$16 sps:$4 sm:$0xff]  }
  0x7b   : > { %2084 = vmatpush2.bf16.msra.mxu1 %v3516_v10  ;;  %2032 = vmatprep.subr.bf16.mxu0 %v3517_v11  ;;  %v3582_v62 = vld [vmem:[%s4057_s17 + $0x604] ss:$16 sps:$4 sm:$0xff]   ;;  %v3580_v7 = vld [vmem:[%s4057_s17 + $0x600] ss:$16 sps:$4 sm:$0xff]  }
  0x7c   : > { %2085 = vmatprep.subr.bf16.mxu1 %v3519_v12  ;;  %v4191_v63 = vld [vmem:[%s4055_s15 + $0x10] sm:$0xff] }
  0x7d   : > { %v4194_v0 = vld [vmem:[%s4055_s15 + $0x30] sm:$0xff] }
  0x7e   : > { %2033 = vmatpush2.bf16.msra.mxu0 %v3521_v13  ;;  %v4201_v2 = vcombine.high %v4191_v63, %v4194_v0  ;;  %v3585_v9 = vld [vmem:[%s4057_s17 + $0x5e4] ss:$16 sps:$4 sm:$0xff]   ;;  %v3583_v11 = vld [vmem:[%s4057_s17 + $0x5e0] ss:$16 sps:$4 sm:$0xff]  }
  0x7f   : > { %2086 = vmatpush2.bf16.msra.mxu1 %v3522_v14  ;;  %2034 = vmatprep.subr.bf16.mxu0 %v3523_v15  ;;  %v3588_v10 = vld [vmem:[%s4057_s17 + $0x7e4] ss:$16 sps:$4 sm:$0xff]   ;;  %v3586_v12 = vld [vmem:[%s4057_s17 + $0x7e0] ss:$16 sps:$4 sm:$0xff]  }
  0x80   : > { %2087 = vmatprep.subr.bf16.mxu1 %v3525_v16  ;;  %v3591_v13 = vld [vmem:[%s4057_s17 + $0x5c4] ss:$16 sps:$4 sm:$0xff]   ;;  %v3589_v15 = vld [vmem:[%s4057_s17 + $0x5c0] ss:$16 sps:$4 sm:$0xff]  }
  0x81   : > { %v3594_v14 = vld [vmem:[%s4057_s17 + $0x7c4] ss:$16 sps:$4 sm:$0xff]   ;;  %v3592_v16 = vld [vmem:[%s4057_s17 + $0x7c0] ss:$16 sps:$4 sm:$0xff]  }
  0x82   : > { %2035 = vmatpush2.bf16.msra.mxu0 %v3527_v17  ;;  %v3597_v17 = vld [vmem:[%s4057_s17 + $0x5a4] ss:$16 sps:$4 sm:$0xff]  }
  0x83   : > { %2088 = vmatpush2.bf16.msra.mxu1 %v3528_v18  ;;  %2036 = vmatprep.subr.bf16.mxu0 %v3529_v19  ;;  %v3600_v18 = vld [vmem:[%s4057_s17 + $0x7a4] ss:$16 sps:$4 sm:$0xff]   ;;  %v3595_v19 = vld [vmem:[%s4057_s17 + $0x5a0] ss:$16 sps:$4 sm:$0xff]  }
  0x84   : > { %2089 = vmatprep.subr.bf16.mxu1 %v3531_v20  ;;  %v3598_v20 = vld [vmem:[%s4057_s17 + $0x7a0] ss:$16 sps:$4 sm:$0xff]  }
  0x86   : > { %2037 = vmatpush2.bf16.msra.mxu0 %v3533_v21  ;;  %v3603_v21 = vld [vmem:[%s4057_s17 + $0x584] ss:$16 sps:$4 sm:$0xff]  }
  0x87   : > { %2090 = vmatpush2.bf16.msra.mxu1 %v3534_v22  ;;  %2112 = vmatprep.subr.bf16.mxu0 %v3537_v23  ;;  %v3606_v22 = vld [vmem:[%s4057_s17 + $0x784] ss:$16 sps:$4 sm:$0xff]   ;;  %v3601_v23 = vld [vmem:[%s4057_s17 + $0x580] ss:$16 sps:$4 sm:$0xff]  }
  0x88   : > { %2165 = vmatprep.subr.bf16.mxu1 %v3540_v24  ;;  %v3604_v24 = vld [vmem:[%s4057_s17 + $0x780] ss:$16 sps:$4 sm:$0xff]  }
  0x89   : > { %2039 = vmatmul.mubr.bf16.vlgmr.msra.gmra.mxu0 %v4140_v25 }
  0x8a   : > { %2092 = vmatmul.mubr.bf16.vlgmr.msra.gmra.mxu1 %v4142_v26  ;;  %2113 = vmatpush1.bf16.msra.mxu0 %v3535_v27  ;;  %v3609_v27 = vld [vmem:[%s4057_s17 + $0x564] ss:$16 sps:$4 sm:$0xff]  }
  0x8b   : > { %2166 = vmatpush1.bf16.msra.mxu1 %v3538_v28  ;;  %2114 = vmatprep.subr.bf16.mxu0 %v3543_v29  ;;  %v3612_v28 = vld [vmem:[%s4057_s17 + $0x764] ss:$16 sps:$4 sm:$0xff]   ;;  %v3607_v29 = vld [vmem:[%s4057_s17 + $0x560] ss:$16 sps:$4 sm:$0xff]  }
  0x8c   : > { %2167 = vmatprep.subr.bf16.mxu1 %v3546_v30  ;;  %2048 = vmatprep.mubr.bf16.mxu0 %v4169_v50  ;;  %v3610_v30 = vld [vmem:[%s4057_s17 + $0x760] ss:$16 sps:$4 sm:$0xff]  }
  0x8d   : > { %2101 = vmatprep.mubr.bf16.mxu1 %v4171_v51 }
  0x8e   : > { %2115 = vmatpush1.bf16.msra.mxu0 %v3541_v31  ;;  %v3615_v31 = vld [vmem:[%s4057_s17 + $0x544] ss:$16 sps:$4 sm:$0xff]  }
  0x8f   : > { %2168 = vmatpush1.bf16.msra.mxu1 %v3544_v32  ;;  %2116 = vmatprep.subr.bf16.mxu0 %v3549_v33  ;;  %v3618_v32 = vld [vmem:[%s4057_s17 + $0x744] ss:$16 sps:$4 sm:$0xff]   ;;  %v3613_v33 = vld [vmem:[%s4057_s17 + $0x540] ss:$16 sps:$4 sm:$0xff]  }
  0x90   : > { %2169 = vmatprep.subr.bf16.mxu1 %v3552_v34  ;;  %v3616_v34 = vld [vmem:[%s4057_s17 + $0x740] ss:$16 sps:$4 sm:$0xff]  }
  0x91   : > { %2049 = vmatmul.mubr.bf16.gmra.mxu0 %v4173_v52 }
  0x92   : > { %2117 = vmatpush1.bf16.msra.mxu0 %v3547_v35  ;;  %2102 = vmatmul.mubr.bf16.gmra.mxu1 %v4176_v54  ;;  %v3621_v35 = vld [vmem:[%s4057_s17 + $0x524] ss:$16 sps:$4 sm:$0xff]  }
  0x93   : > { %2170 = vmatpush1.bf16.msra.mxu1 %v3550_v36  ;;  %2118 = vmatprep.subr.bf16.mxu0 %v3555_v37  ;;  %v3624_v36 = vld [vmem:[%s4057_s17 + $0x724] ss:$16 sps:$4 sm:$0xff]   ;;  %v3619_v37 = vld [vmem:[%s4057_s17 + $0x520] ss:$16 sps:$4 sm:$0xff]  }
  0x94   : > { %2171 = vmatprep.subr.bf16.mxu1 %v3558_v38  ;;  %2144 = vmatprep.mubr.bf16.mxu0 %v4201_v2  ;;  %v3622_v38 = vld [vmem:[%s4057_s17 + $0x720] ss:$16 sps:$4 sm:$0xff]  }
  0x95   : > { %2197 = vmatprep.mubr.bf16.mxu1 %v4208_v4 }
  0x96   : > { %2119 = vmatpush1.bf16.msra.mxu0 %v3553_v39  ;;  %v3627_v39 = vld [vmem:[%s4057_s17 + $0x504] ss:$16 sps:$4 sm:$0xff]  }
  0x97   : > { %2172 = vmatpush1.bf16.msra.mxu1 %v3556_v40  ;;  %2120 = vmatprep.subr.bf16.mxu0 %v3561_v41  ;;  %v3630_v40 = vld [vmem:[%s4057_s17 + $0x704] ss:$16 sps:$4 sm:$0xff]   ;;  %v3625_v41 = vld [vmem:[%s4057_s17 + $0x500] ss:$16 sps:$4 sm:$0xff]  }
  0x98   : > { %2173 = vmatprep.subr.bf16.mxu1 %v3564_v42  ;;  %v3628_v42 = vld [vmem:[%s4057_s17 + $0x700] ss:$16 sps:$4 sm:$0xff]  }
  0x9a   : > { %2121 = vmatpush1.bf16.msra.mxu0 %v3559_v43  ;;  %v3633_v43 = vld [vmem:[%s4057_s17 + $0xec] ss:$16 sps:$4 sm:$0xff]  }
  0x9b   : > { %2174 = vmatpush1.bf16.msra.mxu1 %v3562_v44  ;;  %2122 = vmatprep.subr.bf16.mxu0 %v3567_v49  ;;  %v3636_v44 = vld [vmem:[%s4057_s17 + $0x2ec] ss:$16 sps:$4 sm:$0xff]   ;;  %v4254_v49 = vcombine.low %v4191_v63, %v4194_v0 }
  0x9c   : > { %2175 = vmatprep.subr.bf16.mxu1 %v3570_v53  ;;  %v4258_v53 = vcombine.low %v4197_v1, %v4204_v3  ;;  %v3645_v63 = vld [vmem:[%s4057_s17 + $0xac] ss:$16 sps:$4 sm:$0xff]   ;;  %v4276_v1 = vcombine.low %v384_v47, %v388_v48  ;;  %v3643_v3 = vld [vmem:[%s4057_s17 + $0xa8] ss:$16 sps:$4 sm:$0xff]  }
  0x9d   : > { %v3648_v0 = vld [vmem:[%s4057_s17 + $0x2ac] ss:$16 sps:$4 sm:$0xff]  }
  0x9e   : > { %2123 = vmatpush1.bf16.msra.mxu0 %v3565_v55  ;;  %v385_v55 = vld [vmem:[%s4055_s15 + $0x58] sm:$0xff] }
  0x9f   : > { %2176 = vmatpush1.bf16.msra.mxu1 %v3568_v56  ;;  %2124 = vmatprep.subr.bf16.mxu0 %v3573_v57  ;;  %v389_v56 = vld [vmem:[%s4055_s15 + $0x78] sm:$0xff] }
  0xa0   : > { %2177 = vmatprep.subr.bf16.mxu1 %v3576_v58  ;;  %v3639_v57 = vld [vmem:[%s4057_s17 + $0xcc] ss:$16 sps:$4 sm:$0xff]  }
  0xa1   : > { %v3642_v58 = vld [vmem:[%s4057_s17 + $0x2cc] ss:$16 sps:$4 sm:$0xff]  }
  0xa2   : > { %2125 = vmatpush1.bf16.msra.mxu0 %v3571_v59  ;;  %v4264_v59 = vcombine.high %v384_v47, %v388_v48  ;;  %v3703_v47 = vld [vmem:[%s4057_s17 + $0x168] ss:$16 sps:$4 sm:$0xff]  }
  0xa3   : > { %2178 = vmatpush1.bf16.msra.mxu1 %v3574_v60  ;;  %2126 = vmatprep.subr.bf16.mxu0 %v3579_v61  ;;  %v4266_v60 = vcombine.high %v385_v55, %v389_v56  ;;  %v3637_v61 = vld [vmem:[%s4057_s17 + $0xc8] ss:$16 sps:$4 sm:$0xff]  }
  0xa4   : > { %2179 = vmatprep.subr.bf16.mxu1 %v3582_v62  ;;  %v3640_v62 = vld [vmem:[%s4057_s17 + $0x2c8] ss:$16 sps:$4 sm:$0xff]  }
  0xa5   : > { %v3706_v48 = vld [vmem:[%s4057_s17 + $0x368] ss:$16 sps:$4 sm:$0xff]  }
  0xa6   : > { %2127 = vmatpush1.bf16.msra.mxu0 %v3577_v5  ;;  %v3646_v5 = vld [vmem:[%s4057_s17 + $0x2a8] ss:$16 sps:$4 sm:$0xff]  }
  0xa7   : > { %2180 = vmatpush1.bf16.msra.mxu1 %v3580_v7  ;;  %2128 = vmatprep.subr.bf16.mxu0 %v3585_v9  ;;  %v4280_v7 = vcombine.low %v385_v55, %v389_v56  ;;  %v3651_v9 = vld [vmem:[%s4057_s17 + $0x8c] ss:$16 sps:$4 sm:$0xff]  }
  0xa8   : > { %2181 = vmatprep.subr.bf16.mxu1 %v3588_v10  ;;  %v3654_v10 = vld [vmem:[%s4057_s17 + $0x28c] ss:$16 sps:$4 sm:$0xff]  }
  0xa9   : > { %v3711_v55 = vld [vmem:[%s4057_s17 + $0x14c] ss:$16 sps:$4 sm:$0xff]  }
  0xaa   : > { %2129 = vmatpush2.bf16.msra.mxu0 %v3583_v11  ;;  %v3649_v11 = vld [vmem:[%s4057_s17 + $0x88] ss:$16 sps:$4 sm:$0xff]   ;;  %v3714_v56 = vld [vmem:[%s4057_s17 + $0x34c] ss:$16 sps:$4 sm:$0xff]  }
  0xab   : > { %2182 = vmatpush2.bf16.msra.mxu1 %v3586_v12  ;;  %2130 = vmatprep.subr.bf16.mxu0 %v3591_v13  ;;  %v3652_v12 = vld [vmem:[%s4057_s17 + $0x288] ss:$16 sps:$4 sm:$0xff]   ;;  %v3657_v13 = vld [vmem:[%s4057_s17 + $0x6c] ss:$16 sps:$4 sm:$0xff]  }
  0xac   : > { %2183 = vmatprep.subr.bf16.mxu1 %v3594_v14  ;;  %v3660_v14 = vld [vmem:[%s4057_s17 + $0x26c] ss:$16 sps:$4 sm:$0xff]  }
  0xae   : > { %2131 = vmatpush2.bf16.msra.mxu0 %v3589_v15  ;;  %v3655_v15 = vld [vmem:[%s4057_s17 + $0x68] ss:$16 sps:$4 sm:$0xff]  }
  0xaf   : > { %2184 = vmatpush2.bf16.msra.mxu1 %v3592_v16  ;;  %2132 = vmatprep.subr.bf16.mxu0 %v3597_v17  ;;  %v3658_v16 = vld [vmem:[%s4057_s17 + $0x268] ss:$16 sps:$4 sm:$0xff]   ;;  %v3663_v17 = vld [vmem:[%s4057_s17 + $0x4c] ss:$16 sps:$4 sm:$0xff]  }
  0xb0   : > { %2185 = vmatprep.subr.bf16.mxu1 %v3600_v18  ;;  %v3666_v18 = vld [vmem:[%s4057_s17 + $0x24c] ss:$16 sps:$4 sm:$0xff]  }
  0xb2   : > { %2133 = vmatpush2.bf16.msra.mxu0 %v3595_v19  ;;  %v3661_v19 = vld [vmem:[%s4057_s17 + $0x48] ss:$16 sps:$4 sm:$0xff]  }
  0xb3   : > { %2186 = vmatpush2.bf16.msra.mxu1 %v3598_v20  ;;  %2134 = vmatprep.subr.bf16.mxu0 %v3603_v21  ;;  %v3664_v20 = vld [vmem:[%s4057_s17 + $0x248] ss:$16 sps:$4 sm:$0xff]  }
  0xb4   : > { %2187 = vmatprep.subr.bf16.mxu1 %v3606_v22  ;;  %v3667_v21 = vld [vmem:[%s4057_s17 + $0x28] ss:$16 sps:$4 sm:$0xff]  }
  0xb5   : > { %v3670_v22 = vld [vmem:[%s4057_s17 + $0x228] ss:$16 sps:$4 sm:$0xff]  }
  0xb6   : > { %2135 = vmatpush2.bf16.msra.mxu0 %v3601_v23  ;;  %v3675_v23 = vld [vmem:[%s4057_s17 + $0xc] ss:$16 sps:$4 sm:$0xff]  }
  0xb7   : > { %2188 = vmatpush2.bf16.msra.mxu1 %v3604_v24  ;;  %2136 = vmatprep.subr.bf16.mxu0 %v3609_v27  ;;  %v3678_v24 = vld [vmem:[%s4057_s17 + $0x20c] ss:$16 sps:$4 sm:$0xff]   ;;  %v3673_v27 = vld [vmem:[%s4057_s17 + $0x8] ss:$16 sps:$4 sm:$0xff]  }
  0xb8   : > { %2189 = vmatprep.subr.bf16.mxu1 %v3612_v28  ;;  %v3676_v28 = vld [vmem:[%s4057_s17 + $0x208] ss:$16 sps:$4 sm:$0xff]  }
  0xba   : > { %2137 = vmatpush2.bf16.msra.mxu0 %v3607_v29  ;;  %v3681_v29 = vld [vmem:[%s4057_s17 + $0x1ec] ss:$16 sps:$4 sm:$0xff]  }
  0xbb   : > { %2190 = vmatpush2.bf16.msra.mxu1 %v3610_v30  ;;  %2138 = vmatprep.subr.bf16.mxu0 %v3615_v31  ;;  %v3684_v30 = vld [vmem:[%s4057_s17 + $0x3ec] ss:$16 sps:$4 sm:$0xff]   ;;  %v3679_v31 = vld [vmem:[%s4057_s17 + $0x1e8] ss:$16 sps:$4 sm:$0xff]  }
  0xbc   : > { %2191 = vmatprep.subr.bf16.mxu1 %v3618_v32  ;;  %v3682_v32 = vld [vmem:[%s4057_s17 + $0x3e8] ss:$16 sps:$4 sm:$0xff]  }
  0xbe   : > { %2139 = vmatpush2.bf16.msra.mxu0 %v3613_v33  ;;  %v3687_v33 = vld [vmem:[%s4057_s17 + $0x1cc] ss:$16 sps:$4 sm:$0xff]  }
  0xbf   : > { %2192 = vmatpush2.bf16.msra.mxu1 %v3616_v34  ;;  %2140 = vmatprep.subr.bf16.mxu0 %v3621_v35  ;;  %v3690_v34 = vld [vmem:[%s4057_s17 + $0x3cc] ss:$16 sps:$4 sm:$0xff]   ;;  %v3685_v35 = vld [vmem:[%s4057_s17 + $0x1c8] ss:$16 sps:$4 sm:$0xff]  }
  0xc0   : > { %2193 = vmatprep.subr.bf16.mxu1 %v3624_v36  ;;  %v3688_v36 = vld [vmem:[%s4057_s17 + $0x3c8] ss:$16 sps:$4 sm:$0xff]  }
  0xc2   : > { %2141 = vmatpush2.bf16.msra.mxu0 %v3619_v37  ;;  %v3693_v37 = vld [vmem:[%s4057_s17 + $0x1ac] ss:$16 sps:$4 sm:$0xff]  }
  0xc3   : > { %2194 = vmatpush2.bf16.msra.mxu1 %v3622_v38  ;;  %2142 = vmatprep.subr.bf16.mxu0 %v3627_v39  ;;  %v3696_v38 = vld [vmem:[%s4057_s17 + $0x3ac] ss:$16 sps:$4 sm:$0xff]   ;;  %v3691_v39 = vld [vmem:[%s4057_s17 + $0x1a8] ss:$16 sps:$4 sm:$0xff]  }
  0xc4   : > { %2195 = vmatprep.subr.bf16.mxu1 %v3630_v40  ;;  %v3694_v40 = vld [vmem:[%s4057_s17 + $0x3a8] ss:$16 sps:$4 sm:$0xff]  }
  0xc6   : > { %2143 = vmatpush2.bf16.msra.mxu0 %v3625_v41  ;;  %v3699_v41 = vld [vmem:[%s4057_s17 + $0x18c] ss:$16 sps:$4 sm:$0xff]  }
  0xc7   : > { %2196 = vmatpush2.bf16.msra.mxu1 %v3628_v42  ;;  %2218 = vmatprep.subr.bf16.mxu0 %v3633_v43  ;;  %v3702_v42 = vld [vmem:[%s4057_s17 + $0x38c] ss:$16 sps:$4 sm:$0xff]   ;;  %v3697_v43 = vld [vmem:[%s4057_s17 + $0x188] ss:$16 sps:$4 sm:$0xff]  }
  0xc8   : > { %2271 = vmatprep.subr.bf16.mxu1 %v3636_v44  ;;  %v3700_v44 = vld [vmem:[%s4057_s17 + $0x388] ss:$16 sps:$4 sm:$0xff]  }
  0xc9   : > { %2145 = vmatmul.mubr.bf16.vlgmr.msra.gmra.mxu0 %v4254_v49 }
  0xca   : > { %2198 = vmatmul.mubr.bf16.vlgmr.msra.gmra.mxu1 %v4258_v53  ;;  %2219 = vmatpush1.bf16.msra.mxu0 %v3631_v45  ;;  %v3705_v45 = vld [vmem:[%s4057_s17 + $0x16c] ss:$16 sps:$4 sm:$0xff]  }
  0xcb   : > { %2272 = vmatpush1.bf16.msra.mxu1 %v3634_v46  ;;  %2220 = vmatprep.subr.bf16.mxu0 %v3639_v57  ;;  %v3708_v46 = vld [vmem:[%s4057_s17 + $0x36c] ss:$16 sps:$4 sm:$0xff]   ;;  %v3709_v57 = vld [vmem:[%s4057_s17 + $0x148] ss:$16 sps:$4 sm:$0xff]  }
  0xcc   : > { %2273 = vmatprep.subr.bf16.mxu1 %v3642_v58  ;;  %2154 = vmatprep.mubr.bf16.mxu0 %v4264_v59  ;;  %v3712_v58 = vld [vmem:[%s4057_s17 + $0x348] ss:$16 sps:$4 sm:$0xff]  }
  0xcd   : > { %2207 = vmatprep.mubr.bf16.mxu1 %v4266_v60 }
  0xce   : > { %2221 = vmatpush1.bf16.msra.mxu0 %v3637_v61  ;;  %v3717_v61 = vld [vmem:[%s4057_s17 + $0x12c] ss:$16 sps:$4 sm:$0xff]  }
  0xcf   : > { %2274 = vmatpush1.bf16.msra.mxu1 %v3640_v62  ;;  %2222 = vmatprep.subr.bf16.mxu0 %v3645_v63  ;;  %v3720_v62 = vld [vmem:[%s4057_s17 + $0x32c] ss:$16 sps:$4 sm:$0xff]   ;;  %v3715_v63 = vld [vmem:[%s4057_s17 + $0x128] ss:$16 sps:$4 sm:$0xff]  }
  0xd0   : > { %2275 = vmatprep.subr.bf16.mxu1 %v3648_v0  ;;  %v3718_v0 = vld [vmem:[%s4057_s17 + $0x328] ss:$16 sps:$4 sm:$0xff]  }
  0xd1   : > { %2155 = vmatmul.mubr.bf16.gmra.mxu0 %v4276_v1 }
  0xd2   : > { %2208 = vmatmul.mubr.bf16.gmra.mxu1 %v4280_v7  ;;  %2223 = vmatpush1.bf16.msra.mxu0 %v3643_v3  ;;  %v3723_v3 = vld [vmem:[%s4057_s17 + $0x10c] ss:$16 sps:$4 sm:$0xff]  }
  0xd3   : > { %2276 = vmatpush1.bf16.msra.mxu1 %v3646_v5  ;;  %2224 = vmatprep.subr.bf16.mxu0 %v3651_v9  ;;  %v3726_v5 = vld [vmem:[%s4057_s17 + $0x30c] ss:$16 sps:$4 sm:$0xff]   ;;  %v3721_v9 = vld [vmem:[%s4057_s17 + $0x108] ss:$16 sps:$4 sm:$0xff]  }
  0xd4   : > { %2277 = vmatprep.subr.bf16.mxu1 %v3654_v10  ;;  %2250 = vmatprep.mubr.bf16.mxu0 %v4117_v6  ;;  %v3669_v6 = vld [vmem:[%s4057_s17 + $0x2c] ss:$16 sps:$4 sm:$0xff]   ;;  %v3724_v10 = vld [vmem:[%s4057_s17 + $0x308] ss:$16 sps:$4 sm:$0xff]  }
  0xd5   : > { %2303 = vmatprep.mubr.bf16.mxu1 %v4120_v8  ;;  %v3672_v8 = vld [vmem:[%s4057_s17 + $0x22c] ss:$16 sps:$4 sm:$0xff]  }
  0xd6   : > { %2225 = vmatpush1.bf16.msra.mxu0 %v3649_v11  ;;  %v3729_v11 = vld [vmem:[%s4057_s17 + $0x4ec] ss:$16 sps:$4 sm:$0xff]  }
  0xd7   : > { %2278 = vmatpush1.bf16.msra.mxu1 %v3652_v12  ;;  %2226 = vmatprep.subr.bf16.mxu0 %v3657_v13  ;;  %v3732_v12 = vld [vmem:[%s4057_s17 + $0x6ec] ss:$16 sps:$4 sm:$0xff]   ;;  %v3727_v13 = vld [vmem:[%s4057_s17 + $0x4e8] ss:$16 sps:$4 sm:$0xff]  }
  0xd8   : > { %2279 = vmatprep.subr.bf16.mxu1 %v3660_v14  ;;  %v3730_v14 = vld [vmem:[%s4057_s17 + $0x6e8] ss:$16 sps:$4 sm:$0xff]  }
  0xda   : > { %2227 = vmatpush1.bf16.msra.mxu0 %v3655_v15  ;;  %v3735_v15 = vld [vmem:[%s4057_s17 + $0x4cc] ss:$16 sps:$4 sm:$0xff]  }
  0xdb   : > { %2280 = vmatpush1.bf16.msra.mxu1 %v3658_v16  ;;  %2228 = vmatprep.subr.bf16.mxu0 %v3663_v17  ;;  %v3738_v16 = vld [vmem:[%s4057_s17 + $0x6cc] ss:$16 sps:$4 sm:$0xff]   ;;  %v3733_v17 = vld [vmem:[%s4057_s17 + $0x4c8] ss:$16 sps:$4 sm:$0xff]  }
  0xdc   : > { %2281 = vmatprep.subr.bf16.mxu1 %v3666_v18  ;;  %v3736_v18 = vld [vmem:[%s4057_s17 + $0x6c8] ss:$16 sps:$4 sm:$0xff]  }
  0xde   : > { %2229 = vmatpush1.bf16.msra.mxu0 %v3661_v19  ;;  %v3741_v19 = vld [vmem:[%s4057_s17 + $0x4ac] ss:$16 sps:$4 sm:$0xff]  }
  0xdf   : > { %2282 = vmatpush1.bf16.msra.mxu1 %v3664_v20  ;;  %2230 = vmatprep.subr.bf16.mxu0 %v3669_v6  ;;  %v3744_v20 = vld [vmem:[%s4057_s17 + $0x6ac] ss:$16 sps:$4 sm:$0xff]  }
  0xe0   : > { %2283 = vmatprep.subr.bf16.mxu1 %v3672_v8  ;;  %v3747_v6 = vld [vmem:[%s4057_s17 + $0x48c] ss:$16 sps:$4 sm:$0xff]  }
  0xe1   : > { %v3750_v8 = vld [vmem:[%s4057_s17 + $0x68c] ss:$16 sps:$4 sm:$0xff]  }
  0xe2   : > { %2231 = vmatpush1.bf16.msra.mxu0 %v3667_v21  ;;  %v3753_v21 = vld [vmem:[%s4057_s17 + $0x46c] ss:$16 sps:$4 sm:$0xff]  }
  0xe3   : > { %2284 = vmatpush1.bf16.msra.mxu1 %v3670_v22  ;;  %2232 = vmatprep.subr.bf16.mxu0 %v3675_v23  ;;  %v3756_v22 = vld [vmem:[%s4057_s17 + $0x66c] ss:$16 sps:$4 sm:$0xff]  }
  0xe4   : > { %2285 = vmatprep.subr.bf16.mxu1 %v3678_v24  ;;  %v3759_v23 = vld [vmem:[%s4057_s17 + $0x44c] ss:$16 sps:$4 sm:$0xff]  }
  0xe5   : > { %v3762_v24 = vld [vmem:[%s4057_s17 + $0x64c] ss:$16 sps:$4 sm:$0xff]  }
  0xe6   : > { %2233 = vmatpush1.bf16.msra.mxu0 %v3673_v27  ;;  %v3757_v27 = vld [vmem:[%s4057_s17 + $0x448] ss:$16 sps:$4 sm:$0xff]  }
  0xe7   : > { %2286 = vmatpush1.bf16.msra.mxu1 %v3676_v28  ;;  %2234 = vmatprep.subr.bf16.mxu0 %v3681_v29  ;;  %v3768_v28 = vld [vmem:[%s4057_s17 + $0x62c] ss:$16 sps:$4 sm:$0xff]   ;;  %v3763_v29 = vld [vmem:[%s4057_s17 + $0x428] ss:$16 sps:$4 sm:$0xff]  }
  0xe8   : > { %2287 = vmatprep.subr.bf16.mxu1 %v3684_v30  ;;  %v3766_v30 = vld [vmem:[%s4057_s17 + $0x628] ss:$16 sps:$4 sm:$0xff]  }
  0xea   : > { %2235 = vmatpush2.bf16.msra.mxu0 %v3679_v31  ;;  %v3771_v31 = vld [vmem:[%s4057_s17 + $0x40c] ss:$16 sps:$4 sm:$0xff]  }
  0xeb   : > { %2288 = vmatpush2.bf16.msra.mxu1 %v3682_v32  ;;  %2236 = vmatprep.subr.bf16.mxu0 %v3687_v33  ;;  %v3774_v32 = vld [vmem:[%s4057_s17 + $0x60c] ss:$16 sps:$4 sm:$0xff]   ;;  %v3769_v33 = vld [vmem:[%s4057_s17 + $0x408] ss:$16 sps:$4 sm:$0xff]  }
  0xec   : > { %2289 = vmatprep.subr.bf16.mxu1 %v3690_v34  ;;  %v3772_v34 = vld [vmem:[%s4057_s17 + $0x608] ss:$16 sps:$4 sm:$0xff]  }
  0xee   : > { %2237 = vmatpush2.bf16.msra.mxu0 %v3685_v35  ;;  %v3777_v35 = vld [vmem:[%s4057_s17 + $0x5ec] ss:$16 sps:$4 sm:$0xff]  }
  0xef   : > { %2290 = vmatpush2.bf16.msra.mxu1 %v3688_v36  ;;  %2238 = vmatprep.subr.bf16.mxu0 %v3693_v37  ;;  %v3780_v36 = vld [vmem:[%s4057_s17 + $0x7ec] ss:$16 sps:$4 sm:$0xff]   ;;  %v3775_v37 = vld [vmem:[%s4057_s17 + $0x5e8] ss:$16 sps:$4 sm:$0xff]  }
  0xf0   : > { %2291 = vmatprep.subr.bf16.mxu1 %v3696_v38  ;;  %v3778_v38 = vld [vmem:[%s4057_s17 + $0x7e8] ss:$16 sps:$4 sm:$0xff]  }
  0xf2   : > { %2239 = vmatpush2.bf16.msra.mxu0 %v3691_v39  ;;  %v3783_v39 = vld [vmem:[%s4057_s17 + $0x5cc] ss:$16 sps:$4 sm:$0xff]  }
  0xf3   : > { %2292 = vmatpush2.bf16.msra.mxu1 %v3694_v40  ;;  %2240 = vmatprep.subr.bf16.mxu0 %v3699_v41  ;;  %v3786_v40 = vld [vmem:[%s4057_s17 + $0x7cc] ss:$16 sps:$4 sm:$0xff]   ;;  %v3781_v41 = vld [vmem:[%s4057_s17 + $0x5c8] ss:$16 sps:$4 sm:$0xff]  }
  0xf4   : > { %2293 = vmatprep.subr.bf16.mxu1 %v3702_v42  ;;  %v3784_v42 = vld [vmem:[%s4057_s17 + $0x7c8] ss:$16 sps:$4 sm:$0xff]  }
  0xf6   : > { %2241 = vmatpush2.bf16.msra.mxu0 %v3697_v43  ;;  %v3789_v43 = vld [vmem:[%s4057_s17 + $0x5ac] ss:$16 sps:$4 sm:$0xff]  }
  0xf7   : > { %2294 = vmatpush2.bf16.msra.mxu1 %v3700_v44  ;;  %2242 = vmatprep.subr.bf16.mxu0 %v3705_v45  ;;  %v3792_v44 = vld [vmem:[%s4057_s17 + $0x7ac] ss:$16 sps:$4 sm:$0xff]   ;;  %v3787_v45 = vld [vmem:[%s4057_s17 + $0x5a8] ss:$16 sps:$4 sm:$0xff]  }
  0xf8   : > { %2295 = vmatprep.subr.bf16.mxu1 %v3708_v46  ;;  %v3790_v46 = vld [vmem:[%s4057_s17 + $0x7a8] ss:$16 sps:$4 sm:$0xff]  }
  0xfa   : > { %2243 = vmatpush2.bf16.msra.mxu0 %v3703_v47  ;;  %v3795_v47 = vld [vmem:[%s4057_s17 + $0x58c] ss:$16 sps:$4 sm:$0xff]  }
  0xfb   : > { %2296 = vmatpush2.bf16.msra.mxu1 %v3706_v48  ;;  %2244 = vmatprep.subr.bf16.mxu0 %v3711_v55  ;;  %v3798_v48 = vld [vmem:[%s4057_s17 + $0x78c] ss:$16 sps:$4 sm:$0xff]   ;;  %v3793_v55 = vld [vmem:[%s4057_s17 + $0x588] ss:$16 sps:$4 sm:$0xff]  }
  0xfc   : > { %2297 = vmatprep.subr.bf16.mxu1 %v3714_v56  ;;  %v3796_v56 = vld [vmem:[%s4057_s17 + $0x788] ss:$16 sps:$4 sm:$0xff]  }
  0xfe   : > { %2245 = vmatpush2.bf16.msra.mxu0 %v3709_v57  ;;  %v3801_v57 = vld [vmem:[%s4057_s17 + $0x56c] ss:$16 sps:$4 sm:$0xff]  }
  0xff   : > { %2298 = vmatpush2.bf16.msra.mxu1 %v3712_v58  ;;  %2246 = vmatprep.subr.bf16.mxu0 %v3717_v61  ;;  %v3804_v58 = vld [vmem:[%s4057_s17 + $0x76c] ss:$16 sps:$4 sm:$0xff]   ;;  %v3799_v61 = vld [vmem:[%s4057_s17 + $0x568] ss:$16 sps:$4 sm:$0xff]  }
 0x100   : > { %2299 = vmatprep.subr.bf16.mxu1 %v3720_v62  ;;  %v3802_v62 = vld [vmem:[%s4057_s17 + $0x768] ss:$16 sps:$4 sm:$0xff]  }
 0x102   : > { %2247 = vmatpush2.bf16.msra.mxu0 %v3715_v63  ;;  %v3807_v63 = vld [vmem:[%s4057_s17 + $0x54c] ss:$16 sps:$4 sm:$0xff]  }
 0x103   : > { %2300 = vmatpush2.bf16.msra.mxu1 %v3718_v0  ;;  %2248 = vmatprep.subr.bf16.mxu0 %v3723_v3  ;;  %v3810_v0 = vld [vmem:[%s4057_s17 + $0x74c] ss:$16 sps:$4 sm:$0xff]   ;;  %v3805_v3 = vld [vmem:[%s4057_s17 + $0x548] ss:$16 sps:$4 sm:$0xff]  }
 0x104   : > { %2301 = vmatprep.subr.bf16.mxu1 %v3726_v5  ;;  %v3808_v5 = vld [vmem:[%s4057_s17 + $0x748] ss:$16 sps:$4 sm:$0xff]  }
 0x106   : > { %2249 = vmatpush2.bf16.msra.mxu0 %v3721_v9  ;;  %v3813_v9 = vld [vmem:[%s4057_s17 + $0x52c] ss:$16 sps:$4 sm:$0xff]  }
 0x107   : > { %2302 = vmatpush2.bf16.msra.mxu1 %v3724_v10  ;;  %2324 = vmatprep.subr.bf16.mxu0 %v3729_v11  ;;  %v3816_v10 = vld [vmem:[%s4057_s17 + $0x72c] ss:$16 sps:$4 sm:$0xff]   ;;  %v3811_v11 = vld [vmem:[%s4057_s17 + $0x528] ss:$16 sps:$4 sm:$0xff]  }
 0x108   : > { %2377 = vmatprep.subr.bf16.mxu1 %v3732_v12  ;;  %v3814_v12 = vld [vmem:[%s4057_s17 + $0x728] ss:$16 sps:$4 sm:$0xff]  }
 0x109   : > { %2251 = vmatmul.mubr.bf16.vlgmr.msra.gmra.mxu0 %v4140_v25  ;;  %v3739_v25 = vld [vmem:[%s4057_s17 + $0x4a8] ss:$16 sps:$4 sm:$0xff]  }
 0x10a   : > { %2304 = vmatmul.mubr.bf16.vlgmr.msra.gmra.mxu1 %v4142_v26  ;;  %2325 = vmatpush1.bf16.msra.mxu0 %v3727_v13  ;;  %v3742_v26 = vld [vmem:[%s4057_s17 + $0x6a8] ss:$16 sps:$4 sm:$0xff]   ;;  %v3819_v13 = vld [vmem:[%s4057_s17 + $0x50c] ss:$16 sps:$4 sm:$0xff]  }
 0x10b   : > { %2378 = vmatpush1.bf16.msra.mxu1 %v3730_v14  ;;  %2326 = vmatprep.subr.bf16.mxu0 %v3735_v15  ;;  %v3822_v14 = vld [vmem:[%s4057_s17 + $0x70c] ss:$16 sps:$4 sm:$0xff]   ;;  %v3817_v15 = vld [vmem:[%s4057_s17 + $0x508] ss:$16 sps:$4 sm:$0xff]  }
 0x10c   : > { %2379 = vmatprep.subr.bf16.mxu1 %v3738_v16  ;;  %2260 = vmatprep.mubr.bf16.mxu0 %v4169_v50  ;;  %v3745_v50 = vld [vmem:[%s4057_s17 + $0x488] ss:$16 sps:$4 sm:$0xff]  }
 0x10d   : > { %2313 = vmatprep.mubr.bf16.mxu1 %v4171_v51  ;;  %v3748_v51 = vld [vmem:[%s4057_s17 + $0x688] ss:$16 sps:$4 sm:$0xff]  }
 0x10e   : > { %2327 = vmatpush1.bf16.msra.mxu0 %v3733_v17  ;;  %v3820_v16 = vld [vmem:[%s4057_s17 + $0x708] ss:$16 sps:$4 sm:$0xff]  }
 0x10f   : > { %2380 = vmatpush1.bf16.msra.mxu1 %v3736_v18  ;;  %2328 = vmatprep.subr.bf16.mxu0 %v3741_v19 }
 0x110   : > { %2381 = vmatprep.subr.bf16.mxu1 %v3744_v20 }
 0x111   : > { %2261 = vmatmul.mubr.bf16.gmra.mxu0 %v4173_v52  ;;  %v3751_v52 = vld [vmem:[%s4057_s17 + $0x468] ss:$16 sps:$4 sm:$0xff]  }
 0x112   : > { %2314 = vmatmul.mubr.bf16.gmra.mxu1 %v4176_v54  ;;  %2329 = vmatpush1.bf16.msra.mxu0 %v3739_v25  ;;  %v3754_v54 = vld [vmem:[%s4057_s17 + $0x668] ss:$16 sps:$4 sm:$0xff]  }
 0x113   : > { %2382 = vmatpush1.bf16.msra.mxu1 %v3742_v26  ;;  %2330 = vmatprep.subr.bf16.mxu0 %v3747_v6 }
 0x114   : > { %2383 = vmatprep.subr.bf16.mxu1 %v3750_v8  ;;  %2356 = vmatprep.mubr.bf16.mxu0 %v4201_v2  ;;  %v3760_v2 = vld [vmem:[%s4057_s17 + $0x648] ss:$16 sps:$4 sm:$0xff]  }
 0x115   : > { %2409 = vmatprep.mubr.bf16.mxu1 %v4208_v4  ;;  %v3765_v4 = vld [vmem:[%s4057_s17 + $0x42c] ss:$16 sps:$4 sm:$0xff]  }
 0x116   : > { %2331 = vmatpush1.bf16.msra.mxu0 %v3745_v50 }
 0x117   : > { %2384 = vmatpush1.bf16.msra.mxu1 %v3748_v51  ;;  %2332 = vmatprep.subr.bf16.mxu0 %v3753_v21 }
 0x118   : > { %2385 = vmatprep.subr.bf16.mxu1 %v3756_v22 }
 0x11a   : > { %2333 = vmatpush1.bf16.msra.mxu0 %v3751_v52 }
 0x11b   : > { %2386 = vmatpush1.bf16.msra.mxu1 %v3754_v54  ;;  %2334 = vmatprep.subr.bf16.mxu0 %v3759_v23 }
 0x11c   : > { %2387 = vmatprep.subr.bf16.mxu1 %v3762_v24  ;;  %v358_v24 = vld [vmem:[#allocation2 + $0x30] sm:$0xff] }
 0x11e   : > { %2335 = vmatpush1.bf16.msra.mxu0 %v3757_v27 }
 0x11f   : > { %2388 = vmatpush1.bf16.msra.mxu1 %v3760_v2  ;;  %2336 = vmatprep.subr.bf16.mxu0 %v3765_v4 }
 0x120   : > { %2389 = vmatprep.subr.bf16.mxu1 %v3768_v28 }
 0x122   : > { %2337 = vmatpush1.bf16.msra.mxu0 %v3763_v29 }
 0x123   : > { %2390 = vmatpush1.bf16.msra.mxu1 %v3766_v30  ;;  %2338 = vmatprep.subr.bf16.mxu0 %v3771_v31  ;;  %v359_v30 = vld [vmem:[#allocation2] sm:$0xff] }
 0x124   : > { %2391 = vmatprep.subr.bf16.mxu1 %v3774_v32 }
 0x126   : > { %2339 = vmatpush1.bf16.msra.mxu0 %v3769_v33 }
 0x127   : > { %2392 = vmatpush1.bf16.msra.mxu1 %v3772_v34  ;;  %2340 = vmatprep.subr.bf16.mxu0 %v3777_v35 }
 0x128   : > { %2393 = vmatprep.subr.bf16.mxu1 %v3780_v36 }
 0x12a   : > { %2341 = vmatpush2.bf16.msra.mxu0 %v3775_v37  ;;  %v362_v37 = vld [vmem:[#allocation2 + $0x50] sm:$0xff] }
 0x12b   : > { %2394 = vmatpush2.bf16.msra.mxu1 %v3778_v38  ;;  %2342 = vmatprep.subr.bf16.mxu0 %v3783_v39 }
 0x12c   : > { %2395 = vmatprep.subr.bf16.mxu1 %v3786_v40 }
 0x12e   : > { %2343 = vmatpush2.bf16.msra.mxu0 %v3781_v41 }
 0x12f   : > { %2396 = vmatpush2.bf16.msra.mxu1 %v3784_v42  ;;  %2344 = vmatprep.subr.bf16.mxu0 %v3789_v43 }
 0x130   : > { %2397 = vmatprep.subr.bf16.mxu1 %v3792_v44  ;;  %v363_v44 = vld [vmem:[#allocation2 + $0x68] sm:$0xff] }
 0x132   : > { %2345 = vmatpush2.bf16.msra.mxu0 %v3787_v45 }
 0x133   : > { %2398 = vmatpush2.bf16.msra.mxu1 %v3790_v46  ;;  %2346 = vmatprep.subr.bf16.mxu0 %v3795_v47 }
 0x134   : > { %2399 = vmatprep.subr.bf16.mxu1 %v3798_v48 }
 0x136   : > { %2347 = vmatpush2.bf16.msra.mxu0 %v3793_v55 }
 0x137   : > { %2400 = vmatpush2.bf16.msra.mxu1 %v3796_v56  ;;  %2348 = vmatprep.subr.bf16.mxu0 %v3801_v57 }
 0x138   : > { %2401 = vmatprep.subr.bf16.mxu1 %v3804_v58  ;;  %v366_v58 = vld [vmem:[#allocation2 + $0x40] sm:$0xff] }
 0x13a   : > { %2349 = vmatpush2.bf16.msra.mxu0 %v3799_v61 }
 0x13b   : > { %2402 = vmatpush2.bf16.msra.mxu1 %v3802_v62  ;;  %2350 = vmatprep.subr.bf16.mxu0 %v3807_v63 }
 0x13c   : > { %2403 = vmatprep.subr.bf16.mxu1 %v3810_v0 }
 0x13e   : > { %2351 = vmatpush2.bf16.msra.mxu0 %v3805_v3 }
 0x13f   : > { %2404 = vmatpush2.bf16.msra.mxu1 %v3808_v5  ;;  %2352 = vmatprep.subr.bf16.mxu0 %v3813_v9  ;;  %v367_v9 = vld [vmem:[#allocation2 + $0x20] sm:$0xff] }
 0x140   : > { %2405 = vmatprep.subr.bf16.mxu1 %v3816_v10 }
 0x142   : > { %2353 = vmatpush2.bf16.msra.mxu0 %v3811_v11 }
 0x143   : > { %2406 = vmatpush2.bf16.msra.mxu1 %v3814_v12  ;;  %2354 = vmatprep.subr.bf16.mxu0 %v3819_v13 }
 0x144   : > { %2407 = vmatprep.subr.bf16.mxu1 %v3822_v14 }
 0x146   : > { %2355 = vmatpush2.bf16.msra.mxu0 %v3817_v15 }
 0x147   : > { %2408 = vmatpush2.bf16.msra.mxu1 %v3820_v16  ;;  %v370_v16 = vld [vmem:[#allocation2 + $0x60] sm:$0xff] }
 0x149   : > { %2357 = vmatmul.mubr.bf16.vlgmr.msra.gmra.mxu0 %v4254_v49  ;;  %v2040_v17 = vpop.f32.mrf.mxu0 }
 0x14a   : > { %2410 = vmatmul.mubr.bf16.vlgmr.msra.gmra.mxu1 %v4258_v53  ;;  %2366 = vmatprep.mubr.bf16.mxu0 %v4264_v59  ;;  %v2093_v18 = vpop.f32.mrf.mxu1 }
 0x14b   : > { %2419 = vmatprep.mubr.bf16.mxu1 %v4266_v60  ;;  %v2042_v19 = vpop.f32.mrf.mxu0  ;;  %v2094_v52 = vadd.f32 %v2093_v18, %v2040_v17 }
 0x14c   : > { %v2095_v20 = vpop.f32.mrf.mxu1 }
 0x14d   : > { %v2044_v25 = vpop.f32.mrf.mxu0 }
 0x14e   : > { %v2097_v26 = vpop.f32.mrf.mxu1 }
 0x14f   : > { %v2046_v6 = vpop.f32.mrf.mxu0  ;;  %v2098_v4 = vadd.f32 %v2097_v26, %v2044_v25  ;;  %v371_v25 = vld [vmem:[#allocation2 + $0x70] sm:$0xff] }
 0x150   : > { %v2099_v8 = vpop.f32.mrf.mxu1 }
 0x151   : > { %2367 = vmatmul.mubr.bf16.gmra.mxu0 %v4276_v1  ;;  %v2050_v50 = vpop.f32.mrf.mxu0  ;;  %v2100_v33 = vadd.f32 %v2099_v8, %v2046_v6 }
 0x152   : > { %2420 = vmatmul.mubr.bf16.gmra.mxu1 %v4280_v7  ;;  %v2103_v49 = vpop.f32.mrf.mxu1  ;;  %v2096_v7 = vadd.f32 %v2095_v20, %v2042_v19 }
 0x153   : > { %v2052_v51 = vpop.f32.mrf.mxu0  ;;  %v2104_v40 = vadd.f32 %v2103_v49, %v2050_v50 }
 0x154   : > { %v2105_v53 = vpop.f32.mrf.mxu1 }
 0x155   : > { %v2054_v21 = vpop.f32.mrf.mxu0  ;;  %v2106_v47 = vadd.f32 %v2105_v53, %v2052_v51 }
 0x156   : > { %v2107_v59 = vpop.f32.mrf.mxu1 }
 0x157   : > { %v2056_v22 = vpop.f32.mrf.mxu0  ;;  %v2108_v62 = vadd.f32 %v2107_v59, %v2054_v21 }
 0x158   : > { %v2109_v60 = vpop.f32.mrf.mxu1 }
 0x159   : > { %v2110_v11 = vadd.f32 %v2109_v60, %v2056_v22 }
 0x189   : > { %v2146_v1 = vpop.f32.mrf.mxu0 }
 0x18a   : > { %v2199_v54 = vpop.f32.mrf.mxu1  ;;  %v2147_v23 = vadd.f32 %v2146_v1, %v2094_v52 }
 0x18b   : > { %v2148_v27 = vpop.f32.mrf.mxu0 }
 0x18c   : > { %v2201_v2 = vpop.f32.mrf.mxu1  ;;  %v2200_v28 = vadd.f32 %v2199_v54, %v2147_v23  ;;  %v2149_v29 = vadd.f32 %v2148_v27, %v2096_v7 }
 0x18d   : > { %v2150_v31 = vpop.f32.mrf.mxu0 }
 0x18e   : > { %v2203_v32 = vpop.f32.mrf.mxu1  ;;  %v2430_v34 = vadd.f32 %v2200_v28, %v358_v24  ;;  %v2202_v35 = vadd.f32 %v2201_v2, %v2149_v29  ;;  %v2151_v36 = vadd.f32 %v2150_v31, %v2098_v4 }
 0x18f   : > { %v2152_v38 = vpop.f32.mrf.mxu0 }
 0x190   : > { %v2205_v39 = vpop.f32.mrf.mxu1  ;;  %2446 = vst [vmem:[#allocation2 + $0x30] sm:$0xff] %v2430_v34  ;;  %v2431_v41 = vadd.f32 %v2202_v35, %v359_v30  ;;  %v2204_v42 = vadd.f32 %v2203_v32, %v2151_v36  ;;  %v2153_v43 = vadd.f32 %v2152_v38, %v2100_v33  ;;  %v360_v32 = vld [vmem:[#allocation2 + $0x58] sm:$0xff] }
 0x191   : > { %v2156_v45 = vpop.f32.mrf.mxu0  ;;  %v361_v38 = vld [vmem:[#allocation2 + $0x18] sm:$0xff] }
 0x192   : > { %v2209_v46 = vpop.f32.mrf.mxu1  ;;  %2447 = vst [vmem:[#allocation2] sm:$0xff] %v2431_v41  ;;  %v2434_v48 = vadd.f32 %v2204_v42, %v362_v37  ;;  %v2206_v55 = vadd.f32 %v2205_v39, %v2153_v43  ;;  %v2157_v56 = vadd.f32 %v2156_v45, %v2104_v40  ;;  %v364_v45 = vld [vmem:[#allocation2 + $0x8] sm:$0xff] }
 0x193   : > { %v2158_v57 = vpop.f32.mrf.mxu0 }
 0x194   : > { %v2211_v61 = vpop.f32.mrf.mxu1  ;;  %2450 = vst [vmem:[#allocation2 + $0x50] sm:$0xff] %v2434_v48  ;;  %v2435_v63 = vadd.f32 %v2206_v55, %v363_v44  ;;  %v2159_v0 = vadd.f32 %v2158_v57, %v2106_v47  ;;  %v2210_v3 = vadd.f32 %v2209_v46, %v2157_v56 }
 0x195   : > { %v2160_v5 = vpop.f32.mrf.mxu0 }
 0x196   : > { %v2213_v10 = vpop.f32.mrf.mxu1  ;;  %2451 = vst [vmem:[#allocation2 + $0x68] sm:$0xff] %v2435_v63  ;;  %v2438_v12 = vadd.f32 %v2210_v3, %v366_v58  ;;  %v2161_v13 = vadd.f32 %v2160_v5, %v2108_v62  ;;  %v2212_v14 = vadd.f32 %v2211_v61, %v2159_v0  ;;  %v365_v58 = vld [vmem:[#allocation2 + $0x48] sm:$0xff] }
 0x197   : > { %v2162_v15 = vpop.f32.mrf.mxu0 }
 0x198   : > { %v2215_v17 = vpop.f32.mrf.mxu1  ;;  %2454 = vst [vmem:[#allocation2 + $0x40] sm:$0xff] %v2438_v12  ;;  %v2439_v18 = vadd.f32 %v2212_v14, %v367_v9  ;;  %v2163_v19 = vadd.f32 %v2162_v15, %v2110_v11  ;;  %v2214_v20 = vadd.f32 %v2213_v10, %v2161_v13  ;;  %v368_v9 = vld [vmem:[#allocation2 + $0x10] sm:$0xff] }
 0x19a   : > { %2455 = vst [vmem:[#allocation2 + $0x20] sm:$0xff] %v2439_v18  ;;  %v2442_v26 = vadd.f32 %v2214_v20, %v370_v16  ;;  %v2216_v6 = vadd.f32 %v2215_v17, %v2163_v19  ;;  %v369_v16 = vld [vmem:[#allocation2 + $0x38] sm:$0xff] }
 0x19c   : > { %2458 = vst [vmem:[#allocation2 + $0x60] sm:$0xff] %v2442_v26  ;;  %v2443_v8 = vadd.f32 %v2216_v6, %v371_v25  ;;  %v372_v6 = vld [vmem:[#allocation2 + $0x78] sm:$0xff] }
 0x19e   : > { %2459 = vst [vmem:[#allocation2 + $0x70] sm:$0xff] %v2443_v8 }
 0x1c9   : > { %v2252_v50 = vpop.f32.mrf.mxu0 }
 0x1ca   : > { %v2305_v49 = vpop.f32.mrf.mxu1 }
 0x1cb   : > { %v2254_v51 = vpop.f32.mrf.mxu0  ;;  %v2306_v4 = vadd.f32 %v2305_v49, %v2252_v50 }
 0x1cc   : > { %v2307_v53 = vpop.f32.mrf.mxu1 }
 0x1cd   : > { %v2256_v21 = vpop.f32.mrf.mxu0  ;;  %v2308_v30 = vadd.f32 %v2307_v53, %v2254_v51  ;;  %v373_v53 = vld [vmem:[#allocation2 + $0x28] sm:$0xff] }
 0x1ce   : > { %v2309_v59 = vpop.f32.mrf.mxu1 }
 0x1cf   : > { %v2258_v22 = vpop.f32.mrf.mxu0  ;;  %v2310_v35 = vadd.f32 %v2309_v59, %v2256_v21 }
 0x1d0   : > { %v2311_v60 = vpop.f32.mrf.mxu1 }
 0x1d1   : > { %v2262_v52 = vpop.f32.mrf.mxu0  ;;  %v2312_v41 = vadd.f32 %v2311_v60, %v2258_v22 }
 0x1d2   : > { %v2315_v1 = vpop.f32.mrf.mxu1 }
 0x1d3   : > { %v2264_v54 = vpop.f32.mrf.mxu0  ;;  %v2316_v48 = vadd.f32 %v2315_v1, %v2262_v52 }
 0x1d4   : > { %v2317_v7 = vpop.f32.mrf.mxu1 }
 0x1d5   : > { %v2266_v23 = vpop.f32.mrf.mxu0  ;;  %v2318_v63 = vadd.f32 %v2317_v7, %v2264_v54 }
 0x1d6   : > { %v2319_v24 = vpop.f32.mrf.mxu1 }
 0x1d7   : > { %v2268_v27 = vpop.f32.mrf.mxu0  ;;  %v2320_v12 = vadd.f32 %v2319_v24, %v2266_v23 }
 0x1d8   : > { %v2321_v2 = vpop.f32.mrf.mxu1 }
 0x1d9   : > { %v2322_v19 = vadd.f32 %v2321_v2, %v2268_v27 }
 0x209   : > { %v2358_v28 = vpop.f32.mrf.mxu0 }
 0x20a   : > { %v2411_v29 = vpop.f32.mrf.mxu1  ;;  %v2359_v31 = vadd.f32 %v2358_v28, %v2306_v4 }
 0x20b   : > { %v2360_v33 = vpop.f32.mrf.mxu0 }
 0x20c   : > { %v2413_v34 = vpop.f32.mrf.mxu1  ;;  %v2412_v36 = vadd.f32 %v2411_v29, %v2359_v31  ;;  %v2361_v37 = vadd.f32 %v2360_v33, %v2308_v30 }
 0x20d   : > { %v2362_v39 = vpop.f32.mrf.mxu0 }
 0x20e   : > { %v2415_v40 = vpop.f32.mrf.mxu1  ;;  %v2432_v42 = vadd.f32 %v2412_v36, %v360_v32  ;;  %v2414_v43 = vadd.f32 %v2413_v34, %v2361_v37  ;;  %v2363_v44 = vadd.f32 %v2362_v39, %v2310_v35 }
 0x20f   : > { %v2364_v46 = vpop.f32.mrf.mxu0 }
 0x210   : > { %v2417_v47 = vpop.f32.mrf.mxu1  ;;  %2448 = vst [vmem:[#allocation2 + $0x58] sm:$0xff] %v2432_v42  ;;  %v2433_v55 = vadd.f32 %v2414_v43, %v361_v38  ;;  %v2416_v56 = vadd.f32 %v2415_v40, %v2363_v44  ;;  %v2365_v57 = vadd.f32 %v2364_v46, %v2312_v41 }
 0x211   : > { %v2368_v61 = vpop.f32.mrf.mxu0 }
 0x212   : > { %v2421_v62 = vpop.f32.mrf.mxu1  ;;  %2449 = vst [vmem:[#allocation2 + $0x18] sm:$0xff] %v2433_v55  ;;  %v2436_v0 = vadd.f32 %v2416_v56, %v364_v45  ;;  %v2418_v3 = vadd.f32 %v2417_v47, %v2365_v57  ;;  %v2369_v5 = vadd.f32 %v2368_v61, %v2316_v48 }
 0x213   : > { %v2370_v10 = vpop.f32.mrf.mxu0 }
 0x214   : > { %v2423_v11 = vpop.f32.mrf.mxu1  ;;  %2452 = vst [vmem:[#allocation2 + $0x8] sm:$0xff] %v2436_v0  ;;  %v2437_v13 = vadd.f32 %v2418_v3, %v365_v58  ;;  %v2422_v14 = vadd.f32 %v2421_v62, %v2369_v5  ;;  %v2371_v15 = vadd.f32 %v2370_v10, %v2318_v63 }
 0x215   : > { %v2372_v17 = vpop.f32.mrf.mxu0 }
 0x216   : > { %v2425_v18 = vpop.f32.mrf.mxu1  ;;  %2453 = vst [vmem:[#allocation2 + $0x48] sm:$0xff] %v2437_v13  ;;  %v2440_v20 = vadd.f32 %v2422_v14, %v368_v9  ;;  %v2424_v25 = vadd.f32 %v2423_v11, %v2371_v15  ;;  %v2373_v26 = vadd.f32 %v2372_v17, %v2320_v12 }
 0x217   : > { %v2374_v8 = vpop.f32.mrf.mxu0 }
 0x218   : > { %2456 = vst [vmem:[#allocation2 + $0x10] sm:$0xff] %v2440_v20  ;;  %v2441_v50 = vadd.f32 %v2424_v25, %v369_v16  ;;  %v2426_v49 = vadd.f32 %v2425_v18, %v2373_v26  ;;  %v2375_v51 = vadd.f32 %v2374_v8, %v2322_v19  ;;  %v2427_v21 = vpop.f32.mrf.mxu1 }
 0x21a   : > { %2457 = vst [vmem:[#allocation2 + $0x38] sm:$0xff] %v2441_v50  ;;  %v2444_v59 = vadd.f32 %v2426_v49, %v372_v6  ;;  %v2428_v22 = vadd.f32 %v2427_v21, %v2375_v51  ;;  %2465 = sbr.rel (%p3289_p6) target bundleno = 791 (0x317), region = 75 }
 0x21c   : > { %2460 = vst [vmem:[#allocation2 + $0x78] sm:$0xff] %v2444_v59  ;;  %v2445_v60 = vadd.f32 %v2428_v22, %v373_v53 }
 0x21e   : > { %2461 = vst [vmem:[#allocation2 + $0x28] sm:$0xff] %v2445_v60 }
 0x21f   : > { %v3823_v52 = vld [vmem:[%s4552_s3 + $0x78] sm:$0xff]   ;;  %v3827_v23 = vld [vmem:[%s4552_s3 + $0x70] sm:$0xff]   ;;  %v3831_v4 = vld [vmem:[%s4552_s3 + $0x68] sm:$0xff]   ;;  %v2484_v38 = vlaneseq }
 0x220   : > { %v3824_v1 = vld [vmem:[%s4552_s3 + $0xf8] sm:$0xff]   ;;  %3330 = vmatprep.subr.bf16.mxu0 %v3823_v52  ;;  %v3828_v24 = vld [vmem:[%s4552_s3 + $0xf0] sm:$0xff]   ;;  %v3832_v28 = vld [vmem:[%s4552_s3 + $0xe8] sm:$0xff]  }
 0x221   : > { %v3825_v54 = vld [vmem:[%s4552_s3 + $0x38] sm:$0xff]   ;;  %3358 = vmatprep.subr.bf16.mxu1 %v3824_v1  ;;  %v3829_v27 = vld [vmem:[%s4552_s3 + $0x30] sm:$0xff]   ;;  %v3833_v29 = vld [vmem:[%s4552_s3 + $0x28] sm:$0xff]   ;;  %v2485_v43 = vshrl.u32 %v2484_v38, 7 }
 0x222   : > { %v3826_v7 = vld [vmem:[%s4552_s3 + $0xb8] sm:$0xff]   ;;  %3331 = vmatpush3.bf16.msra.mxu0 %v3825_v54  ;;  %v3830_v2 = vld [vmem:[%s4552_s3 + $0xb0] sm:$0xff]   ;;  %v3834_v30 = vld [vmem:[%s4552_s3 + $0xa8] sm:$0xff]  }
 0x223   : > { %3359 = vmatpush3.bf16.msra.mxu1 %v3826_v7  ;;  %3332 = vmatprep.subr.bf16.mxu0 %v3827_v23  ;;  %v3835_v31 = vld [vmem:[%s4552_s3 + $0x60] sm:$0xff]   ;;  %v3839_v35 = vld [vmem:[%s4552_s3 + $0x58] sm:$0xff]   ;;  %v3843_v40 = vld [vmem:[%s4552_s3 + $0x50] sm:$0xff]   ;;  %v2490_v48 = vsub.s32 1, %v2485_v43  ;;  %v2498_v56 = vsub.s32 3, %v2485_v43  ;;  %v2486_v58 = vsub.s32 0, %v2485_v43 }
 0x224   : > { %3360 = vmatprep.subr.bf16.mxu1 %v3828_v24  ;;  %v3836_v32 = vld [vmem:[%s4552_s3 + $0xe0] sm:$0xff]   ;;  %v3840_v36 = vld [vmem:[%s4552_s3 + $0xd8] sm:$0xff]   ;;  %v3844_v41 = vld [vmem:[%s4552_s3 + $0xd0] sm:$0xff]   ;;  %v2494_v62 = vsub.s32 2, %v2485_v43 }
 0x225   : > { %v3837_v33 = vld [vmem:[%s4552_s3 + $0x20] sm:$0xff]   ;;  %v3841_v37 = vld [vmem:[%s4552_s3 + $0x18] sm:$0xff]   ;;  %v3845_v42 = vld [vmem:[%s4552_s3 + $0x10] sm:$0xff]  }
 0x226   : > { %3333 = vmatpush3.bf16.msra.mxu0 %v3829_v27  ;;  %v3838_v34 = vld [vmem:[%s4552_s3 + $0xa0] sm:$0xff]   ;;  %v3842_v39 = vld [vmem:[%s4552_s3 + $0x98] sm:$0xff]   ;;  %v3846_v44 = vld [vmem:[%s4552_s3 + $0x90] sm:$0xff]  }
 0x227   : > { %3361 = vmatpush3.bf16.msra.mxu1 %v3830_v2  ;;  %3334 = vmatprep.subr.bf16.mxu0 %v3831_v4  ;;  %v3847_v45 = vld [vmem:[%s4552_s3 + $0x48] sm:$0xff]   ;;  %v3851_v57 = vld [vmem:[%s4552_s3 + $0x40] sm:$0xff]   ;;  %v2469_v11 = vld [vmem:[#allocation2 + $0x18] sm:$0xff] }
 0x228   : > { %3362 = vmatprep.subr.bf16.mxu1 %v3832_v28  ;;  %v3848_v46 = vld [vmem:[%s4552_s3 + $0xc8] sm:$0xff]   ;;  %v3852_v61 = vld [vmem:[%s4552_s3 + $0xc0] sm:$0xff]   ;;  %v2466_v14 = vld [vmem:[#allocation2 + $0x30] sm:$0xff] }
 0x229   : > { %v3849_v47 = vld [vmem:[%s4552_s3 + $0x8] sm:$0xff]   ;;  %v3853_v63 = vld [vmem:[%s4552_s3] sm:$0xff]   ;;  %v2470_v17 = vld [vmem:[#allocation2 + $0x50] sm:$0xff] }
 0x22a   : > { %3335 = vmatpush3.bf16.msra.mxu0 %v3833_v29  ;;  %v3850_v55 = vld [vmem:[%s4552_s3 + $0x88] sm:$0xff]   ;;  %v3854_v0 = vld [vmem:[%s4552_s3 + $0x80] sm:$0xff]   ;;  %v2468_v18 = vld [vmem:[#allocation2 + $0x58] sm:$0xff] }
 0x22b   : > { %3363 = vmatpush3.bf16.msra.mxu1 %v3834_v30  ;;  %3336 = vmatprep.subr.bf16.mxu0 %v3835_v31  ;;  %v2467_v3 = vld [vmem:[#allocation2] sm:$0xff]  ;;  %v2471_v5 = vld [vmem:[#allocation2 + $0x68] sm:$0xff]  ;;  %v2479_v21 = vld [vmem:[#allocation2 + $0x70] sm:$0xff] }
 0x22c   : > { %3364 = vmatprep.subr.bf16.mxu1 %v3836_v32  ;;  %v2482_v9 = vld [vmem:[%s4551_s2] sm:$0xf]  ;;  %v2473_v12 = vld [vmem:[#allocation2 + $0x48] sm:$0xff]  ;;  %v2477_v1 = vld [vmem:[#allocation2 + $0x38] sm:$0xff] }
 0x22d   : > { %v2491_v10 = vrot.slane %v2482_v9, %v2490_v48  ;;  %v2499_v13 = vrot.slane %v2482_v9, %v2498_v56  ;;  %v2487_v15 = vrot.slane %v2482_v9, %v2486_v58  ;;  %v2495_v16 = vrot.slane %v2482_v9, %v2494_v62  ;;  %v2472_v19 = vld [vmem:[#allocation2 + $0x8] sm:$0xff]  ;;  %v2475_v53 = vld [vmem:[#allocation2 + $0x20] sm:$0xff]  ;;  %v2476_v32 = vld [vmem:[#allocation2 + $0x10] sm:$0xff] }
 0x22e   : > { %3337 = vmatpush3.bf16.msra.mxu0 %v3837_v33  ;;  %v2481_v54 = vld [vmem:[#allocation2 + $0x28] sm:$0xff]  ;;  %v2474_v2 = vld [vmem:[#allocation2 + $0x40] sm:$0xff]  ;;  %v2480_v33 = vld [vmem:[#allocation2 + $0x78] sm:$0xff] }
 0x22f   : > { %3365 = vmatpush3.bf16.msra.mxu1 %v3838_v34  ;;  %3338 = vmatprep.subr.bf16.mxu0 %v3839_v35  ;;  %v2505_v20 = vadd.f32 %v2491_v10, %v2467_v3  ;;  %v2509_v25 = vadd.f32 %v2491_v10, %v2471_v5  ;;  %v2507_v26 = vadd.f32 %v2499_v13, %v2469_v11  ;;  %v2478_v4 = vld [vmem:[#allocation2 + $0x60] sm:$0xff] }
 0x230   : > { %3366 = vmatprep.subr.bf16.mxu1 %v3840_v36  ;;  %v2511_v6 = vadd.f32 %v2499_v13, %v2473_v12  ;;  %v2504_v8 = vadd.f32 %v2487_v15, %v2466_v14  ;;  %v2508_v50 = vadd.f32 %v2487_v15, %v2470_v17  ;;  %v2506_v49 = vadd.f32 %v2495_v16, %v2468_v18 }
 0x231   : > { %v2510_v51 = vadd.f32 %v2495_v16, %v2472_v19  ;;  %v2521_v59 = vmax.f32 %v2505_v20, 0.0  ;;  %v2525_v22 = vmax.f32 %v2509_v25, 0.0  ;;  %v2523_v60 = vmax.f32 %v2507_v26, 0.0 }
 0x232   : > { %3339 = vmatpush3.bf16.msra.mxu0 %v3841_v37  ;;  %v2527_v52 = vmax.f32 %v2511_v6, 0.0  ;;  %v2520_v7 = vmax.f32 %v2504_v8, 0.0  ;;  %v2524_v23 = vmax.f32 %v2508_v50, 0.0  ;;  %v2522_v24 = vmax.f32 %v2506_v49, 0.0 }
 0x233   : > { %3367 = vmatpush3.bf16.msra.mxu1 %v3842_v39  ;;  %3340 = vmatprep.subr.bf16.mxu0 %v3843_v40  ;;  %v2526_v27 = vmax.f32 %v2510_v51, 0.0  ;;  %v2537_v28 = vpack.c.bf16 %v2525_v22, %v2521_v59  ;;  %v2513_v30 = vadd.f32 %v2491_v10, %v2475_v53  ;;  %v2517_v31 = vadd.f32 %v2491_v10, %v2479_v21 }
 0x234   : > { %3368 = vmatprep.subr.bf16.mxu1 %v3844_v41  ;;  %v2539_v29 = vpack.c.bf16 %v2527_v52, %v2523_v60  ;;  %v2536_v34 = vpack.c.bf16 %v2524_v23, %v2520_v7  ;;  %v2515_v36 = vadd.f32 %v2499_v13, %v2477_v1  ;;  %v2519_v37 = vadd.f32 %v2499_v13, %v2481_v54 }
 0x235   : > { %v2538_v35 = vpack.c.bf16 %v2526_v27, %v2522_v24  ;;  %2839 = vmatprep.mubr.bf16.mxu0 %v2537_v28  ;;  %v2529_v38 = vmax.f32 %v2513_v30, 0.0  ;;  %v2533_v39 = vmax.f32 %v2517_v31, 0.0  ;;  %v2512_v40 = vadd.f32 %v2487_v15, %v2474_v2 }
 0x236   : > { %3341 = vmatpush3.bf16.msra.mxu0 %v3845_v42  ;;  %2888 = vmatprep.mubr.bf16.mxu1 %v2539_v29  ;;  %v2516_v41 = vadd.f32 %v2487_v15, %v2478_v4  ;;  %v2531_v42 = vmax.f32 %v2515_v36, 0.0  ;;  %v2535_v43 = vmax.f32 %v2519_v37, 0.0 }
 0x237   : > { %3369 = vmatpush3.bf16.msra.mxu1 %v3846_v44  ;;  %3342 = vmatprep.subr.bf16.mxu0 %v3847_v45  ;;  %v2514_v44 = vadd.f32 %v2495_v16, %v2476_v32  ;;  %v2518_v45 = vadd.f32 %v2495_v16, %v2480_v33 }
 0x238   : > { %3370 = vmatprep.subr.bf16.mxu1 %v3848_v46  ;;  %v2541_v46 = vpack.c.bf16 %v2533_v39, %v2529_v38  ;;  %v2532_v48 = vmax.f32 %v2516_v41, 0.0 }
 0x239   : > { %v2530_v56 = vmax.f32 %v2514_v44, 0.0 }
 0x23a   : > { %3343 = vmatpush3.bf16.msra.mxu0 %v3849_v47  ;;  %v2528_v47 = vmax.f32 %v2512_v40, 0.0 }
 0x23b   : > { %3371 = vmatpush3.bf16.msra.mxu1 %v3850_v55  ;;  %3344 = vmatprep.subr.bf16.mxu0 %v3851_v57  ;;  %v2543_v55 = vpack.c.bf16 %v2535_v43, %v2531_v42  ;;  %v2534_v57 = vmax.f32 %v2518_v45, 0.0 }
 0x23c   : > { %3372 = vmatprep.subr.bf16.mxu1 %v3852_v61  ;;  %v2540_v58 = vpack.c.bf16 %v2532_v48, %v2528_v47 }
 0x23d   : > { %v2542_v61 = vpack.c.bf16 %v2534_v57, %v2530_v56 }
 0x23e   : > { %3345 = vmatpush3.bf16.msra.mxu0 %v3853_v63 }
 0x23f   : > { %3373 = vmatpush3.bf16.msra.mxu1 %v3854_v0  ;;  %v3290_v0 = vld [vmem:[%s4553_s4] ss:$0 sm:$0xff] }
 0x241   : > { %2840 = vmatmul.mubr.bf16.vlgmr.msra.gmra.mxu0 %v2536_v34 }
 0x242   : > { %2889 = vmatmul.mubr.bf16.vlgmr.msra.gmra.mxu1 %v2538_v35  ;;  %2847 = vmatprep.mubr.bf16.mxu0 %v2541_v46 }
 0x243   : > { %2896 = vmatprep.mubr.bf16.mxu1 %v2543_v55 }
 0x249   : > { %2848 = vmatmul.mubr.bf16.gmra.mxu0 %v2540_v58 }
 0x24a   : > { %2897 = vmatmul.mubr.bf16.gmra.mxu1 %v2542_v61 }
 0x301   : > { %v3346_v62 = vpop.f32.mrf.mxu0 }
 0x302   : > { %v3374_v63 = vpop.f32.mrf.mxu1 }
 0x303   : > { %v3347_v3 = vpop.f32.mrf.mxu0 }
 0x304   : > { %v3375_v5 = vpop.f32.mrf.mxu1  ;;  %v3348_v9 = vadd.f32 %v3347_v3, %v3346_v62 }
 0x305   : > { %v3349_v10 = vpop.f32.mrf.mxu0  ;;  %v3376_v13 = vadd.f32 %v3375_v5, %v3374_v63 }
 0x306   : > { %v3377_v11 = vpop.f32.mrf.mxu1  ;;  %v2842_v12 = vadd.f32 %v3348_v9, %v3290_v0 }
 0x307   : > { %v3350_v14 = vpop.f32.mrf.mxu0 }
 0x308   : > { %v3378_v15 = vpop.f32.mrf.mxu1  ;;  %v2891_v16 = vadd.f32 %v3376_v13, %v2842_v12  ;;  %v3351_v17 = vadd.f32 %v3350_v14, %v3349_v10 }
 0x309   : > { %v3352_v18 = vpop.f32.mrf.mxu0  ;;  %v3379_v25 = vadd.f32 %v3378_v15, %v3377_v11 }
 0x30a   : > { %v3380_v19 = vpop.f32.mrf.mxu1  ;;  %2905 = vst [vmem:[%s4554_s5] sm:$0xff] %v2891_v16  ;;  %v2845_v20 = vadd.f32 %v3351_v17, %v3290_v0 }
 0x30b   : > { %v3353_v26 = vpop.f32.mrf.mxu0 }
 0x30c   : > { %v3381_v6 = vpop.f32.mrf.mxu1  ;;  %v2894_v8 = vadd.f32 %v3379_v25, %v2845_v20  ;;  %v3354_v50 = vadd.f32 %v3353_v26, %v3352_v18 }
 0x30d   : > { %v3355_v49 = vpop.f32.mrf.mxu0  ;;  %v3382_v21 = vadd.f32 %v3381_v6, %v3380_v19 }
 0x30e   : > { %v3383_v51 = vpop.f32.mrf.mxu1  ;;  %2906 = vst [vmem:[%s4554_s5 + $0x8] sm:$0xff] %v2894_v8  ;;  %v2850_v53 = vadd.f32 %v3354_v50, %v3290_v0 }
 0x30f   : > { %v3356_v59 = vpop.f32.mrf.mxu0 }
 0x310   : > { %v3384_v22 = vpop.f32.mrf.mxu1  ;;  %v2899_v60 = vadd.f32 %v3382_v21, %v2850_v53  ;;  %v3357_v52 = vadd.f32 %v3356_v59, %v3355_v49 }
 0x311   : > { %v3385_v54 = vadd.f32 %v3384_v22, %v3383_v51 }
 0x312   : > { %2907 = vst [vmem:[%s4554_s5 + $0x10] sm:$0xff] %v2899_v60  ;;  %v2853_v1 = vadd.f32 %v3357_v52, %v3290_v0 }
 0x314   : > { %v2902_v7 = vadd.f32 %v3385_v54, %v2853_v1 }
 0x316   : > { %2908 = vst [vmem:[%s4554_s5 + $0x18] sm:$0xff] %v2902_v7 }
 0x317 PF: > { %s18_s23 = sadd.s32 1, %s3931_s23   ;;  %s4557_s18 = smov %s3915_s19 }
 0x318   : > { %p15_p7 = scmp.ge.s32.totalorder %s18_s23, 20   ;;  %s4558_s19 = smov %s3919_s20 }
 0x319   : > { %s4559_s20 = smov %s4015_s30  ;;  %s4560_s21 = smov %s3927_s22 }
 0x31a   : > { %s4561_s22 = smov %s4563_s25  ;;  %17 = sbr.rel (!%p15_p7) target bundleno = 4 (0x4), region = 119 }
 0x31f   :  { %2931 = vsyncpa [#allocation5], 1 }
 0x320   :  { %2933 = vsyncpa [#allocation5 + $0x1], 1 }

</bundles_post_ra>
